<compile_context>
chip_gen: v7x
topology: tpu7x:2x2x1
jax: 0.10.0
libtpu: 0.0.40
codegen_flags: <defaults>
</compile_context>

<pallas_src>
import functools

import jax
import jax.numpy as jnp
from jax.experimental import pallas as pl
from jax.experimental.pallas import tpu as pltpu

_BN_EPS = 1e-5


def _vmem_capacity_bytes():
    """Physical per-TensorCore VMEM; conservative (v7x = 64 MiB) fallback if the query fails."""
    try:
        return int(pltpu.get_tpu_info().vmem_capacity_bytes)
    except Exception:
        return 64 * 2**20


def _bn_train_fused(x3, gamma, beta):
    """BatchNorm1d (training-mode batch stats), single pass, folded scale/shift.

    x3: (B, T, C) f32; gamma/beta: (1, C) f32.  Variance clamped at 0 so rsqrt cannot
    NaN when E[x^2] - E[x]^2 cancels to a tiny negative number.
    """
    b, t, c = x3.shape
    n = b * t
    x2 = x3.reshape(n, c)
    mean = jnp.sum(x2, axis=0, keepdims=True) * (1.0 / n)          # (1, C)
    ex2 = jnp.sum(x2 * x2, axis=0, keepdims=True) * (1.0 / n)      # (1, C)
    var = jnp.maximum(ex2 - mean * mean, 0.0)                      # biased, like torch
    scale = jax.lax.rsqrt(var + _BN_EPS) * gamma
    shift = beta - mean * scale
    return x3 * scale + shift


def _bottle2neck_kernel(x_ref, w1_ref, b1_ref, g1_ref, be1_ref,
                        wc_ref, bc_ref, gc_ref, bec_ref,
                        w3_ref, b3_ref, g3_ref, be3_ref,
                        wca1_ref, wca2_ref, wsa_ref,
                        o_ref, pad_scr,
                        *, B, T, width, nums, ksize, dil, pad,
                        sa_k, sa_pad, fuse_taps):
    f32 = jnp.float32
    bf16 = jnp.bfloat16
    BT = B * T
    cin = x_ref.shape[2]

    # ---------------- conv1 (1x1) -> relu -> bn1 -------------------------------------
    # x is read once here (bf16 MXU operand) and re-read only at the very end for the
    # residual add, so no f32 copy of it stays live across the whole kernel.
    out1 = jnp.dot(x_ref[...].astype(bf16).reshape(BT, cin), w1_ref[...],
                   preferred_element_type=f32).reshape(B, T, -1)
    out1 = jnp.maximum(out1 + b1_ref[...], 0.0)
    out1 = _bn_train_fused(out1, g1_ref[...], be1_ref[...])

    # ---------------- Res2Net branches, conv3 streamed (no out_cat) ------------------
    # Persistent zero-padded staging scratch: pad rows zeroed once, data rows rewritten
    # per branch.  No per-branch sublane concatenates.
    if pad > 0:
        zrow = jnp.zeros((B, pad, width), f32)
        pad_scr[:, :pad, :] = zrow
        pad_scr[:, pad + T:, :] = zrow

    w3 = w3_ref[...]                                          # (width*scale, planes) bf16
    planes = w3.shape[1]
    acc3 = None                                               # (BT, planes) f32 accumulator
    sp = None
    # TODO(synk): for production widths convert this unrolled loop to lax.fori_loop
    # (weights are already stacked/indexable) to bound live ranges on v7x.
    for i in range(nums):
        # TODO(synk): for width % 128 != 0 at production channel counts, pre-split out1
        # once into a (scale, B, T, width) scratch (or pad width to 128 lanes) so every
        # branch reads a lane-aligned block.
        spx_i = out1[:, :, i * width:(i + 1) * width]          # (B, T, width)
        sp = spx_i if i == 0 else sp + spx_i
        pad_scr[:, pad:pad + T, :] = sp                        # stage current branch input

        if fuse_taps:
            # width % 128 == 0: lane-aligned tap stacking -> one (BT, ksize*width) matmul.
            taps = [pad_scr[:, k * dil:k * dil + T, :] for k in range(ksize)]
            stacked = taps[0] if ksize == 1 else jnp.concatenate(taps, axis=-1)
            y = jnp.dot(stacked.astype(bf16).reshape(BT, ksize * width), wc_ref[i],
                        preferred_element_type=f32)
        else:
            # width < 128 lanes: a lane concat would force relayouts of full slabs; the
            # MXU has slack here, so accumulate ksize skinny matmuls in f32 instead.
            y = None
            for k in range(ksize):
                tap = pad_scr[:, k * dil:k * dil + T, :].astype(bf16).reshape(BT, width)
                contrib = jnp.dot(tap, wc_ref[i, k], preferred_element_type=f32)
                y = contrib if y is None else y + contrib
        y = y.reshape(B, T, width)
        y = jnp.maximum(y + bc_ref[i], 0.0)
        y = _bn_train_fused(y, gc_ref[i], bec_ref[i])
        sp = y
        # Stream conv3: accumulate this chunk's contribution immediately.
        contrib3 = jnp.dot(y.astype(bf16).reshape(BT, width),
                           w3[i * width:(i + 1) * width, :],
                           preferred_element_type=f32)
        acc3 = contrib3 if acc3 is None else acc3 + contrib3

    # Pass-through last chunk (spx[nums]).
    last = out1[:, :, nums * width:]
    acc3 = acc3 + jnp.dot(last.astype(bf16).reshape(BT, width),
                          w3[nums * width:, :], preferred_element_type=f32)

    # Fused epilogue over the accumulator: bias + ReLU + BN3 in one pass.
    out3 = jnp.maximum(acc3.reshape(B, T, planes) + b3_ref[...], 0.0)
    out3 = _bn_train_fused(out3, g3_ref[...], be3_ref[...])

    # ---------------- CBAM: channel attention ----------------------------------------
    # avg/max pools stacked into one (2B, C) matmul; fc2 applied once to the summed
    # hidden (exact: fc2 is linear).
    avg_pool = jnp.mean(out3, axis=1)                          # (B, C)
    max_pool = jnp.max(out3, axis=1)                           # (B, C)
    pooled = jnp.concatenate([avg_pool, max_pool], axis=0).astype(bf16)   # (2B, C)
    h = jnp.maximum(jnp.dot(pooled, wca1_ref[...], preferred_element_type=f32), 0.0)
    hsum = (h[:B, :] + h[B:, :]).astype(bf16)
    ca = jax.nn.sigmoid(jnp.dot(hsum, wca2_ref[...], preferred_element_type=f32))  # (B, C)
    xca = out3 * ca[:, None, :]                                # (B, T, C)

    # ---------------- CBAM: spatial attention (VPU FMA, no N=1 matmul) ---------------
    # Channel mean/max come out as (B, T) with T on the lane axis; the 2x7-tap conv
    # over time is 14 SMEM-scalar * vector FMAs on zero-padded lane slices.
    avg_t = jnp.mean(xca, axis=2)                              # (B, T)
    max_t = jnp.max(xca, axis=2)                               # (B, T)
    zlane = jnp.zeros((B, sa_pad), f32)
    avg_p = jnp.concatenate([zlane, avg_t, zlane], axis=1)     # (B, T + 2*sa_pad)
    max_p = jnp.concatenate([zlane, max_t, zlane], axis=1)
    sa = None
    for k in range(sa_k):
        term = (wsa_ref[0, k] * avg_p[:, k:k + T]
                + wsa_ref[1, k] * max_p[:, k:k + T])
        sa = term if sa is None else sa + term
    sa = jax.nn.sigmoid(sa)[:, :, None]                        # (B, T, 1)

    # CBAM.forward returns input * (input*ca*sa); fused with the residual add into the
    # single output store pass (x is re-read here, element-aligned, so safe even if the
    # output aliases x's buffer).
    o_ref[...] = out3 * (xca * sa) + x_ref[...]


def init_bottle2neck_params(key, inplanes, planes, kernel_size, dilation, scale):
    width = planes // scale
    nums = scale - 1
    w8 = width * scale
    ks = jax.random.split(key, 9)

    def rnd(k, shape, s=0.1):
        return jax.random.normal(k, shape, dtype=jnp.float32) * s

    return dict(
        w1=rnd(ks[0], (inplanes, w8)),                 # conv1 weight (in, out)
        b1=rnd(ks[1], (1, w8)),                        # conv1 bias
        g1=jnp.ones((1, w8), jnp.float32),             # bn1 gamma
        be1=jnp.zeros((1, w8), jnp.float32),           # bn1 beta
        wc=rnd(ks[2], (nums, kernel_size, width, width)),   # branch convs (in, out)
        bc=rnd(ks[3], (nums, 1, width)),               # branch conv biases
        gc=jnp.ones((nums, 1, width), jnp.float32),    # branch bn gammas
        bec=jnp.zeros((nums, 1, width), jnp.float32),  # branch bn betas
        w3=rnd(ks[4], (w8, planes)),                   # conv3 weight (in, out)
        b3=rnd(ks[5], (1, planes)),
        g3=jnp.ones((1, planes), jnp.float32),
        be3=jnp.zeros((1, planes), jnp.float32),
        wca1=rnd(ks[6], (planes, 512)),                # CBAM ChannelAttention fc1 (no bias)
        wca2=rnd(ks[7], (512, planes)),                # CBAM ChannelAttention fc2 (no bias)
        wsa=rnd(ks[8], (2, 7)),                        # CBAM SpatialAttention conv (no bias)
    )


@functools.partial(jax.jit, static_argnames=("kernel_size", "dilation", "scale"))
def bottle2neck_forward(x_bct, params, *, kernel_size, dilation, scale):
    B, Cin, T = x_bct.shape
    planes = params["w3"].shape[1]
    width = params["wc"].shape[-1]
    nums = scale - 1
    assert planes == Cin, "residual add requires planes == inplanes"
    pad = (kernel_size // 2) * dilation
    sa_k, sa_pad = 7, 3
    fuse_taps = (width % 128 == 0)          # only stack taps along lanes when aligned

    x_btc = jnp.transpose(x_bct, (0, 2, 1)).astype(jnp.float32)   # NCT -> (B, T, C)

    # Pre-cast matmul weights to bf16 (f32 accumulation in-kernel); branch conv weights
    # are pre-reshaped to the stacked-tap layout only when the fused path is used.
    bf16 = jnp.bfloat16
    w1 = params["w1"].astype(bf16)
    if fuse_taps:
        wc = params["wc"].reshape(nums, kernel_size * width, width).astype(bf16)
    else:
        wc = params["wc"].astype(bf16)                            # (nums, k, width, width)
    w3 = params["w3"].astype(bf16)
    wca1 = params["wca1"].astype(bf16)
    wca2 = params["wca2"].astype(bf16)
    wsa = params["wsa"].astype(jnp.float32)                       # (2, 7) scalars -> SMEM

    operands = (x_btc, w1, params["b1"], params["g1"], params["be1"],
                wc, params["bc"], params["gc"], params["bec"],
                w3, params["b3"], params["g3"], params["be3"],
                wca1, wca2, wsa)

    kern = functools.partial(
        _bottle2neck_kernel, B=B, T=T, width=width, nums=nums,
        ksize=kernel_size, dil=dilation, pad=pad, sa_k=sa_k, sa_pad=sa_pad,
        fuse_taps=fuse_taps)

    vmem = pl.BlockSpec(memory_space=pltpu.MemorySpace.VMEM)
    smem = pl.BlockSpec(memory_space=pltpu.MemorySpace.SMEM)
    in_specs = [vmem] * (len(operands) - 1) + [smem]              # wsa scalars in SMEM

    # Scoped VMEM limit: working-set estimate clamped to ~85% of this chip's *physical*
    # per-core VMEM (64 MiB on v7x, 128 MiB on v5e/v6e) so the limit never exceeds HW.
    act_bytes = B * T * max(Cin, planes, width * scale, kernel_size * width) * 4
    param_bytes = sum(int(p.size) * p.dtype.itemsize for p in operands)
    cap = _vmem_capacity_bytes()
    want = 12 * act_bytes + 2 * param_bytes + (8 << 20)
    vmem_limit = int(max(16 << 20, min(int(0.85 * cap), want)))

    # TODO(synk): production shapes want a multi-pass gridded design (stats pass +
    # normalize/apply pass, tiled over B/T, dimension_semantics=("parallel",...)) since
    # every BN and the CBAM pools reduce globally over (B, T).
    out_btc = pl.pallas_call(
        kern,
        out_shape=jax.ShapeDtypeStruct((B, T, planes), jnp.float32),
        in_specs=in_specs,
        out_specs=vmem,
        scratch_shapes=[pltpu.VMEM((B, T + 2 * pad, width), jnp.float32)],
        input_output_aliases={0: 0},     # output reuses x's HBM buffer (single block)
        compiler_params=pltpu.CompilerParams(vmem_limit_bytes=vmem_limit),
    )(*operands)
    return jnp.transpose(out_btc, (0, 2, 1))                      # back to NCT


def bottle2neck_reference(x_bct, params, *, kernel_size, dilation, scale):
    """Pure-JAX reference (same dtype policy: bf16 MXU operands, f32 accumulation)."""
    bf16 = jnp.bfloat16
    p = params
    B, Cin, T = x_bct.shape
    width = p["wc"].shape[-1]
    nums = scale - 1
    pad = (kernel_size // 2) * dilation
    x = jnp.transpose(x_bct, (0, 2, 1)).astype(jnp.float32)

    w1 = p["w1"].astype(bf16)
    wc = p["wc"].astype(bf16)
    w3 = p["w3"].astype(bf16)
    wca1 = p["wca1"].astype(bf16)
    wca2 = p["wca2"].astype(bf16)

    def bn(x3, gamma, beta):
        x2 = x3.reshape(-1, x3.shape[-1])
        m = jnp.mean(x2, axis=0)
        v = jnp.mean((x2 - m) ** 2, axis=0)
        return (x3 - m) * jax.lax.rsqrt(v + _BN_EPS) * gamma + beta

    out1 = jnp.dot(x.astype(bf16).reshape(B * T, Cin), w1,
                   preferred_element_type=jnp.float32).reshape(B, T, -1) + p["b1"]
    out1 = bn(jnp.maximum(out1, 0.0), p["g1"], p["be1"])

    chunks = []
    sp = None
    for i in range(nums):
        spx_i = out1[:, :, i * width:(i + 1) * width]
        sp = spx_i if i == 0 else sp + spx_i
        sp_bf = sp.astype(bf16)
        zp = jnp.zeros((B, pad, width), bf16)
        sp_p = jnp.concatenate([zp, sp_bf, zp], axis=1)
        y = jnp.zeros((B, T, width), jnp.float32)
        for k in range(kernel_size):
            tap = sp_p[:, k * dilation:k * dilation + T, :]
            y = y + jnp.dot(tap.reshape(B * T, width), wc[i, k],
                            preferred_element_type=jnp.float32).reshape(B, T, width)
        y = bn(jnp.maximum(y + p["bc"][i], 0.0), p["gc"][i], p["bec"][i])
        sp = y
        chunks.append(y)
    chunks.append(out1[:, :, nums * width:])
    out_cat = jnp.concatenate(chunks, axis=-1)

    out3 = jnp.dot(out_cat.astype(bf16).reshape(B * T, -1), w3,
                   preferred_element_type=jnp.float32).reshape(B, T, -1) + p["b3"]
    out3 = bn(jnp.maximum(out3, 0.0), p["g3"], p["be3"])

    avg_pool = jnp.mean(out3, axis=1)
    max_pool = jnp.max(out3, axis=1)
    avg_h = jnp.maximum(jnp.dot(avg_pool.astype(bf16), wca1,
                                preferred_element_type=jnp.float32), 0.0)
    max_h = jnp.maximum(jnp.dot(max_pool.astype(bf16), wca1,
                                preferred_element_type=jnp.float32), 0.0)
    ca = jax.nn.sigmoid(
        jnp.dot(avg_h.astype(bf16), wca2, preferred_element_type=jnp.float32)
        + jnp.dot(max_h.astype(bf16), wca2, preferred_element_type=jnp.float32))
    xca = out3 * ca[:, None, :]

    avg_c = jnp.mean(xca, axis=2, keepdims=True)
    max_c = jnp.max(xca, axis=2, keepdims=True)
    zp = jnp.zeros((B, 3, 1), jnp.float32)
    avg_p = jnp.concatenate([zp, avg_c, zp], axis=1)
    max_p = jnp.concatenate([zp, max_c, zp], axis=1)
    sa = jnp.zeros((B, T, 1), jnp.float32)
    for k in range(7):
        sa = sa + p["wsa"][0, k] * avg_p[:, k:k + T, :] + p["wsa"][1, k] * max_p[:, k:k + T, :]
    sa = jax.nn.sigmoid(sa)
    out = out3 * (xca * sa) + x
    return jnp.transpose(out, (0, 2, 1))


if __name__ == "__main__":
    key = jax.random.PRNGKey(0)
    kx, kp = jax.random.split(key)

    # Bottle2neck(inplanes=64, planes=64, kernel_size=3, dilation=2, scale=8)
    B, C, T = 2, 64, 32
    kernel_size, dilation, scale = 3, 2, 8

    x = jax.random.normal(kx, (B, C, T), dtype=jnp.float32)      # PyTorch NCT layout
    params = init_bottle2neck_params(kp, C, C, kernel_size, dilation, scale)

    out = bottle2neck_forward(x, params, kernel_size=kernel_size,
                              dilation=dilation, scale=scale)
    out = jax.block_until_ready(out)

    ref = bottle2neck_reference(x, params, kernel_size=kernel_size,
                                dilation=dilation, scale=scale)
    assert out.shape == (B, C, T)
    assert bool(jnp.allclose(out, ref, atol=1e-2, rtol=1e-2)), "kernel/reference mismatch"
    print("KERNEL_OK")
</pallas_src>

<mosaic_0001>
module attributes {stable_mosaic.version = 11 : i64} {
  func.func @_bottle2neck_kernel(%arg0: memref<2x32x64xf32, #tpu.memory_space<vmem>>, %arg1: memref<64x64xbf16, #tpu.memory_space<vmem>>, %arg2: memref<1x64xf32, #tpu.memory_space<vmem>>, %arg3: memref<1x64xf32, #tpu.memory_space<vmem>>, %arg4: memref<1x64xf32, #tpu.memory_space<vmem>>, %arg5: memref<7x3x8x8xbf16, #tpu.memory_space<vmem>>, %arg6: memref<7x1x8xf32, #tpu.memory_space<vmem>>, %arg7: memref<7x1x8xf32, #tpu.memory_space<vmem>>, %arg8: memref<7x1x8xf32, #tpu.memory_space<vmem>>, %arg9: memref<64x64xbf16, #tpu.memory_space<vmem>>, %arg10: memref<1x64xf32, #tpu.memory_space<vmem>>, %arg11: memref<1x64xf32, #tpu.memory_space<vmem>>, %arg12: memref<1x64xf32, #tpu.memory_space<vmem>>, %arg13: memref<64x512xbf16, #tpu.memory_space<vmem>>, %arg14: memref<512x64xbf16, #tpu.memory_space<vmem>>, %arg15: memref<2x7xf32, #tpu.memory_space<smem>>, %arg16: memref<2x32x64xf32, #tpu.memory_space<vmem>>, %arg17: memref<2x36x8xf32, #tpu.memory_space<vmem>>) attributes {dimension_semantics = [], scalar_prefetch = 0 : i64, scratch_operands = 1 : i64, tpu.core_type = #tpu.core_type<tc>} {
    %c0 = arith.constant 0 : index
    %c0_0 = arith.constant 0 : index
    %c0_1 = arith.constant 0 : index
    %0 = vector.load %arg0[%c0, %c0_0, %c0_1] : memref<2x32x64xf32, #tpu.memory_space<vmem>>, vector<2x32x64xf32>
    %1 = arith.truncf %0 : vector<2x32x64xf32> to vector<2x32x64xbf16>
    %2 = vector.shape_cast %1 : vector<2x32x64xbf16> to vector<64x64xbf16>
    %c0_2 = arith.constant 0 : index
    %c0_3 = arith.constant 0 : index
    %3 = vector.load %arg1[%c0_2, %c0_3] : memref<64x64xbf16, #tpu.memory_space<vmem>>, vector<64x64xbf16>
    %cst = arith.constant dense<0.000000e+00> : vector<64x64xf32>
    %4 = tpu.matmul %2, %3, %cst {dimension_numbers = #tpu.dot_dimension_numbers<[1], [0], [0], [1], [0, 0, 1, 1], [], []>} : vector<64x64xbf16>, vector<64x64xbf16>, vector<64x64xf32> -> vector<64x64xf32>
    %5 = vector.shape_cast %4 : vector<64x64xf32> to vector<2x32x64xf32>
    %c0_4 = arith.constant 0 : index
    %c0_5 = arith.constant 0 : index
    %6 = vector.load %arg2[%c0_4, %c0_5] : memref<1x64xf32, #tpu.memory_space<vmem>>, vector<1x64xf32>
    %7 = vector.shape_cast %6 : vector<1x64xf32> to vector<1x1x64xf32>
    %8 = vector.broadcast %7 : vector<1x1x64xf32> to vector<2x32x64xf32>
    %9 = arith.addf %5, %8 : vector<2x32x64xf32>
    %cst_6 = arith.constant 0.000000e+00 : f32
    %10 = vector.broadcast %cst_6 : f32 to vector<2x32x64xf32>
    %11 = arith.maximumf %9, %10 : vector<2x32x64xf32>
    %c0_7 = arith.constant 0 : index
    %c0_8 = arith.constant 0 : index
    %12 = vector.load %arg3[%c0_7, %c0_8] : memref<1x64xf32, #tpu.memory_space<vmem>>, vector<1x64xf32>
    %c0_9 = arith.constant 0 : index
    %c0_10 = arith.constant 0 : index
    %13 = vector.load %arg4[%c0_9, %c0_10] : memref<1x64xf32, #tpu.memory_space<vmem>>, vector<1x64xf32>
    %14 = vector.shape_cast %11 : vector<2x32x64xf32> to vector<64x64xf32>
    %cst_11 = arith.constant dense<0.000000e+00> : vector<64xf32>
    %15 = vector.multi_reduction <add>, %14, %cst_11 [0] : vector<64x64xf32> to vector<64xf32>
    %16 = vector.shape_cast %15 : vector<64xf32> to vector<1x64xf32>
    %cst_12 = arith.constant 1.562500e-02 : f32
    %17 = vector.broadcast %cst_12 : f32 to vector<1x64xf32>
    %18 = arith.mulf %16, %17 : vector<1x64xf32>
    %19 = arith.mulf %14, %14 : vector<64x64xf32>
    %cst_13 = arith.constant dense<0.000000e+00> : vector<64xf32>
    %20 = vector.multi_reduction <add>, %19, %cst_13 [0] : vector<64x64xf32> to vector<64xf32>
    %21 = vector.shape_cast %20 : vector<64xf32> to vector<1x64xf32>
    %cst_14 = arith.constant 1.562500e-02 : f32
    %22 = vector.broadcast %cst_14 : f32 to vector<1x64xf32>
    %23 = arith.mulf %21, %22 : vector<1x64xf32>
    %24 = arith.mulf %18, %18 : vector<1x64xf32>
    %25 = arith.subf %23, %24 : vector<1x64xf32>
    %cst_15 = arith.constant 0.000000e+00 : f32
    %26 = vector.broadcast %cst_15 : f32 to vector<1x64xf32>
    %27 = arith.maximumf %25, %26 : vector<1x64xf32>
    %cst_16 = arith.constant 9.99999974E-6 : f32
    %28 = vector.broadcast %cst_16 : f32 to vector<1x64xf32>
    %29 = arith.addf %27, %28 : vector<1x64xf32>
    %30 = math.rsqrt %29 : vector<1x64xf32>
    %31 = arith.mulf %30, %12 : vector<1x64xf32>
    %32 = arith.mulf %18, %31 : vector<1x64xf32>
    %33 = arith.subf %13, %32 : vector<1x64xf32>
    %34 = vector.shape_cast %31 : vector<1x64xf32> to vector<1x1x64xf32>
    %35 = vector.broadcast %34 : vector<1x1x64xf32> to vector<2x32x64xf32>
    %36 = arith.mulf %11, %35 : vector<2x32x64xf32>
    %37 = vector.shape_cast %33 : vector<1x64xf32> to vector<1x1x64xf32>
    %38 = vector.broadcast %37 : vector<1x1x64xf32> to vector<2x32x64xf32>
    %39 = arith.addf %36, %38 : vector<2x32x64xf32>
    %cst_17 = arith.constant 0.000000e+00 : f32
    %40 = vector.broadcast %cst_17 : f32 to vector<2x2x8xf32>
    %c0_18 = arith.constant 0 : index
    %c0_19 = arith.constant 0 : index
    %c0_20 = arith.constant 0 : index
    %41 = vector.load %arg17[%c0_18, %c0_19, %c0_20] : memref<2x36x8xf32, #tpu.memory_space<vmem>>, vector<2x2x8xf32>
    tpu.vector_store %arg17[%c0_18, %c0_19, %c0_20], %40 {strides = array<i32>} : memref<2x36x8xf32, #tpu.memory_space<vmem>>, vector<2x2x8xf32>,
    %c0_21 = arith.constant 0 : index
    %c34 = arith.constant 34 : index
    %c0_22 = arith.constant 0 : index
    %42 = vector.load %arg17[%c0_21, %c34, %c0_22] : memref<2x36x8xf32, #tpu.memory_space<vmem>>, vector<2x2x8xf32>
    tpu.vector_store %arg17[%c0_21, %c34, %c0_22], %40 {strides = array<i32>} : memref<2x36x8xf32, #tpu.memory_space<vmem>>, vector<2x2x8xf32>,
    %c0_23 = arith.constant 0 : index
    %c0_24 = arith.constant 0 : index
    %43 = vector.load %arg9[%c0_23, %c0_24] : memref<64x64xbf16, #tpu.memory_space<vmem>>, vector<64x64xbf16>
    %44 = vector.extract_strided_slice %39 {offsets = [0, 0, 0], sizes = [2, 32, 8], strides = [1, 1, 1]} : vector<2x32x64xf32> to vector<2x32x8xf32>
    %c0_25 = arith.constant 0 : index
    %c2 = arith.constant 2 : index
    %c0_26 = arith.constant 0 : index
    %45 = vector.load %arg17[%c0_25, %c2, %c0_26] : memref<2x36x8xf32, #tpu.memory_space<vmem>>, vector<2x32x8xf32>
    tpu.vector_store %arg17[%c0_25, %c2, %c0_26], %44 {strides = array<i32>} : memref<2x36x8xf32, #tpu.memory_space<vmem>>, vector<2x32x8xf32>,
    %c0_27 = arith.constant 0 : index
    %c0_28 = arith.constant 0 : index
    %c0_29 = arith.constant 0 : index
    %46 = vector.load %arg17[%c0_27, %c0_28, %c0_29] : memref<2x36x8xf32, #tpu.memory_space<vmem>>, vector<2x32x8xf32>
    %47 = arith.truncf %46 : vector<2x32x8xf32> to vector<2x32x8xbf16>
    %48 = vector.shape_cast %47 : vector<2x32x8xbf16> to vector<64x8xbf16>
    %c0_30 = arith.constant 0 : index
    %c0_31 = arith.constant 0 : index
    %c0_32 = arith.constant 0 : index
    %c0_33 = arith.constant 0 : index
    %49 = vector.load %arg5[%c0_30, %c0_31, %c0_32, %c0_33] : memref<7x3x8x8xbf16, #tpu.memory_space<vmem>>, vector<1x1x8x8xbf16>
    %50 = vector.shape_cast %49 : vector<1x1x8x8xbf16> to vector<8x8xbf16>
    %cst_34 = arith.constant dense<0.000000e+00> : vector<64x8xf32>
    %51 = tpu.matmul %48, %50, %cst_34 {dimension_numbers = #tpu.dot_dimension_numbers<[1], [0], [0], [1], [0, 0, 1, 1], [], []>} : vector<64x8xbf16>, vector<8x8xbf16>, vector<64x8xf32> -> vector<64x8xf32>
    %c0_35 = arith.constant 0 : index
    %c2_36 = arith.constant 2 : index
    %c0_37 = arith.constant 0 : index
    %52 = vector.load %arg17[%c0_35, %c2_36, %c0_37] : memref<2x36x8xf32, #tpu.memory_space<vmem>>, vector<2x32x8xf32>
    %53 = arith.truncf %52 : vector<2x32x8xf32> to vector<2x32x8xbf16>
    %54 = vector.shape_cast %53 : vector<2x32x8xbf16> to vector<64x8xbf16>
    %c0_38 = arith.constant 0 : index
    %c1 = arith.constant 1 : index
    %c0_39 = arith.constant 0 : index
    %c0_40 = arith.constant 0 : index
    %55 = vector.load %arg5[%c0_38, %c1, %c0_39, %c0_40] : memref<7x3x8x8xbf16, #tpu.memory_space<vmem>>, vector<1x1x8x8xbf16>
    %56 = vector.shape_cast %55 : vector<1x1x8x8xbf16> to vector<8x8xbf16>
    %cst_41 = arith.constant dense<0.000000e+00> : vector<64x8xf32>
    %57 = tpu.matmul %54, %56, %cst_41 {dimension_numbers = #tpu.dot_dimension_numbers<[1], [0], [0], [1], [0, 0, 1, 1], [], []>} : vector<64x8xbf16>, vector<8x8xbf16>, vector<64x8xf32> -> vector<64x8xf32>
    %58 = arith.addf %51, %57 : vector<64x8xf32>
    %c0_42 = arith.constant 0 : index
    %c4 = arith.constant 4 : index
    %c0_43 = arith.constant 0 : index
    %59 = vector.load %arg17[%c0_42, %c4, %c0_43] : memref<2x36x8xf32, #tpu.memory_space<vmem>>, vector<2x32x8xf32>
    %60 = arith.truncf %59 : vector<2x32x8xf32> to vector<2x32x8xbf16>
    %61 = vector.shape_cast %60 : vector<2x32x8xbf16> to vector<64x8xbf16>
    %c0_44 = arith.constant 0 : index
    %c2_45 = arith.constant 2 : index
    %c0_46 = arith.constant 0 : index
    %c0_47 = arith.constant 0 : index
    %62 = vector.load %arg5[%c0_44, %c2_45, %c0_46, %c0_47] : memref<7x3x8x8xbf16, #tpu.memory_space<vmem>>, vector<1x1x8x8xbf16>
    %63 = vector.shape_cast %62 : vector<1x1x8x8xbf16> to vector<8x8xbf16>
    %cst_48 = arith.constant dense<0.000000e+00> : vector<64x8xf32>
    %64 = tpu.matmul %61, %63, %cst_48 {dimension_numbers = #tpu.dot_dimension_numbers<[1], [0], [0], [1], [0, 0, 1, 1], [], []>} : vector<64x8xbf16>, vector<8x8xbf16>, vector<64x8xf32> -> vector<64x8xf32>
    %65 = arith.addf %58, %64 : vector<64x8xf32>
    %66 = vector.shape_cast %65 : vector<64x8xf32> to vector<2x32x8xf32>
    %c0_49 = arith.constant 0 : index
    %c0_50 = arith.constant 0 : index
    %c0_51 = arith.constant 0 : index
    %67 = vector.load %arg6[%c0_49, %c0_50, %c0_51] : memref<7x1x8xf32, #tpu.memory_space<vmem>>, vector<1x1x8xf32>
    %68 = vector.shape_cast %67 : vector<1x1x8xf32> to vector<1x8xf32>
    %69 = vector.shape_cast %68 : vector<1x8xf32> to vector<1x1x8xf32>
    %70 = vector.broadcast %69 : vector<1x1x8xf32> to vector<2x32x8xf32>
    %71 = arith.addf %66, %70 : vector<2x32x8xf32>
    %cst_52 = arith.constant 0.000000e+00 : f32
    %72 = vector.broadcast %cst_52 : f32 to vector<2x32x8xf32>
    %73 = arith.maximumf %71, %72 : vector<2x32x8xf32>
    %c0_53 = arith.constant 0 : index
    %c0_54 = arith.constant 0 : index
    %c0_55 = arith.constant 0 : index
    %74 = vector.load %arg7[%c0_53, %c0_54, %c0_55] : memref<7x1x8xf32, #tpu.memory_space<vmem>>, vector<1x1x8xf32>
    %75 = vector.shape_cast %74 : vector<1x1x8xf32> to vector<1x8xf32>
    %c0_56 = arith.constant 0 : index
    %c0_57 = arith.constant 0 : index
    %c0_58 = arith.constant 0 : index
    %76 = vector.load %arg8[%c0_56, %c0_57, %c0_58] : memref<7x1x8xf32, #tpu.memory_space<vmem>>, vector<1x1x8xf32>
    %77 = vector.shape_cast %76 : vector<1x1x8xf32> to vector<1x8xf32>
    %78 = vector.shape_cast %73 : vector<2x32x8xf32> to vector<64x8xf32>
    %cst_59 = arith.constant dense<0.000000e+00> : vector<8xf32>
    %79 = vector.multi_reduction <add>, %78, %cst_59 [0] : vector<64x8xf32> to vector<8xf32>
    %80 = vector.shape_cast %79 : vector<8xf32> to vector<1x8xf32>
    %cst_60 = arith.constant 1.562500e-02 : f32
    %81 = vector.broadcast %cst_60 : f32 to vector<1x8xf32>
    %82 = arith.mulf %80, %81 : vector<1x8xf32>
    %83 = arith.mulf %78, %78 : vector<64x8xf32>
    %cst_61 = arith.constant dense<0.000000e+00> : vector<8xf32>
    %84 = vector.multi_reduction <add>, %83, %cst_61 [0] : vector<64x8xf32> to vector<8xf32>
    %85 = vector.shape_cast %84 : vector<8xf32> to vector<1x8xf32>
    %cst_62 = arith.constant 1.562500e-02 : f32
    %86 = vector.broadcast %cst_62 : f32 to vector<1x8xf32>
    %87 = arith.mulf %85, %86 : vector<1x8xf32>
    %88 = arith.mulf %82, %82 : vector<1x8xf32>
    %89 = arith.subf %87, %88 : vector<1x8xf32>
    %cst_63 = arith.constant 0.000000e+00 : f32
    %90 = vector.broadcast %cst_63 : f32 to vector<1x8xf32>
    %91 = arith.maximumf %89, %90 : vector<1x8xf32>
    %cst_64 = arith.constant 9.99999974E-6 : f32
    %92 = vector.broadcast %cst_64 : f32 to vector<1x8xf32>
    %93 = arith.addf %91, %92 : vector<1x8xf32>
    %94 = math.rsqrt %93 : vector<1x8xf32>
    %95 = arith.mulf %94, %75 : vector<1x8xf32>
    %96 = arith.mulf %82, %95 : vector<1x8xf32>
    %97 = arith.subf %77, %96 : vector<1x8xf32>
    %98 = vector.shape_cast %95 : vector<1x8xf32> to vector<1x1x8xf32>
    %99 = vector.broadcast %98 : vector<1x1x8xf32> to vector<2x32x8xf32>
    %100 = arith.mulf %73, %99 : vector<2x32x8xf32>
    %101 = vector.shape_cast %97 : vector<1x8xf32> to vector<1x1x8xf32>
    %102 = vector.broadcast %101 : vector<1x1x8xf32> to vector<2x32x8xf32>
    %103 = arith.addf %100, %102 : vector<2x32x8xf32>
    %104 = arith.truncf %103 : vector<2x32x8xf32> to vector<2x32x8xbf16>
    %105 = vector.shape_cast %104 : vector<2x32x8xbf16> to vector<64x8xbf16>
    %106 = vector.extract_strided_slice %43 {offsets = [0, 0], sizes = [8, 64], strides = [1, 1]} : vector<64x64xbf16> to vector<8x64xbf16>
    %cst_65 = arith.constant dense<0.000000e+00> : vector<64x64xf32>
    %107 = tpu.matmul %105, %106, %cst_65 {dimension_numbers = #tpu.dot_dimension_numbers<[1], [0], [0], [1], [0, 0, 1, 1], [], []>} : vector<64x8xbf16>, vector<8x64xbf16>, vector<64x64xf32> -> vector<64x64xf32>
    %108 = vector.extract_strided_slice %39 {offsets = [0, 0, 8], sizes = [2, 32, 8], strides = [1, 1, 1]} : vector<2x32x64xf32> to vector<2x32x8xf32>
    %109 = arith.addf %103, %108 : vector<2x32x8xf32>
    %c0_66 = arith.constant 0 : index
    %c2_67 = arith.constant 2 : index
    %c0_68 = arith.constant 0 : index
    %110 = vector.load %arg17[%c0_66, %c2_67, %c0_68] : memref<2x36x8xf32, #tpu.memory_space<vmem>>, vector<2x32x8xf32>
    tpu.vector_store %arg17[%c0_66, %c2_67, %c0_68], %109 {strides = array<i32>} : memref<2x36x8xf32, #tpu.memory_space<vmem>>, vector<2x32x8xf32>,
    %c0_69 = arith.constant 0 : index
    %c0_70 = arith.constant 0 : index
    %c0_71 = arith.constant 0 : index
    %111 = vector.load %arg17[%c0_69, %c0_70, %c0_71] : memref<2x36x8xf32, #tpu.memory_space<vmem>>, vector<2x32x8xf32>
    %112 = arith.truncf %111 : vector<2x32x8xf32> to vector<2x32x8xbf16>
    %113 = vector.shape_cast %112 : vector<2x32x8xbf16> to vector<64x8xbf16>
    %c1_72 = arith.constant 1 : index
    %c0_73 = arith.constant 0 : index
    %c0_74 = arith.constant 0 : index
    %c0_75 = arith.constant 0 : index
    %114 = vector.load %arg5[%c1_72, %c0_73, %c0_74, %c0_75] : memref<7x3x8x8xbf16, #tpu.memory_space<vmem>>, vector<1x1x8x8xbf16>
    %115 = vector.shape_cast %114 : vector<1x1x8x8xbf16> to vector<8x8xbf16>
    %cst_76 = arith.constant dense<0.000000e+00> : vector<64x8xf32>
    %116 = tpu.matmul %113, %115, %cst_76 {dimension_numbers = #tpu.dot_dimension_numbers<[1], [0], [0], [1], [0, 0, 1, 1], [], []>} : vector<64x8xbf16>, vector<8x8xbf16>, vector<64x8xf32> -> vector<64x8xf32>
    %c0_77 = arith.constant 0 : index
    %c2_78 = arith.constant 2 : index
    %c0_79 = arith.constant 0 : index
    %117 = vector.load %arg17[%c0_77, %c2_78, %c0_79] : memref<2x36x8xf32, #tpu.memory_space<vmem>>, vector<2x32x8xf32>
    %118 = arith.truncf %117 : vector<2x32x8xf32> to vector<2x32x8xbf16>
    %119 = vector.shape_cast %118 : vector<2x32x8xbf16> to vector<64x8xbf16>
    %c1_80 = arith.constant 1 : index
    %c1_81 = arith.constant 1 : index
    %c0_82 = arith.constant 0 : index
    %c0_83 = arith.constant 0 : index
    %120 = vector.load %arg5[%c1_80, %c1_81, %c0_82, %c0_83] : memref<7x3x8x8xbf16, #tpu.memory_space<vmem>>, vector<1x1x8x8xbf16>
    %121 = vector.shape_cast %120 : vector<1x1x8x8xbf16> to vector<8x8xbf16>
    %cst_84 = arith.constant dense<0.000000e+00> : vector<64x8xf32>
    %122 = tpu.matmul %119, %121, %cst_84 {dimension_numbers = #tpu.dot_dimension_numbers<[1], [0], [0], [1], [0, 0, 1, 1], [], []>} : vector<64x8xbf16>, vector<8x8xbf16>, vector<64x8xf32> -> vector<64x8xf32>
    %123 = arith.addf %116, %122 : vector<64x8xf32>
    %c0_85 = arith.constant 0 : index
    %c4_86 = arith.constant 4 : index
    %c0_87 = arith.constant 0 : index
    %124 = vector.load %arg17[%c0_85, %c4_86, %c0_87] : memref<2x36x8xf32, #tpu.memory_space<vmem>>, vector<2x32x8xf32>
    %125 = arith.truncf %124 : vector<2x32x8xf32> to vector<2x32x8xbf16>
    %126 = vector.shape_cast %125 : vector<2x32x8xbf16> to vector<64x8xbf16>
    %c1_88 = arith.constant 1 : index
    %c2_89 = arith.constant 2 : index
    %c0_90 = arith.constant 0 : index
    %c0_91 = arith.constant 0 : index
    %127 = vector.load %arg5[%c1_88, %c2_89, %c0_90, %c0_91] : memref<7x3x8x8xbf16, #tpu.memory_space<vmem>>, vector<1x1x8x8xbf16>
    %128 = vector.shape_cast %127 : vector<1x1x8x8xbf16> to vector<8x8xbf16>
    %cst_92 = arith.constant dense<0.000000e+00> : vector<64x8xf32>
    %129 = tpu.matmul %126, %128, %cst_92 {dimension_numbers = #tpu.dot_dimension_numbers<[1], [0], [0], [1], [0, 0, 1, 1], [], []>} : vector<64x8xbf16>, vector<8x8xbf16>, vector<64x8xf32> -> vector<64x8xf32>
    %130 = arith.addf %123, %129 : vector<64x8xf32>
    %131 = vector.shape_cast %130 : vector<64x8xf32> to vector<2x32x8xf32>
    %c1_93 = arith.constant 1 : index
    %c0_94 = arith.constant 0 : index
    %c0_95 = arith.constant 0 : index
    %132 = vector.load %arg6[%c1_93, %c0_94, %c0_95] : memref<7x1x8xf32, #tpu.memory_space<vmem>>, vector<1x1x8xf32>
    %133 = vector.shape_cast %132 : vector<1x1x8xf32> to vector<1x8xf32>
    %134 = vector.shape_cast %133 : vector<1x8xf32> to vector<1x1x8xf32>
    %135 = vector.broadcast %134 : vector<1x1x8xf32> to vector<2x32x8xf32>
    %136 = arith.addf %131, %135 : vector<2x32x8xf32>
    %cst_96 = arith.constant 0.000000e+00 : f32
    %137 = vector.broadcast %cst_96 : f32 to vector<2x32x8xf32>
    %138 = arith.maximumf %136, %137 : vector<2x32x8xf32>
    %c1_97 = arith.constant 1 : index
    %c0_98 = arith.constant 0 : index
    %c0_99 = arith.constant 0 : index
    %139 = vector.load %arg7[%c1_97, %c0_98, %c0_99] : memref<7x1x8xf32, #tpu.memory_space<vmem>>, vector<1x1x8xf32>
    %140 = vector.shape_cast %139 : vector<1x1x8xf32> to vector<1x8xf32>
    %c1_100 = arith.constant 1 : index
    %c0_101 = arith.constant 0 : index
    %c0_102 = arith.constant 0 : index
    %141 = vector.load %arg8[%c1_100, %c0_101, %c0_102] : memref<7x1x8xf32, #tpu.memory_space<vmem>>, vector<1x1x8xf32>
    %142 = vector.shape_cast %141 : vector<1x1x8xf32> to vector<1x8xf32>
    %143 = vector.shape_cast %138 : vector<2x32x8xf32> to vector<64x8xf32>
    %cst_103 = arith.constant dense<0.000000e+00> : vector<8xf32>
    %144 = vector.multi_reduction <add>, %143, %cst_103 [0] : vector<64x8xf32> to vector<8xf32>
    %145 = vector.shape_cast %144 : vector<8xf32> to vector<1x8xf32>
    %cst_104 = arith.constant 1.562500e-02 : f32
    %146 = vector.broadcast %cst_104 : f32 to vector<1x8xf32>
    %147 = arith.mulf %145, %146 : vector<1x8xf32>
    %148 = arith.mulf %143, %143 : vector<64x8xf32>
    %cst_105 = arith.constant dense<0.000000e+00> : vector<8xf32>
    %149 = vector.multi_reduction <add>, %148, %cst_105 [0] : vector<64x8xf32> to vector<8xf32>
    %150 = vector.shape_cast %149 : vector<8xf32> to vector<1x8xf32>
    %cst_106 = arith.constant 1.562500e-02 : f32
    %151 = vector.broadcast %cst_106 : f32 to vector<1x8xf32>
    %152 = arith.mulf %150, %151 : vector<1x8xf32>
    %153 = arith.mulf %147, %147 : vector<1x8xf32>
    %154 = arith.subf %152, %153 : vector<1x8xf32>
    %cst_107 = arith.constant 0.000000e+00 : f32
    %155 = vector.broadcast %cst_107 : f32 to vector<1x8xf32>
    %156 = arith.maximumf %154, %155 : vector<1x8xf32>
    %cst_108 = arith.constant 9.99999974E-6 : f32
    %157 = vector.broadcast %cst_108 : f32 to vector<1x8xf32>
    %158 = arith.addf %156, %157 : vector<1x8xf32>
    %159 = math.rsqrt %158 : vector<1x8xf32>
    %160 = arith.mulf %159, %140 : vector<1x8xf32>
    %161 = arith.mulf %147, %160 : vector<1x8xf32>
    %162 = arith.subf %142, %161 : vector<1x8xf32>
    %163 = vector.shape_cast %160 : vector<1x8xf32> to vector<1x1x8xf32>
    %164 = vector.broadcast %163 : vector<1x1x8xf32> to vector<2x32x8xf32>
    %165 = arith.mulf %138, %164 : vector<2x32x8xf32>
    %166 = vector.shape_cast %162 : vector<1x8xf32> to vector<1x1x8xf32>
    %167 = vector.broadcast %166 : vector<1x1x8xf32> to vector<2x32x8xf32>
    %168 = arith.addf %165, %167 : vector<2x32x8xf32>
    %169 = arith.truncf %168 : vector<2x32x8xf32> to vector<2x32x8xbf16>
    %170 = vector.shape_cast %169 : vector<2x32x8xbf16> to vector<64x8xbf16>
    %171 = vector.extract_strided_slice %43 {offsets = [8, 0], sizes = [8, 64], strides = [1, 1]} : vector<64x64xbf16> to vector<8x64xbf16>
    %cst_109 = arith.constant dense<0.000000e+00> : vector<64x64xf32>
    %172 = tpu.matmul %170, %171, %cst_109 {dimension_numbers = #tpu.dot_dimension_numbers<[1], [0], [0], [1], [0, 0, 1, 1], [], []>} : vector<64x8xbf16>, vector<8x64xbf16>, vector<64x64xf32> -> vector<64x64xf32>
    %173 = arith.addf %107, %172 : vector<64x64xf32>
    %174 = vector.extract_strided_slice %39 {offsets = [0, 0, 16], sizes = [2, 32, 8], strides = [1, 1, 1]} : vector<2x32x64xf32> to vector<2x32x8xf32>
    %175 = arith.addf %168, %174 : vector<2x32x8xf32>
    %c0_110 = arith.constant 0 : index
    %c2_111 = arith.constant 2 : index
    %c0_112 = arith.constant 0 : index
    %176 = vector.load %arg17[%c0_110, %c2_111, %c0_112] : memref<2x36x8xf32, #tpu.memory_space<vmem>>, vector<2x32x8xf32>
    tpu.vector_store %arg17[%c0_110, %c2_111, %c0_112], %175 {strides = array<i32>} : memref<2x36x8xf32, #tpu.memory_space<vmem>>, vector<2x32x8xf32>,
    %c0_113 = arith.constant 0 : index
    %c0_114 = arith.constant 0 : index
    %c0_115 = arith.constant 0 : index
    %177 = vector.load %arg17[%c0_113, %c0_114, %c0_115] : memref<2x36x8xf32, #tpu.memory_space<vmem>>, vector<2x32x8xf32>
    %178 = arith.truncf %177 : vector<2x32x8xf32> to vector<2x32x8xbf16>
    %179 = vector.shape_cast %178 : vector<2x32x8xbf16> to vector<64x8xbf16>
    %c2_116 = arith.constant 2 : index
    %c0_117 = arith.constant 0 : index
    %c0_118 = arith.constant 0 : index
    %c0_119 = arith.constant 0 : index
    %180 = vector.load %arg5[%c2_116, %c0_117, %c0_118, %c0_119] : memref<7x3x8x8xbf16, #tpu.memory_space<vmem>>, vector<1x1x8x8xbf16>
    %181 = vector.shape_cast %180 : vector<1x1x8x8xbf16> to vector<8x8xbf16>
    %cst_120 = arith.constant dense<0.000000e+00> : vector<64x8xf32>
    %182 = tpu.matmul %179, %181, %cst_120 {dimension_numbers = #tpu.dot_dimension_numbers<[1], [0], [0], [1], [0, 0, 1, 1], [], []>} : vector<64x8xbf16>, vector<8x8xbf16>, vector<64x8xf32> -> vector<64x8xf32>
    %c0_121 = arith.constant 0 : index
    %c2_122 = arith.constant 2 : index
    %c0_123 = arith.constant 0 : index
    %183 = vector.load %arg17[%c0_121, %c2_122, %c0_123] : memref<2x36x8xf32, #tpu.memory_space<vmem>>, vector<2x32x8xf32>
    %184 = arith.truncf %183 : vector<2x32x8xf32> to vector<2x32x8xbf16>
    %185 = vector.shape_cast %184 : vector<2x32x8xbf16> to vector<64x8xbf16>
    %c2_124 = arith.constant 2 : index
    %c1_125 = arith.constant 1 : index
    %c0_126 = arith.constant 0 : index
    %c0_127 = arith.constant 0 : index
    %186 = vector.load %arg5[%c2_124, %c1_125, %c0_126, %c0_127] : memref<7x3x8x8xbf16, #tpu.memory_space<vmem>>, vector<1x1x8x8xbf16>
    %187 = vector.shape_cast %186 : vector<1x1x8x8xbf16> to vector<8x8xbf16>
    %cst_128 = arith.constant dense<0.000000e+00> : vector<64x8xf32>
    %188 = tpu.matmul %185, %187, %cst_128 {dimension_numbers = #tpu.dot_dimension_numbers<[1], [0], [0], [1], [0, 0, 1, 1], [], []>} : vector<64x8xbf16>, vector<8x8xbf16>, vector<64x8xf32> -> vector<64x8xf32>
    %189 = arith.addf %182, %188 : vector<64x8xf32>
    %c0_129 = arith.constant 0 : index
    %c4_130 = arith.constant 4 : index
    %c0_131 = arith.constant 0 : index
    %190 = vector.load %arg17[%c0_129, %c4_130, %c0_131] : memref<2x36x8xf32, #tpu.memory_space<vmem>>, vector<2x32x8xf32>
    %191 = arith.truncf %190 : vector<2x32x8xf32> to vector<2x32x8xbf16>
    %192 = vector.shape_cast %191 : vector<2x32x8xbf16> to vector<64x8xbf16>
    %c2_132 = arith.constant 2 : index
    %c2_133 = arith.constant 2 : index
    %c0_134 = arith.constant 0 : index
    %c0_135 = arith.constant 0 : index
    %193 = vector.load %arg5[%c2_132, %c2_133, %c0_134, %c0_135] : memref<7x3x8x8xbf16, #tpu.memory_space<vmem>>, vector<1x1x8x8xbf16>
    %194 = vector.shape_cast %193 : vector<1x1x8x8xbf16> to vector<8x8xbf16>
    %cst_136 = arith.constant dense<0.000000e+00> : vector<64x8xf32>
    %195 = tpu.matmul %192, %194, %cst_136 {dimension_numbers = #tpu.dot_dimension_numbers<[1], [0], [0], [1], [0, 0, 1, 1], [], []>} : vector<64x8xbf16>, vector<8x8xbf16>, vector<64x8xf32> -> vector<64x8xf32>
    %196 = arith.addf %189, %195 : vector<64x8xf32>
    %197 = vector.shape_cast %196 : vector<64x8xf32> to vector<2x32x8xf32>
    %c2_137 = arith.constant 2 : index
    %c0_138 = arith.constant 0 : index
    %c0_139 = arith.constant 0 : index
    %198 = vector.load %arg6[%c2_137, %c0_138, %c0_139] : memref<7x1x8xf32, #tpu.memory_space<vmem>>, vector<1x1x8xf32>
    %199 = vector.shape_cast %198 : vector<1x1x8xf32> to vector<1x8xf32>
    %200 = vector.shape_cast %199 : vector<1x8xf32> to vector<1x1x8xf32>
    %201 = vector.broadcast %200 : vector<1x1x8xf32> to vector<2x32x8xf32>
    %202 = arith.addf %197, %201 : vector<2x32x8xf32>
    %cst_140 = arith.constant 0.000000e+00 : f32
    %203 = vector.broadcast %cst_140 : f32 to vector<2x32x8xf32>
    %204 = arith.maximumf %202, %203 : vector<2x32x8xf32>
    %c2_141 = arith.constant 2 : index
    %c0_142 = arith.constant 0 : index
    %c0_143 = arith.constant 0 : index
    %205 = vector.load %arg7[%c2_141, %c0_142, %c0_143] : memref<7x1x8xf32, #tpu.memory_space<vmem>>, vector<1x1x8xf32>
    %206 = vector.shape_cast %205 : vector<1x1x8xf32> to vector<1x8xf32>
    %c2_144 = arith.constant 2 : index
    %c0_145 = arith.constant 0 : index
    %c0_146 = arith.constant 0 : index
    %207 = vector.load %arg8[%c2_144, %c0_145, %c0_146] : memref<7x1x8xf32, #tpu.memory_space<vmem>>, vector<1x1x8xf32>
    %208 = vector.shape_cast %207 : vector<1x1x8xf32> to vector<1x8xf32>
    %209 = vector.shape_cast %204 : vector<2x32x8xf32> to vector<64x8xf32>
    %cst_147 = arith.constant dense<0.000000e+00> : vector<8xf32>
    %210 = vector.multi_reduction <add>, %209, %cst_147 [0] : vector<64x8xf32> to vector<8xf32>
    %211 = vector.shape_cast %210 : vector<8xf32> to vector<1x8xf32>
    %cst_148 = arith.constant 1.562500e-02 : f32
    %212 = vector.broadcast %cst_148 : f32 to vector<1x8xf32>
    %213 = arith.mulf %211, %212 : vector<1x8xf32>
    %214 = arith.mulf %209, %209 : vector<64x8xf32>
    %cst_149 = arith.constant dense<0.000000e+00> : vector<8xf32>
    %215 = vector.multi_reduction <add>, %214, %cst_149 [0] : vector<64x8xf32> to vector<8xf32>
    %216 = vector.shape_cast %215 : vector<8xf32> to vector<1x8xf32>
    %cst_150 = arith.constant 1.562500e-02 : f32
    %217 = vector.broadcast %cst_150 : f32 to vector<1x8xf32>
    %218 = arith.mulf %216, %217 : vector<1x8xf32>
    %219 = arith.mulf %213, %213 : vector<1x8xf32>
    %220 = arith.subf %218, %219 : vector<1x8xf32>
    %cst_151 = arith.constant 0.000000e+00 : f32
    %221 = vector.broadcast %cst_151 : f32 to vector<1x8xf32>
    %222 = arith.maximumf %220, %221 : vector<1x8xf32>
    %cst_152 = arith.constant 9.99999974E-6 : f32
    %223 = vector.broadcast %cst_152 : f32 to vector<1x8xf32>
    %224 = arith.addf %222, %223 : vector<1x8xf32>
    %225 = math.rsqrt %224 : vector<1x8xf32>
    %226 = arith.mulf %225, %206 : vector<1x8xf32>
    %227 = arith.mulf %213, %226 : vector<1x8xf32>
    %228 = arith.subf %208, %227 : vector<1x8xf32>
    %229 = vector.shape_cast %226 : vector<1x8xf32> to vector<1x1x8xf32>
    %230 = vector.broadcast %229 : vector<1x1x8xf32> to vector<2x32x8xf32>
    %231 = arith.mulf %204, %230 : vector<2x32x8xf32>
    %232 = vector.shape_cast %228 : vector<1x8xf32> to vector<1x1x8xf32>
    %233 = vector.broadcast %232 : vector<1x1x8xf32> to vector<2x32x8xf32>
    %234 = arith.addf %231, %233 : vector<2x32x8xf32>
    %235 = arith.truncf %234 : vector<2x32x8xf32> to vector<2x32x8xbf16>
    %236 = vector.shape_cast %235 : vector<2x32x8xbf16> to vector<64x8xbf16>
    %237 = vector.extract_strided_slice %43 {offsets = [16, 0], sizes = [8, 64], strides = [1, 1]} : vector<64x64xbf16> to vector<8x64xbf16>
    %cst_153 = arith.constant dense<0.000000e+00> : vector<64x64xf32>
    %238 = tpu.matmul %236, %237, %cst_153 {dimension_numbers = #tpu.dot_dimension_numbers<[1], [0], [0], [1], [0, 0, 1, 1], [], []>} : vector<64x8xbf16>, vector<8x64xbf16>, vector<64x64xf32> -> vector<64x64xf32>
    %239 = arith.addf %173, %238 : vector<64x64xf32>
    %240 = vector.extract_strided_slice %39 {offsets = [0, 0, 24], sizes = [2, 32, 8], strides = [1, 1, 1]} : vector<2x32x64xf32> to vector<2x32x8xf32>
    %241 = arith.addf %234, %240 : vector<2x32x8xf32>
    %c0_154 = arith.constant 0 : index
    %c2_155 = arith.constant 2 : index
    %c0_156 = arith.constant 0 : index
    %242 = vector.load %arg17[%c0_154, %c2_155, %c0_156] : memref<2x36x8xf32, #tpu.memory_space<vmem>>, vector<2x32x8xf32>
    tpu.vector_store %arg17[%c0_154, %c2_155, %c0_156], %241 {strides = array<i32>} : memref<2x36x8xf32, #tpu.memory_space<vmem>>, vector<2x32x8xf32>,
    %c0_157 = arith.constant 0 : index
    %c0_158 = arith.constant 0 : index
    %c0_159 = arith.constant 0 : index
    %243 = vector.load %arg17[%c0_157, %c0_158, %c0_159] : memref<2x36x8xf32, #tpu.memory_space<vmem>>, vector<2x32x8xf32>
    %244 = arith.truncf %243 : vector<2x32x8xf32> to vector<2x32x8xbf16>
    %245 = vector.shape_cast %244 : vector<2x32x8xbf16> to vector<64x8xbf16>
    %c3 = arith.constant 3 : index
    %c0_160 = arith.constant 0 : index
    %c0_161 = arith.constant 0 : index
    %c0_162 = arith.constant 0 : index
    %246 = vector.load %arg5[%c3, %c0_160, %c0_161, %c0_162] : memref<7x3x8x8xbf16, #tpu.memory_space<vmem>>, vector<1x1x8x8xbf16>
    %247 = vector.shape_cast %246 : vector<1x1x8x8xbf16> to vector<8x8xbf16>
    %cst_163 = arith.constant dense<0.000000e+00> : vector<64x8xf32>
    %248 = tpu.matmul %245, %247, %cst_163 {dimension_numbers = #tpu.dot_dimension_numbers<[1], [0], [0], [1], [0, 0, 1, 1], [], []>} : vector<64x8xbf16>, vector<8x8xbf16>, vector<64x8xf32> -> vector<64x8xf32>
    %c0_164 = arith.constant 0 : index
    %c2_165 = arith.constant 2 : index
    %c0_166 = arith.constant 0 : index
    %249 = vector.load %arg17[%c0_164, %c2_165, %c0_166] : memref<2x36x8xf32, #tpu.memory_space<vmem>>, vector<2x32x8xf32>
    %250 = arith.truncf %249 : vector<2x32x8xf32> to vector<2x32x8xbf16>
    %251 = vector.shape_cast %250 : vector<2x32x8xbf16> to vector<64x8xbf16>
    %c3_167 = arith.constant 3 : index
    %c1_168 = arith.constant 1 : index
    %c0_169 = arith.constant 0 : index
    %c0_170 = arith.constant 0 : index
    %252 = vector.load %arg5[%c3_167, %c1_168, %c0_169, %c0_170] : memref<7x3x8x8xbf16, #tpu.memory_space<vmem>>, vector<1x1x8x8xbf16>
    %253 = vector.shape_cast %252 : vector<1x1x8x8xbf16> to vector<8x8xbf16>
    %cst_171 = arith.constant dense<0.000000e+00> : vector<64x8xf32>
    %254 = tpu.matmul %251, %253, %cst_171 {dimension_numbers = #tpu.dot_dimension_numbers<[1], [0], [0], [1], [0, 0, 1, 1], [], []>} : vector<64x8xbf16>, vector<8x8xbf16>, vector<64x8xf32> -> vector<64x8xf32>
    %255 = arith.addf %248, %254 : vector<64x8xf32>
    %c0_172 = arith.constant 0 : index
    %c4_173 = arith.constant 4 : index
    %c0_174 = arith.constant 0 : index
    %256 = vector.load %arg17[%c0_172, %c4_173, %c0_174] : memref<2x36x8xf32, #tpu.memory_space<vmem>>, vector<2x32x8xf32>
    %257 = arith.truncf %256 : vector<2x32x8xf32> to vector<2x32x8xbf16>
    %258 = vector.shape_cast %257 : vector<2x32x8xbf16> to vector<64x8xbf16>
    %c3_175 = arith.constant 3 : index
    %c2_176 = arith.constant 2 : index
    %c0_177 = arith.constant 0 : index
    %c0_178 = arith.constant 0 : index
    %259 = vector.load %arg5[%c3_175, %c2_176, %c0_177, %c0_178] : memref<7x3x8x8xbf16, #tpu.memory_space<vmem>>, vector<1x1x8x8xbf16>
    %260 = vector.shape_cast %259 : vector<1x1x8x8xbf16> to vector<8x8xbf16>
    %cst_179 = arith.constant dense<0.000000e+00> : vector<64x8xf32>
    %261 = tpu.matmul %258, %260, %cst_179 {dimension_numbers = #tpu.dot_dimension_numbers<[1], [0], [0], [1], [0, 0, 1, 1], [], []>} : vector<64x8xbf16>, vector<8x8xbf16>, vector<64x8xf32> -> vector<64x8xf32>
    %262 = arith.addf %255, %261 : vector<64x8xf32>
    %263 = vector.shape_cast %262 : vector<64x8xf32> to vector<2x32x8xf32>
    %c3_180 = arith.constant 3 : index
    %c0_181 = arith.constant 0 : index
    %c0_182 = arith.constant 0 : index
    %264 = vector.load %arg6[%c3_180, %c0_181, %c0_182] : memref<7x1x8xf32, #tpu.memory_space<vmem>>, vector<1x1x8xf32>
    %265 = vector.shape_cast %264 : vector<1x1x8xf32> to vector<1x8xf32>
    %266 = vector.shape_cast %265 : vector<1x8xf32> to vector<1x1x8xf32>
    %267 = vector.broadcast %266 : vector<1x1x8xf32> to vector<2x32x8xf32>
    %268 = arith.addf %263, %267 : vector<2x32x8xf32>
    %cst_183 = arith.constant 0.000000e+00 : f32
    %269 = vector.broadcast %cst_183 : f32 to vector<2x32x8xf32>
    %270 = arith.maximumf %268, %269 : vector<2x32x8xf32>
    %c3_184 = arith.constant 3 : index
    %c0_185 = arith.constant 0 : index
    %c0_186 = arith.constant 0 : index
    %271 = vector.load %arg7[%c3_184, %c0_185, %c0_186] : memref<7x1x8xf32, #tpu.memory_space<vmem>>, vector<1x1x8xf32>
    %272 = vector.shape_cast %271 : vector<1x1x8xf32> to vector<1x8xf32>
    %c3_187 = arith.constant 3 : index
    %c0_188 = arith.constant 0 : index
    %c0_189 = arith.constant 0 : index
    %273 = vector.load %arg8[%c3_187, %c0_188, %c0_189] : memref<7x1x8xf32, #tpu.memory_space<vmem>>, vector<1x1x8xf32>
    %274 = vector.shape_cast %273 : vector<1x1x8xf32> to vector<1x8xf32>
    %275 = vector.shape_cast %270 : vector<2x32x8xf32> to vector<64x8xf32>
    %cst_190 = arith.constant dense<0.000000e+00> : vector<8xf32>
    %276 = vector.multi_reduction <add>, %275, %cst_190 [0] : vector<64x8xf32> to vector<8xf32>
    %277 = vector.shape_cast %276 : vector<8xf32> to vector<1x8xf32>
    %cst_191 = arith.constant 1.562500e-02 : f32
    %278 = vector.broadcast %cst_191 : f32 to vector<1x8xf32>
    %279 = arith.mulf %277, %278 : vector<1x8xf32>
    %280 = arith.mulf %275, %275 : vector<64x8xf32>
    %cst_192 = arith.constant dense<0.000000e+00> : vector<8xf32>
    %281 = vector.multi_reduction <add>, %280, %cst_192 [0] : vector<64x8xf32> to vector<8xf32>
    %282 = vector.shape_cast %281 : vector<8xf32> to vector<1x8xf32>
    %cst_193 = arith.constant 1.562500e-02 : f32
    %283 = vector.broadcast %cst_193 : f32 to vector<1x8xf32>
    %284 = arith.mulf %282, %283 : vector<1x8xf32>
    %285 = arith.mulf %279, %279 : vector<1x8xf32>
    %286 = arith.subf %284, %285 : vector<1x8xf32>
    %cst_194 = arith.constant 0.000000e+00 : f32
    %287 = vector.broadcast %cst_194 : f32 to vector<1x8xf32>
    %288 = arith.maximumf %286, %287 : vector<1x8xf32>
    %cst_195 = arith.constant 9.99999974E-6 : f32
    %289 = vector.broadcast %cst_195 : f32 to vector<1x8xf32>
    %290 = arith.addf %288, %289 : vector<1x8xf32>
    %291 = math.rsqrt %290 : vector<1x8xf32>
    %292 = arith.mulf %291, %272 : vector<1x8xf32>
    %293 = arith.mulf %279, %292 : vector<1x8xf32>
    %294 = arith.subf %274, %293 : vector<1x8xf32>
    %295 = vector.shape_cast %292 : vector<1x8xf32> to vector<1x1x8xf32>
    %296 = vector.broadcast %295 : vector<1x1x8xf32> to vector<2x32x8xf32>
    %297 = arith.mulf %270, %296 : vector<2x32x8xf32>
    %298 = vector.shape_cast %294 : vector<1x8xf32> to vector<1x1x8xf32>
    %299 = vector.broadcast %298 : vector<1x1x8xf32> to vector<2x32x8xf32>
    %300 = arith.addf %297, %299 : vector<2x32x8xf32>
    %301 = arith.truncf %300 : vector<2x32x8xf32> to vector<2x32x8xbf16>
    %302 = vector.shape_cast %301 : vector<2x32x8xbf16> to vector<64x8xbf16>
    %303 = vector.extract_strided_slice %43 {offsets = [24, 0], sizes = [8, 64], strides = [1, 1]} : vector<64x64xbf16> to vector<8x64xbf16>
    %cst_196 = arith.constant dense<0.000000e+00> : vector<64x64xf32>
    %304 = tpu.matmul %302, %303, %cst_196 {dimension_numbers = #tpu.dot_dimension_numbers<[1], [0], [0], [1], [0, 0, 1, 1], [], []>} : vector<64x8xbf16>, vector<8x64xbf16>, vector<64x64xf32> -> vector<64x64xf32>
    %305 = arith.addf %239, %304 : vector<64x64xf32>
    %306 = vector.extract_strided_slice %39 {offsets = [0, 0, 32], sizes = [2, 32, 8], strides = [1, 1, 1]} : vector<2x32x64xf32> to vector<2x32x8xf32>
    %307 = arith.addf %300, %306 : vector<2x32x8xf32>
    %c0_197 = arith.constant 0 : index
    %c2_198 = arith.constant 2 : index
    %c0_199 = arith.constant 0 : index
    %308 = vector.load %arg17[%c0_197, %c2_198, %c0_199] : memref<2x36x8xf32, #tpu.memory_space<vmem>>, vector<2x32x8xf32>
    tpu.vector_store %arg17[%c0_197, %c2_198, %c0_199], %307 {strides = array<i32>} : memref<2x36x8xf32, #tpu.memory_space<vmem>>, vector<2x32x8xf32>,
    %c0_200 = arith.constant 0 : index
    %c0_201 = arith.constant 0 : index
    %c0_202 = arith.constant 0 : index
    %309 = vector.load %arg17[%c0_200, %c0_201, %c0_202] : memref<2x36x8xf32, #tpu.memory_space<vmem>>, vector<2x32x8xf32>
    %310 = arith.truncf %309 : vector<2x32x8xf32> to vector<2x32x8xbf16>
    %311 = vector.shape_cast %310 : vector<2x32x8xbf16> to vector<64x8xbf16>
    %c4_203 = arith.constant 4 : index
    %c0_204 = arith.constant 0 : index
    %c0_205 = arith.constant 0 : index
    %c0_206 = arith.constant 0 : index
    %312 = vector.load %arg5[%c4_203, %c0_204, %c0_205, %c0_206] : memref<7x3x8x8xbf16, #tpu.memory_space<vmem>>, vector<1x1x8x8xbf16>
    %313 = vector.shape_cast %312 : vector<1x1x8x8xbf16> to vector<8x8xbf16>
    %cst_207 = arith.constant dense<0.000000e+00> : vector<64x8xf32>
    %314 = tpu.matmul %311, %313, %cst_207 {dimension_numbers = #tpu.dot_dimension_numbers<[1], [0], [0], [1], [0, 0, 1, 1], [], []>} : vector<64x8xbf16>, vector<8x8xbf16>, vector<64x8xf32> -> vector<64x8xf32>
    %c0_208 = arith.constant 0 : index
    %c2_209 = arith.constant 2 : index
    %c0_210 = arith.constant 0 : index
    %315 = vector.load %arg17[%c0_208, %c2_209, %c0_210] : memref<2x36x8xf32, #tpu.memory_space<vmem>>, vector<2x32x8xf32>
    %316 = arith.truncf %315 : vector<2x32x8xf32> to vector<2x32x8xbf16>
    %317 = vector.shape_cast %316 : vector<2x32x8xbf16> to vector<64x8xbf16>
    %c4_211 = arith.constant 4 : index
    %c1_212 = arith.constant 1 : index
    %c0_213 = arith.constant 0 : index
    %c0_214 = arith.constant 0 : index
    %318 = vector.load %arg5[%c4_211, %c1_212, %c0_213, %c0_214] : memref<7x3x8x8xbf16, #tpu.memory_space<vmem>>, vector<1x1x8x8xbf16>
    %319 = vector.shape_cast %318 : vector<1x1x8x8xbf16> to vector<8x8xbf16>
    %cst_215 = arith.constant dense<0.000000e+00> : vector<64x8xf32>
    %320 = tpu.matmul %317, %319, %cst_215 {dimension_numbers = #tpu.dot_dimension_numbers<[1], [0], [0], [1], [0, 0, 1, 1], [], []>} : vector<64x8xbf16>, vector<8x8xbf16>, vector<64x8xf32> -> vector<64x8xf32>
    %321 = arith.addf %314, %320 : vector<64x8xf32>
    %c0_216 = arith.constant 0 : index
    %c4_217 = arith.constant 4 : index
    %c0_218 = arith.constant 0 : index
    %322 = vector.load %arg17[%c0_216, %c4_217, %c0_218] : memref<2x36x8xf32, #tpu.memory_space<vmem>>, vector<2x32x8xf32>
    %323 = arith.truncf %322 : vector<2x32x8xf32> to vector<2x32x8xbf16>
    %324 = vector.shape_cast %323 : vector<2x32x8xbf16> to vector<64x8xbf16>
    %c4_219 = arith.constant 4 : index
    %c2_220 = arith.constant 2 : index
    %c0_221 = arith.constant 0 : index
    %c0_222 = arith.constant 0 : index
    %325 = vector.load %arg5[%c4_219, %c2_220, %c0_221, %c0_222] : memref<7x3x8x8xbf16, #tpu.memory_space<vmem>>, vector<1x1x8x8xbf16>
    %326 = vector.shape_cast %325 : vector<1x1x8x8xbf16> to vector<8x8xbf16>
    %cst_223 = arith.constant dense<0.000000e+00> : vector<64x8xf32>
    %327 = tpu.matmul %324, %326, %cst_223 {dimension_numbers = #tpu.dot_dimension_numbers<[1], [0], [0], [1], [0, 0, 1, 1], [], []>} : vector<64x8xbf16>, vector<8x8xbf16>, vector<64x8xf32> -> vector<64x8xf32>
    %328 = arith.addf %321, %327 : vector<64x8xf32>
    %329 = vector.shape_cast %328 : vector<64x8xf32> to vector<2x32x8xf32>
    %c4_224 = arith.constant 4 : index
    %c0_225 = arith.constant 0 : index
    %c0_226 = arith.constant 0 : index
    %330 = vector.load %arg6[%c4_224, %c0_225, %c0_226] : memref<7x1x8xf32, #tpu.memory_space<vmem>>, vector<1x1x8xf32>
    %331 = vector.shape_cast %330 : vector<1x1x8xf32> to vector<1x8xf32>
    %332 = vector.shape_cast %331 : vector<1x8xf32> to vector<1x1x8xf32>
    %333 = vector.broadcast %332 : vector<1x1x8xf32> to vector<2x32x8xf32>
    %334 = arith.addf %329, %333 : vector<2x32x8xf32>
    %cst_227 = arith.constant 0.000000e+00 : f32
    %335 = vector.broadcast %cst_227 : f32 to vector<2x32x8xf32>
    %336 = arith.maximumf %334, %335 : vector<2x32x8xf32>
    %c4_228 = arith.constant 4 : index
    %c0_229 = arith.constant 0 : index
    %c0_230 = arith.constant 0 : index
    %337 = vector.load %arg7[%c4_228, %c0_229, %c0_230] : memref<7x1x8xf32, #tpu.memory_space<vmem>>, vector<1x1x8xf32>
    %338 = vector.shape_cast %337 : vector<1x1x8xf32> to vector<1x8xf32>
    %c4_231 = arith.constant 4 : index
    %c0_232 = arith.constant 0 : index
    %c0_233 = arith.constant 0 : index
    %339 = vector.load %arg8[%c4_231, %c0_232, %c0_233] : memref<7x1x8xf32, #tpu.memory_space<vmem>>, vector<1x1x8xf32>
    %340 = vector.shape_cast %339 : vector<1x1x8xf32> to vector<1x8xf32>
    %341 = vector.shape_cast %336 : vector<2x32x8xf32> to vector<64x8xf32>
    %cst_234 = arith.constant dense<0.000000e+00> : vector<8xf32>
    %342 = vector.multi_reduction <add>, %341, %cst_234 [0] : vector<64x8xf32> to vector<8xf32>
    %343 = vector.shape_cast %342 : vector<8xf32> to vector<1x8xf32>
    %cst_235 = arith.constant 1.562500e-02 : f32
    %344 = vector.broadcast %cst_235 : f32 to vector<1x8xf32>
    %345 = arith.mulf %343, %344 : vector<1x8xf32>
    %346 = arith.mulf %341, %341 : vector<64x8xf32>
    %cst_236 = arith.constant dense<0.000000e+00> : vector<8xf32>
    %347 = vector.multi_reduction <add>, %346, %cst_236 [0] : vector<64x8xf32> to vector<8xf32>
    %348 = vector.shape_cast %347 : vector<8xf32> to vector<1x8xf32>
    %cst_237 = arith.constant 1.562500e-02 : f32
    %349 = vector.broadcast %cst_237 : f32 to vector<1x8xf32>
    %350 = arith.mulf %348, %349 : vector<1x8xf32>
    %351 = arith.mulf %345, %345 : vector<1x8xf32>
    %352 = arith.subf %350, %351 : vector<1x8xf32>
    %cst_238 = arith.constant 0.000000e+00 : f32
    %353 = vector.broadcast %cst_238 : f32 to vector<1x8xf32>
    %354 = arith.maximumf %352, %353 : vector<1x8xf32>
    %cst_239 = arith.constant 9.99999974E-6 : f32
    %355 = vector.broadcast %cst_239 : f32 to vector<1x8xf32>
    %356 = arith.addf %354, %355 : vector<1x8xf32>
    %357 = math.rsqrt %356 : vector<1x8xf32>
    %358 = arith.mulf %357, %338 : vector<1x8xf32>
    %359 = arith.mulf %345, %358 : vector<1x8xf32>
    %360 = arith.subf %340, %359 : vector<1x8xf32>
    %361 = vector.shape_cast %358 : vector<1x8xf32> to vector<1x1x8xf32>
    %362 = vector.broadcast %361 : vector<1x1x8xf32> to vector<2x32x8xf32>
    %363 = arith.mulf %336, %362 : vector<2x32x8xf32>
    %364 = vector.shape_cast %360 : vector<1x8xf32> to vector<1x1x8xf32>
    %365 = vector.broadcast %364 : vector<1x1x8xf32> to vector<2x32x8xf32>
    %366 = arith.addf %363, %365 : vector<2x32x8xf32>
    %367 = arith.truncf %366 : vector<2x32x8xf32> to vector<2x32x8xbf16>
    %368 = vector.shape_cast %367 : vector<2x32x8xbf16> to vector<64x8xbf16>
    %369 = vector.extract_strided_slice %43 {offsets = [32, 0], sizes = [8, 64], strides = [1, 1]} : vector<64x64xbf16> to vector<8x64xbf16>
    %cst_240 = arith.constant dense<0.000000e+00> : vector<64x64xf32>
    %370 = tpu.matmul %368, %369, %cst_240 {dimension_numbers = #tpu.dot_dimension_numbers<[1], [0], [0], [1], [0, 0, 1, 1], [], []>} : vector<64x8xbf16>, vector<8x64xbf16>, vector<64x64xf32> -> vector<64x64xf32>
    %371 = arith.addf %305, %370 : vector<64x64xf32>
    %372 = vector.extract_strided_slice %39 {offsets = [0, 0, 40], sizes = [2, 32, 8], strides = [1, 1, 1]} : vector<2x32x64xf32> to vector<2x32x8xf32>
    %373 = arith.addf %366, %372 : vector<2x32x8xf32>
    %c0_241 = arith.constant 0 : index
    %c2_242 = arith.constant 2 : index
    %c0_243 = arith.constant 0 : index
    %374 = vector.load %arg17[%c0_241, %c2_242, %c0_243] : memref<2x36x8xf32, #tpu.memory_space<vmem>>, vector<2x32x8xf32>
    tpu.vector_store %arg17[%c0_241, %c2_242, %c0_243], %373 {strides = array<i32>} : memref<2x36x8xf32, #tpu.memory_space<vmem>>, vector<2x32x8xf32>,
    %c0_244 = arith.constant 0 : index
    %c0_245 = arith.constant 0 : index
    %c0_246 = arith.constant 0 : index
    %375 = vector.load %arg17[%c0_244, %c0_245, %c0_246] : memref<2x36x8xf32, #tpu.memory_space<vmem>>, vector<2x32x8xf32>
    %376 = arith.truncf %375 : vector<2x32x8xf32> to vector<2x32x8xbf16>
    %377 = vector.shape_cast %376 : vector<2x32x8xbf16> to vector<64x8xbf16>
    %c5 = arith.constant 5 : index
    %c0_247 = arith.constant 0 : index
    %c0_248 = arith.constant 0 : index
    %c0_249 = arith.constant 0 : index
    %378 = vector.load %arg5[%c5, %c0_247, %c0_248, %c0_249] : memref<7x3x8x8xbf16, #tpu.memory_space<vmem>>, vector<1x1x8x8xbf16>
    %379 = vector.shape_cast %378 : vector<1x1x8x8xbf16> to vector<8x8xbf16>
    %cst_250 = arith.constant dense<0.000000e+00> : vector<64x8xf32>
    %380 = tpu.matmul %377, %379, %cst_250 {dimension_numbers = #tpu.dot_dimension_numbers<[1], [0], [0], [1], [0, 0, 1, 1], [], []>} : vector<64x8xbf16>, vector<8x8xbf16>, vector<64x8xf32> -> vector<64x8xf32>
    %c0_251 = arith.constant 0 : index
    %c2_252 = arith.constant 2 : index
    %c0_253 = arith.constant 0 : index
    %381 = vector.load %arg17[%c0_251, %c2_252, %c0_253] : memref<2x36x8xf32, #tpu.memory_space<vmem>>, vector<2x32x8xf32>
    %382 = arith.truncf %381 : vector<2x32x8xf32> to vector<2x32x8xbf16>
    %383 = vector.shape_cast %382 : vector<2x32x8xbf16> to vector<64x8xbf16>
    %c5_254 = arith.constant 5 : index
    %c1_255 = arith.constant 1 : index
    %c0_256 = arith.constant 0 : index
    %c0_257 = arith.constant 0 : index
    %384 = vector.load %arg5[%c5_254, %c1_255, %c0_256, %c0_257] : memref<7x3x8x8xbf16, #tpu.memory_space<vmem>>, vector<1x1x8x8xbf16>
    %385 = vector.shape_cast %384 : vector<1x1x8x8xbf16> to vector<8x8xbf16>
    %cst_258 = arith.constant dense<0.000000e+00> : vector<64x8xf32>
    %386 = tpu.matmul %383, %385, %cst_258 {dimension_numbers = #tpu.dot_dimension_numbers<[1], [0], [0], [1], [0, 0, 1, 1], [], []>} : vector<64x8xbf16>, vector<8x8xbf16>, vector<64x8xf32> -> vector<64x8xf32>
    %387 = arith.addf %380, %386 : vector<64x8xf32>
    %c0_259 = arith.constant 0 : index
    %c4_260 = arith.constant 4 : index
    %c0_261 = arith.constant 0 : index
    %388 = vector.load %arg17[%c0_259, %c4_260, %c0_261] : memref<2x36x8xf32, #tpu.memory_space<vmem>>, vector<2x32x8xf32>
    %389 = arith.truncf %388 : vector<2x32x8xf32> to vector<2x32x8xbf16>
    %390 = vector.shape_cast %389 : vector<2x32x8xbf16> to vector<64x8xbf16>
    %c5_262 = arith.constant 5 : index
    %c2_263 = arith.constant 2 : index
    %c0_264 = arith.constant 0 : index
    %c0_265 = arith.constant 0 : index
    %391 = vector.load %arg5[%c5_262, %c2_263, %c0_264, %c0_265] : memref<7x3x8x8xbf16, #tpu.memory_space<vmem>>, vector<1x1x8x8xbf16>
    %392 = vector.shape_cast %391 : vector<1x1x8x8xbf16> to vector<8x8xbf16>
    %cst_266 = arith.constant dense<0.000000e+00> : vector<64x8xf32>
    %393 = tpu.matmul %390, %392, %cst_266 {dimension_numbers = #tpu.dot_dimension_numbers<[1], [0], [0], [1], [0, 0, 1, 1], [], []>} : vector<64x8xbf16>, vector<8x8xbf16>, vector<64x8xf32> -> vector<64x8xf32>
    %394 = arith.addf %387, %393 : vector<64x8xf32>
    %395 = vector.shape_cast %394 : vector<64x8xf32> to vector<2x32x8xf32>
    %c5_267 = arith.constant 5 : index
    %c0_268 = arith.constant 0 : index
    %c0_269 = arith.constant 0 : index
    %396 = vector.load %arg6[%c5_267, %c0_268, %c0_269] : memref<7x1x8xf32, #tpu.memory_space<vmem>>, vector<1x1x8xf32>
    %397 = vector.shape_cast %396 : vector<1x1x8xf32> to vector<1x8xf32>
    %398 = vector.shape_cast %397 : vector<1x8xf32> to vector<1x1x8xf32>
    %399 = vector.broadcast %398 : vector<1x1x8xf32> to vector<2x32x8xf32>
    %400 = arith.addf %395, %399 : vector<2x32x8xf32>
    %cst_270 = arith.constant 0.000000e+00 : f32
    %401 = vector.broadcast %cst_270 : f32 to vector<2x32x8xf32>
    %402 = arith.maximumf %400, %401 : vector<2x32x8xf32>
    %c5_271 = arith.constant 5 : index
    %c0_272 = arith.constant 0 : index
    %c0_273 = arith.constant 0 : index
    %403 = vector.load %arg7[%c5_271, %c0_272, %c0_273] : memref<7x1x8xf32, #tpu.memory_space<vmem>>, vector<1x1x8xf32>
    %404 = vector.shape_cast %403 : vector<1x1x8xf32> to vector<1x8xf32>
    %c5_274 = arith.constant 5 : index
    %c0_275 = arith.constant 0 : index
    %c0_276 = arith.constant 0 : index
    %405 = vector.load %arg8[%c5_274, %c0_275, %c0_276] : memref<7x1x8xf32, #tpu.memory_space<vmem>>, vector<1x1x8xf32>
    %406 = vector.shape_cast %405 : vector<1x1x8xf32> to vector<1x8xf32>
    %407 = vector.shape_cast %402 : vector<2x32x8xf32> to vector<64x8xf32>
    %cst_277 = arith.constant dense<0.000000e+00> : vector<8xf32>
    %408 = vector.multi_reduction <add>, %407, %cst_277 [0] : vector<64x8xf32> to vector<8xf32>
    %409 = vector.shape_cast %408 : vector<8xf32> to vector<1x8xf32>
    %cst_278 = arith.constant 1.562500e-02 : f32
    %410 = vector.broadcast %cst_278 : f32 to vector<1x8xf32>
    %411 = arith.mulf %409, %410 : vector<1x8xf32>
    %412 = arith.mulf %407, %407 : vector<64x8xf32>
    %cst_279 = arith.constant dense<0.000000e+00> : vector<8xf32>
    %413 = vector.multi_reduction <add>, %412, %cst_279 [0] : vector<64x8xf32> to vector<8xf32>
    %414 = vector.shape_cast %413 : vector<8xf32> to vector<1x8xf32>
    %cst_280 = arith.constant 1.562500e-02 : f32
    %415 = vector.broadcast %cst_280 : f32 to vector<1x8xf32>
    %416 = arith.mulf %414, %415 : vector<1x8xf32>
    %417 = arith.mulf %411, %411 : vector<1x8xf32>
    %418 = arith.subf %416, %417 : vector<1x8xf32>
    %cst_281 = arith.constant 0.000000e+00 : f32
    %419 = vector.broadcast %cst_281 : f32 to vector<1x8xf32>
    %420 = arith.maximumf %418, %419 : vector<1x8xf32>
    %cst_282 = arith.constant 9.99999974E-6 : f32
    %421 = vector.broadcast %cst_282 : f32 to vector<1x8xf32>
    %422 = arith.addf %420, %421 : vector<1x8xf32>
    %423 = math.rsqrt %422 : vector<1x8xf32>
    %424 = arith.mulf %423, %404 : vector<1x8xf32>
    %425 = arith.mulf %411, %424 : vector<1x8xf32>
    %426 = arith.subf %406, %425 : vector<1x8xf32>
    %427 = vector.shape_cast %424 : vector<1x8xf32> to vector<1x1x8xf32>
    %428 = vector.broadcast %427 : vector<1x1x8xf32> to vector<2x32x8xf32>
    %429 = arith.mulf %402, %428 : vector<2x32x8xf32>
    %430 = vector.shape_cast %426 : vector<1x8xf32> to vector<1x1x8xf32>
    %431 = vector.broadcast %430 : vector<1x1x8xf32> to vector<2x32x8xf32>
    %432 = arith.addf %429, %431 : vector<2x32x8xf32>
    %433 = arith.truncf %432 : vector<2x32x8xf32> to vector<2x32x8xbf16>
    %434 = vector.shape_cast %433 : vector<2x32x8xbf16> to vector<64x8xbf16>
    %435 = vector.extract_strided_slice %43 {offsets = [40, 0], sizes = [8, 64], strides = [1, 1]} : vector<64x64xbf16> to vector<8x64xbf16>
    %cst_283 = arith.constant dense<0.000000e+00> : vector<64x64xf32>
    %436 = tpu.matmul %434, %435, %cst_283 {dimension_numbers = #tpu.dot_dimension_numbers<[1], [0], [0], [1], [0, 0, 1, 1], [], []>} : vector<64x8xbf16>, vector<8x64xbf16>, vector<64x64xf32> -> vector<64x64xf32>
    %437 = arith.addf %371, %436 : vector<64x64xf32>
    %438 = vector.extract_strided_slice %39 {offsets = [0, 0, 48], sizes = [2, 32, 8], strides = [1, 1, 1]} : vector<2x32x64xf32> to vector<2x32x8xf32>
    %439 = arith.addf %432, %438 : vector<2x32x8xf32>
    %c0_284 = arith.constant 0 : index
    %c2_285 = arith.constant 2 : index
    %c0_286 = arith.constant 0 : index
    %440 = vector.load %arg17[%c0_284, %c2_285, %c0_286] : memref<2x36x8xf32, #tpu.memory_space<vmem>>, vector<2x32x8xf32>
    tpu.vector_store %arg17[%c0_284, %c2_285, %c0_286], %439 {strides = array<i32>} : memref<2x36x8xf32, #tpu.memory_space<vmem>>, vector<2x32x8xf32>,
    %c0_287 = arith.constant 0 : index
    %c0_288 = arith.constant 0 : index
    %c0_289 = arith.constant 0 : index
    %441 = vector.load %arg17[%c0_287, %c0_288, %c0_289] : memref<2x36x8xf32, #tpu.memory_space<vmem>>, vector<2x32x8xf32>
    %442 = arith.truncf %441 : vector<2x32x8xf32> to vector<2x32x8xbf16>
    %443 = vector.shape_cast %442 : vector<2x32x8xbf16> to vector<64x8xbf16>
    %c6 = arith.constant 6 : index
    %c0_290 = arith.constant 0 : index
    %c0_291 = arith.constant 0 : index
    %c0_292 = arith.constant 0 : index
    %444 = vector.load %arg5[%c6, %c0_290, %c0_291, %c0_292] : memref<7x3x8x8xbf16, #tpu.memory_space<vmem>>, vector<1x1x8x8xbf16>
    %445 = vector.shape_cast %444 : vector<1x1x8x8xbf16> to vector<8x8xbf16>
    %cst_293 = arith.constant dense<0.000000e+00> : vector<64x8xf32>
    %446 = tpu.matmul %443, %445, %cst_293 {dimension_numbers = #tpu.dot_dimension_numbers<[1], [0], [0], [1], [0, 0, 1, 1], [], []>} : vector<64x8xbf16>, vector<8x8xbf16>, vector<64x8xf32> -> vector<64x8xf32>
    %c0_294 = arith.constant 0 : index
    %c2_295 = arith.constant 2 : index
    %c0_296 = arith.constant 0 : index
    %447 = vector.load %arg17[%c0_294, %c2_295, %c0_296] : memref<2x36x8xf32, #tpu.memory_space<vmem>>, vector<2x32x8xf32>
    %448 = arith.truncf %447 : vector<2x32x8xf32> to vector<2x32x8xbf16>
    %449 = vector.shape_cast %448 : vector<2x32x8xbf16> to vector<64x8xbf16>
    %c6_297 = arith.constant 6 : index
    %c1_298 = arith.constant 1 : index
    %c0_299 = arith.constant 0 : index
    %c0_300 = arith.constant 0 : index
    %450 = vector.load %arg5[%c6_297, %c1_298, %c0_299, %c0_300] : memref<7x3x8x8xbf16, #tpu.memory_space<vmem>>, vector<1x1x8x8xbf16>
    %451 = vector.shape_cast %450 : vector<1x1x8x8xbf16> to vector<8x8xbf16>
    %cst_301 = arith.constant dense<0.000000e+00> : vector<64x8xf32>
    %452 = tpu.matmul %449, %451, %cst_301 {dimension_numbers = #tpu.dot_dimension_numbers<[1], [0], [0], [1], [0, 0, 1, 1], [], []>} : vector<64x8xbf16>, vector<8x8xbf16>, vector<64x8xf32> -> vector<64x8xf32>
    %453 = arith.addf %446, %452 : vector<64x8xf32>
    %c0_302 = arith.constant 0 : index
    %c4_303 = arith.constant 4 : index
    %c0_304 = arith.constant 0 : index
    %454 = vector.load %arg17[%c0_302, %c4_303, %c0_304] : memref<2x36x8xf32, #tpu.memory_space<vmem>>, vector<2x32x8xf32>
    %455 = arith.truncf %454 : vector<2x32x8xf32> to vector<2x32x8xbf16>
    %456 = vector.shape_cast %455 : vector<2x32x8xbf16> to vector<64x8xbf16>
    %c6_305 = arith.constant 6 : index
    %c2_306 = arith.constant 2 : index
    %c0_307 = arith.constant 0 : index
    %c0_308 = arith.constant 0 : index
    %457 = vector.load %arg5[%c6_305, %c2_306, %c0_307, %c0_308] : memref<7x3x8x8xbf16, #tpu.memory_space<vmem>>, vector<1x1x8x8xbf16>
    %458 = vector.shape_cast %457 : vector<1x1x8x8xbf16> to vector<8x8xbf16>
    %cst_309 = arith.constant dense<0.000000e+00> : vector<64x8xf32>
    %459 = tpu.matmul %456, %458, %cst_309 {dimension_numbers = #tpu.dot_dimension_numbers<[1], [0], [0], [1], [0, 0, 1, 1], [], []>} : vector<64x8xbf16>, vector<8x8xbf16>, vector<64x8xf32> -> vector<64x8xf32>
    %460 = arith.addf %453, %459 : vector<64x8xf32>
    %461 = vector.shape_cast %460 : vector<64x8xf32> to vector<2x32x8xf32>
    %c6_310 = arith.constant 6 : index
    %c0_311 = arith.constant 0 : index
    %c0_312 = arith.constant 0 : index
    %462 = vector.load %arg6[%c6_310, %c0_311, %c0_312] : memref<7x1x8xf32, #tpu.memory_space<vmem>>, vector<1x1x8xf32>
    %463 = vector.shape_cast %462 : vector<1x1x8xf32> to vector<1x8xf32>
    %464 = vector.shape_cast %463 : vector<1x8xf32> to vector<1x1x8xf32>
    %465 = vector.broadcast %464 : vector<1x1x8xf32> to vector<2x32x8xf32>
    %466 = arith.addf %461, %465 : vector<2x32x8xf32>
    %cst_313 = arith.constant 0.000000e+00 : f32
    %467 = vector.broadcast %cst_313 : f32 to vector<2x32x8xf32>
    %468 = arith.maximumf %466, %467 : vector<2x32x8xf32>
    %c6_314 = arith.constant 6 : index
    %c0_315 = arith.constant 0 : index
    %c0_316 = arith.constant 0 : index
    %469 = vector.load %arg7[%c6_314, %c0_315, %c0_316] : memref<7x1x8xf32, #tpu.memory_space<vmem>>, vector<1x1x8xf32>
    %470 = vector.shape_cast %469 : vector<1x1x8xf32> to vector<1x8xf32>
    %c6_317 = arith.constant 6 : index
    %c0_318 = arith.constant 0 : index
    %c0_319 = arith.constant 0 : index
    %471 = vector.load %arg8[%c6_317, %c0_318, %c0_319] : memref<7x1x8xf32, #tpu.memory_space<vmem>>, vector<1x1x8xf32>
    %472 = vector.shape_cast %471 : vector<1x1x8xf32> to vector<1x8xf32>
    %473 = vector.shape_cast %468 : vector<2x32x8xf32> to vector<64x8xf32>
    %cst_320 = arith.constant dense<0.000000e+00> : vector<8xf32>
    %474 = vector.multi_reduction <add>, %473, %cst_320 [0] : vector<64x8xf32> to vector<8xf32>
    %475 = vector.shape_cast %474 : vector<8xf32> to vector<1x8xf32>
    %cst_321 = arith.constant 1.562500e-02 : f32
    %476 = vector.broadcast %cst_321 : f32 to vector<1x8xf32>
    %477 = arith.mulf %475, %476 : vector<1x8xf32>
    %478 = arith.mulf %473, %473 : vector<64x8xf32>
    %cst_322 = arith.constant dense<0.000000e+00> : vector<8xf32>
    %479 = vector.multi_reduction <add>, %478, %cst_322 [0] : vector<64x8xf32> to vector<8xf32>
    %480 = vector.shape_cast %479 : vector<8xf32> to vector<1x8xf32>
    %cst_323 = arith.constant 1.562500e-02 : f32
    %481 = vector.broadcast %cst_323 : f32 to vector<1x8xf32>
    %482 = arith.mulf %480, %481 : vector<1x8xf32>
    %483 = arith.mulf %477, %477 : vector<1x8xf32>
    %484 = arith.subf %482, %483 : vector<1x8xf32>
    %cst_324 = arith.constant 0.000000e+00 : f32
    %485 = vector.broadcast %cst_324 : f32 to vector<1x8xf32>
    %486 = arith.maximumf %484, %485 : vector<1x8xf32>
    %cst_325 = arith.constant 9.99999974E-6 : f32
    %487 = vector.broadcast %cst_325 : f32 to vector<1x8xf32>
    %488 = arith.addf %486, %487 : vector<1x8xf32>
    %489 = math.rsqrt %488 : vector<1x8xf32>
    %490 = arith.mulf %489, %470 : vector<1x8xf32>
    %491 = arith.mulf %477, %490 : vector<1x8xf32>
    %492 = arith.subf %472, %491 : vector<1x8xf32>
    %493 = vector.shape_cast %490 : vector<1x8xf32> to vector<1x1x8xf32>
    %494 = vector.broadcast %493 : vector<1x1x8xf32> to vector<2x32x8xf32>
    %495 = arith.mulf %468, %494 : vector<2x32x8xf32>
    %496 = vector.shape_cast %492 : vector<1x8xf32> to vector<1x1x8xf32>
    %497 = vector.broadcast %496 : vector<1x1x8xf32> to vector<2x32x8xf32>
    %498 = arith.addf %495, %497 : vector<2x32x8xf32>
    %499 = arith.truncf %498 : vector<2x32x8xf32> to vector<2x32x8xbf16>
    %500 = vector.shape_cast %499 : vector<2x32x8xbf16> to vector<64x8xbf16>
    %501 = vector.extract_strided_slice %43 {offsets = [48, 0], sizes = [8, 64], strides = [1, 1]} : vector<64x64xbf16> to vector<8x64xbf16>
    %cst_326 = arith.constant dense<0.000000e+00> : vector<64x64xf32>
    %502 = tpu.matmul %500, %501, %cst_326 {dimension_numbers = #tpu.dot_dimension_numbers<[1], [0], [0], [1], [0, 0, 1, 1], [], []>} : vector<64x8xbf16>, vector<8x64xbf16>, vector<64x64xf32> -> vector<64x64xf32>
    %503 = arith.addf %437, %502 : vector<64x64xf32>
    %504 = vector.extract_strided_slice %39 {offsets = [0, 0, 56], sizes = [2, 32, 8], strides = [1, 1, 1]} : vector<2x32x64xf32> to vector<2x32x8xf32>
    %505 = arith.truncf %504 : vector<2x32x8xf32> to vector<2x32x8xbf16>
    %506 = vector.shape_cast %505 : vector<2x32x8xbf16> to vector<64x8xbf16>
    %507 = vector.extract_strided_slice %43 {offsets = [56, 0], sizes = [8, 64], strides = [1, 1]} : vector<64x64xbf16> to vector<8x64xbf16>
    %cst_327 = arith.constant dense<0.000000e+00> : vector<64x64xf32>
    %508 = tpu.matmul %506, %507, %cst_327 {dimension_numbers = #tpu.dot_dimension_numbers<[1], [0], [0], [1], [0, 0, 1, 1], [], []>} : vector<64x8xbf16>, vector<8x64xbf16>, vector<64x64xf32> -> vector<64x64xf32>
    %509 = arith.addf %503, %508 : vector<64x64xf32>
    %510 = vector.shape_cast %509 : vector<64x64xf32> to vector<2x32x64xf32>
    %c0_328 = arith.constant 0 : index
    %c0_329 = arith.constant 0 : index
    %511 = vector.load %arg10[%c0_328, %c0_329] : memref<1x64xf32, #tpu.memory_space<vmem>>, vector<1x64xf32>
    %512 = vector.shape_cast %511 : vector<1x64xf32> to vector<1x1x64xf32>
    %513 = vector.broadcast %512 : vector<1x1x64xf32> to vector<2x32x64xf32>
    %514 = arith.addf %510, %513 : vector<2x32x64xf32>
    %cst_330 = arith.constant 0.000000e+00 : f32
    %515 = vector.broadcast %cst_330 : f32 to vector<2x32x64xf32>
    %516 = arith.maximumf %514, %515 : vector<2x32x64xf32>
    %c0_331 = arith.constant 0 : index
    %c0_332 = arith.constant 0 : index
    %517 = vector.load %arg11[%c0_331, %c0_332] : memref<1x64xf32, #tpu.memory_space<vmem>>, vector<1x64xf32>
    %c0_333 = arith.constant 0 : index
    %c0_334 = arith.constant 0 : index
    %518 = vector.load %arg12[%c0_333, %c0_334] : memref<1x64xf32, #tpu.memory_space<vmem>>, vector<1x64xf32>
    %519 = vector.shape_cast %516 : vector<2x32x64xf32> to vector<64x64xf32>
    %cst_335 = arith.constant dense<0.000000e+00> : vector<64xf32>
    %520 = vector.multi_reduction <add>, %519, %cst_335 [0] : vector<64x64xf32> to vector<64xf32>
    %521 = vector.shape_cast %520 : vector<64xf32> to vector<1x64xf32>
    %cst_336 = arith.constant 1.562500e-02 : f32
    %522 = vector.broadcast %cst_336 : f32 to vector<1x64xf32>
    %523 = arith.mulf %521, %522 : vector<1x64xf32>
    %524 = arith.mulf %519, %519 : vector<64x64xf32>
    %cst_337 = arith.constant dense<0.000000e+00> : vector<64xf32>
    %525 = vector.multi_reduction <add>, %524, %cst_337 [0] : vector<64x64xf32> to vector<64xf32>
    %526 = vector.shape_cast %525 : vector<64xf32> to vector<1x64xf32>
    %cst_338 = arith.constant 1.562500e-02 : f32
    %527 = vector.broadcast %cst_338 : f32 to vector<1x64xf32>
    %528 = arith.mulf %526, %527 : vector<1x64xf32>
    %529 = arith.mulf %523, %523 : vector<1x64xf32>
    %530 = arith.subf %528, %529 : vector<1x64xf32>
    %cst_339 = arith.constant 0.000000e+00 : f32
    %531 = vector.broadcast %cst_339 : f32 to vector<1x64xf32>
    %532 = arith.maximumf %530, %531 : vector<1x64xf32>
    %cst_340 = arith.constant 9.99999974E-6 : f32
    %533 = vector.broadcast %cst_340 : f32 to vector<1x64xf32>
    %534 = arith.addf %532, %533 : vector<1x64xf32>
    %535 = math.rsqrt %534 : vector<1x64xf32>
    %536 = arith.mulf %535, %517 : vector<1x64xf32>
    %537 = arith.mulf %523, %536 : vector<1x64xf32>
    %538 = arith.subf %518, %537 : vector<1x64xf32>
    %539 = vector.shape_cast %536 : vector<1x64xf32> to vector<1x1x64xf32>
    %540 = vector.broadcast %539 : vector<1x1x64xf32> to vector<2x32x64xf32>
    %541 = arith.mulf %516, %540 : vector<2x32x64xf32>
    %542 = vector.shape_cast %538 : vector<1x64xf32> to vector<1x1x64xf32>
    %543 = vector.broadcast %542 : vector<1x1x64xf32> to vector<2x32x64xf32>
    %544 = arith.addf %541, %543 : vector<2x32x64xf32>
    %cst_341 = arith.constant dense<0.000000e+00> : vector<2x64xf32>
    %545 = vector.multi_reduction <add>, %544, %cst_341 [1] : vector<2x32x64xf32> to vector<2x64xf32>
    %cst_342 = arith.constant 3.200000e+01 : f32
    %546 = vector.broadcast %cst_342 : f32 to vector<2x64xf32>
    %547 = arith.divf %545, %546 : vector<2x64xf32>
    %cst_343 = arith.constant dense<0xFF800000> : vector<2x64xf32>
    %548 = vector.multi_reduction <maximumf>, %544, %cst_343 [1] : vector<2x32x64xf32> to vector<2x64xf32>
    %549 = tpu.concatenate %547, %548 in 0 : vector<2x64xf32>, vector<2x64xf32> -> vector<4x64xf32>
    %550 = arith.truncf %549 : vector<4x64xf32> to vector<4x64xbf16>
    %c0_344 = arith.constant 0 : index
    %c0_345 = arith.constant 0 : index
    %551 = vector.load %arg13[%c0_344, %c0_345] : memref<64x512xbf16, #tpu.memory_space<vmem>>, vector<64x512xbf16>
    %cst_346 = arith.constant dense<0.000000e+00> : vector<4x512xf32>
    %552 = tpu.matmul %550, %551, %cst_346 {dimension_numbers = #tpu.dot_dimension_numbers<[1], [0], [0], [1], [0, 0, 1, 1], [], []>} : vector<4x64xbf16>, vector<64x512xbf16>, vector<4x512xf32> -> vector<4x512xf32>
    %cst_347 = arith.constant 0.000000e+00 : f32
    %553 = vector.broadcast %cst_347 : f32 to vector<4x512xf32>
    %554 = arith.maximumf %552, %553 : vector<4x512xf32>
    %555 = vector.extract_strided_slice %554 {offsets = [0, 0], sizes = [2, 512], strides = [1, 1]} : vector<4x512xf32> to vector<2x512xf32>
    %556 = vector.extract_strided_slice %554 {offsets = [2, 0], sizes = [2, 512], strides = [1, 1]} : vector<4x512xf32> to vector<2x512xf32>
    %557 = arith.addf %555, %556 : vector<2x512xf32>
    %558 = arith.truncf %557 : vector<2x512xf32> to vector<2x512xbf16>
    %c0_348 = arith.constant 0 : index
    %c0_349 = arith.constant 0 : index
    %559 = vector.load %arg14[%c0_348, %c0_349] : memref<512x64xbf16, #tpu.memory_space<vmem>>, vector<512x64xbf16>
    %cst_350 = arith.constant dense<0.000000e+00> : vector<2x64xf32>
    %560 = tpu.matmul %558, %559, %cst_350 {dimension_numbers = #tpu.dot_dimension_numbers<[1], [0], [0], [1], [0, 0, 1, 1], [], []>} : vector<2x512xbf16>, vector<512x64xbf16>, vector<2x64xf32> -> vector<2x64xf32>
    %561 = arith.negf %560 : vector<2x64xf32>
    %562 = math.exp %561 : vector<2x64xf32>
    %cst_351 = arith.constant 1.000000e+00 : f32
    %563 = vector.broadcast %cst_351 : f32 to vector<2x64xf32>
    %564 = arith.addf %563, %562 : vector<2x64xf32>
    %565 = arith.divf %563, %564 : vector<2x64xf32>
    %566 = vector.shape_cast %565 : vector<2x64xf32> to vector<2x1x64xf32>
    %567 = vector.broadcast %566 : vector<2x1x64xf32> to vector<2x32x64xf32>
    %568 = arith.mulf %544, %567 : vector<2x32x64xf32>
    %cst_352 = arith.constant dense<0.000000e+00> : vector<2x32xf32>
    %569 = vector.multi_reduction <add>, %568, %cst_352 [2] : vector<2x32x64xf32> to vector<2x32xf32>
    %cst_353 = arith.constant 6.400000e+01 : f32
    %570 = vector.broadcast %cst_353 : f32 to vector<2x32xf32>
    %571 = arith.divf %569, %570 : vector<2x32xf32>
    %cst_354 = arith.constant dense<0xFF800000> : vector<2x32xf32>
    %572 = vector.multi_reduction <maximumf>, %568, %cst_354 [2] : vector<2x32x64xf32> to vector<2x32xf32>
    %cst_355 = arith.constant 0.000000e+00 : f32
    %573 = vector.broadcast %cst_355 : f32 to vector<2x3xf32>
    %574 = tpu.concatenate %573, %571, %573 in 1 : vector<2x3xf32>, vector<2x32xf32>, vector<2x3xf32> -> vector<2x38xf32>
    %575 = tpu.concatenate %573, %572, %573 in 1 : vector<2x3xf32>, vector<2x32xf32>, vector<2x3xf32> -> vector<2x38xf32>
    %c0_356 = arith.constant 0 : index
    %c0_357 = arith.constant 0 : index
    %576 = memref.load %arg15[%c0_356, %c0_357] : memref<2x7xf32, #tpu.memory_space<smem>>
    %577 = vector.extract_strided_slice %574 {offsets = [0, 0], sizes = [2, 32], strides = [1, 1]} : vector<2x38xf32> to vector<2x32xf32>
    %578 = vector.broadcast %576 : f32 to vector<2x32xf32>
    %579 = arith.mulf %578, %577 : vector<2x32xf32>
    %c1_358 = arith.constant 1 : index
    %c0_359 = arith.constant 0 : index
    %580 = memref.load %arg15[%c1_358, %c0_359] : memref<2x7xf32, #tpu.memory_space<smem>>
    %581 = vector.extract_strided_slice %575 {offsets = [0, 0], sizes = [2, 32], strides = [1, 1]} : vector<2x38xf32> to vector<2x32xf32>
    %582 = vector.broadcast %580 : f32 to vector<2x32xf32>
    %583 = arith.mulf %582, %581 : vector<2x32xf32>
    %584 = arith.addf %579, %583 : vector<2x32xf32>
    %c0_360 = arith.constant 0 : index
    %c1_361 = arith.constant 1 : index
    %585 = memref.load %arg15[%c0_360, %c1_361] : memref<2x7xf32, #tpu.memory_space<smem>>
    %586 = vector.extract_strided_slice %574 {offsets = [0, 1], sizes = [2, 32], strides = [1, 1]} : vector<2x38xf32> to vector<2x32xf32>
    %587 = vector.broadcast %585 : f32 to vector<2x32xf32>
    %588 = arith.mulf %587, %586 : vector<2x32xf32>
    %c1_362 = arith.constant 1 : index
    %c1_363 = arith.constant 1 : index
    %589 = memref.load %arg15[%c1_362, %c1_363] : memref<2x7xf32, #tpu.memory_space<smem>>
    %590 = vector.extract_strided_slice %575 {offsets = [0, 1], sizes = [2, 32], strides = [1, 1]} : vector<2x38xf32> to vector<2x32xf32>
    %591 = vector.broadcast %589 : f32 to vector<2x32xf32>
    %592 = arith.mulf %591, %590 : vector<2x32xf32>
    %593 = arith.addf %588, %592 : vector<2x32xf32>
    %594 = arith.addf %584, %593 : vector<2x32xf32>
    %c0_364 = arith.constant 0 : index
    %c2_365 = arith.constant 2 : index
    %595 = memref.load %arg15[%c0_364, %c2_365] : memref<2x7xf32, #tpu.memory_space<smem>>
    %596 = vector.extract_strided_slice %574 {offsets = [0, 2], sizes = [2, 32], strides = [1, 1]} : vector<2x38xf32> to vector<2x32xf32>
    %597 = vector.broadcast %595 : f32 to vector<2x32xf32>
    %598 = arith.mulf %597, %596 : vector<2x32xf32>
    %c1_366 = arith.constant 1 : index
    %c2_367 = arith.constant 2 : index
    %599 = memref.load %arg15[%c1_366, %c2_367] : memref<2x7xf32, #tpu.memory_space<smem>>
    %600 = vector.extract_strided_slice %575 {offsets = [0, 2], sizes = [2, 32], strides = [1, 1]} : vector<2x38xf32> to vector<2x32xf32>
    %601 = vector.broadcast %599 : f32 to vector<2x32xf32>
    %602 = arith.mulf %601, %600 : vector<2x32xf32>
    %603 = arith.addf %598, %602 : vector<2x32xf32>
    %604 = arith.addf %594, %603 : vector<2x32xf32>
    %c0_368 = arith.constant 0 : index
    %c3_369 = arith.constant 3 : index
    %605 = memref.load %arg15[%c0_368, %c3_369] : memref<2x7xf32, #tpu.memory_space<smem>>
    %606 = vector.extract_strided_slice %574 {offsets = [0, 3], sizes = [2, 32], strides = [1, 1]} : vector<2x38xf32> to vector<2x32xf32>
    %607 = vector.broadcast %605 : f32 to vector<2x32xf32>
    %608 = arith.mulf %607, %606 : vector<2x32xf32>
    %c1_370 = arith.constant 1 : index
    %c3_371 = arith.constant 3 : index
    %609 = memref.load %arg15[%c1_370, %c3_371] : memref<2x7xf32, #tpu.memory_space<smem>>
    %610 = vector.extract_strided_slice %575 {offsets = [0, 3], sizes = [2, 32], strides = [1, 1]} : vector<2x38xf32> to vector<2x32xf32>
    %611 = vector.broadcast %609 : f32 to vector<2x32xf32>
    %612 = arith.mulf %611, %610 : vector<2x32xf32>
    %613 = arith.addf %608, %612 : vector<2x32xf32>
    %614 = arith.addf %604, %613 : vector<2x32xf32>
    %c0_372 = arith.constant 0 : index
    %c4_373 = arith.constant 4 : index
    %615 = memref.load %arg15[%c0_372, %c4_373] : memref<2x7xf32, #tpu.memory_space<smem>>
    %616 = vector.extract_strided_slice %574 {offsets = [0, 4], sizes = [2, 32], strides = [1, 1]} : vector<2x38xf32> to vector<2x32xf32>
    %617 = vector.broadcast %615 : f32 to vector<2x32xf32>
    %618 = arith.mulf %617, %616 : vector<2x32xf32>
    %c1_374 = arith.constant 1 : index
    %c4_375 = arith.constant 4 : index
    %619 = memref.load %arg15[%c1_374, %c4_375] : memref<2x7xf32, #tpu.memory_space<smem>>
    %620 = vector.extract_strided_slice %575 {offsets = [0, 4], sizes = [2, 32], strides = [1, 1]} : vector<2x38xf32> to vector<2x32xf32>
    %621 = vector.broadcast %619 : f32 to vector<2x32xf32>
    %622 = arith.mulf %621, %620 : vector<2x32xf32>
    %623 = arith.addf %618, %622 : vector<2x32xf32>
    %624 = arith.addf %614, %623 : vector<2x32xf32>
    %c0_376 = arith.constant 0 : index
    %c5_377 = arith.constant 5 : index
    %625 = memref.load %arg15[%c0_376, %c5_377] : memref<2x7xf32, #tpu.memory_space<smem>>
    %626 = vector.extract_strided_slice %574 {offsets = [0, 5], sizes = [2, 32], strides = [1, 1]} : vector<2x38xf32> to vector<2x32xf32>
    %627 = vector.broadcast %625 : f32 to vector<2x32xf32>
    %628 = arith.mulf %627, %626 : vector<2x32xf32>
    %c1_378 = arith.constant 1 : index
    %c5_379 = arith.constant 5 : index
    %629 = memref.load %arg15[%c1_378, %c5_379] : memref<2x7xf32, #tpu.memory_space<smem>>
    %630 = vector.extract_strided_slice %575 {offsets = [0, 5], sizes = [2, 32], strides = [1, 1]} : vector<2x38xf32> to vector<2x32xf32>
    %631 = vector.broadcast %629 : f32 to vector<2x32xf32>
    %632 = arith.mulf %631, %630 : vector<2x32xf32>
    %633 = arith.addf %628, %632 : vector<2x32xf32>
    %634 = arith.addf %624, %633 : vector<2x32xf32>
    %c0_380 = arith.constant 0 : index
    %c6_381 = arith.constant 6 : index
    %635 = memref.load %arg15[%c0_380, %c6_381] : memref<2x7xf32, #tpu.memory_space<smem>>
    %636 = vector.extract_strided_slice %574 {offsets = [0, 6], sizes = [2, 32], strides = [1, 1]} : vector<2x38xf32> to vector<2x32xf32>
    %637 = vector.broadcast %635 : f32 to vector<2x32xf32>
    %638 = arith.mulf %637, %636 : vector<2x32xf32>
    %c1_382 = arith.constant 1 : index
    %c6_383 = arith.constant 6 : index
    %639 = memref.load %arg15[%c1_382, %c6_383] : memref<2x7xf32, #tpu.memory_space<smem>>
    %640 = vector.extract_strided_slice %575 {offsets = [0, 6], sizes = [2, 32], strides = [1, 1]} : vector<2x38xf32> to vector<2x32xf32>
    %641 = vector.broadcast %639 : f32 to vector<2x32xf32>
    %642 = arith.mulf %641, %640 : vector<2x32xf32>
    %643 = arith.addf %638, %642 : vector<2x32xf32>
    %644 = arith.addf %634, %643 : vector<2x32xf32>
    %645 = arith.negf %644 : vector<2x32xf32>
    %646 = math.exp %645 : vector<2x32xf32>
    %cst_384 = arith.constant 1.000000e+00 : f32
    %647 = vector.broadcast %cst_384 : f32 to vector<2x32xf32>
    %648 = arith.addf %647, %646 : vector<2x32xf32>
    %649 = arith.divf %647, %648 : vector<2x32xf32>
    %650 = vector.shape_cast %649 : vector<2x32xf32> to vector<2x32x1xf32>
    %651 = vector.broadcast %650 : vector<2x32x1xf32> to vector<2x32x64xf32>
    %652 = arith.mulf %568, %651 : vector<2x32x64xf32>
    %653 = arith.mulf %544, %652 : vector<2x32x64xf32>
    %c0_385 = arith.constant 0 : index
    %c0_386 = arith.constant 0 : index
    %c0_387 = arith.constant 0 : index
    %654 = vector.load %arg0[%c0_385, %c0_386, %c0_387] : memref<2x32x64xf32, #tpu.memory_space<vmem>>, vector<2x32x64xf32>
    %655 = arith.addf %653, %654 : vector<2x32x64xf32>
    %c0_388 = arith.constant 0 : index
    %c0_389 = arith.constant 0 : index
    %c0_390 = arith.constant 0 : index
    %656 = vector.load %arg16[%c0_388, %c0_389, %c0_390] : memref<2x32x64xf32, #tpu.memory_space<vmem>>, vector<2x32x64xf32>
    tpu.vector_store %arg16[%c0_388, %c0_389, %c0_390], %655 {strides = array<i32>} : memref<2x32x64xf32, #tpu.memory_space<vmem>>, vector<2x32x64xf32>,
    return
  }
}

</mosaic_0001>

<bundles_post_ra>
// kernel: bottle2neck_forward.1
= control target key start
LH: loop header
LB: loop body
LE: loop exit
PB: predicated region body
PF: predicated region fallthrough
CT: control target
= control target key end

     0   :  { %s7864_s0 = inlined_call_operand.vmem [shape: f32[2,32,64], index: 0, kind: input, shape index: {}, may-alias: {0,16}]   ;;  %s7865_s1 = inlined_call_operand.vmem [shape: bf16[64,64], index: 1, kind: input, shape index: {}]   ;;  %s7866_s2 = inlined_call_operand.vmem [shape: f32[1,64], index: 2, kind: input, shape index: {}]   ;;  %s7867_s3 = inlined_call_operand.vmem [shape: f32[1,64], index: 3, kind: input, shape index: {}]   ;;  %s7868_s4 = inlined_call_operand.vmem [shape: f32[1,64], index: 4, kind: input, shape index: {}]   ;;  %s7869_s5 = inlined_call_operand.vmem [shape: bf16[7,3,8,8], index: 5, kind: input, shape index: {}]   ;;  %s7870_s6 = inlined_call_operand.vmem [shape: f32[7,1,8], index: 6, kind: input, shape index: {}]   ;;  %s7871_s7 = inlined_call_operand.vmem [shape: f32[7,1,8], index: 7, kind: input, shape index: {}]   ;;  %s7872_s8 = inlined_call_operand.vmem [shape: f32[7,1,8], index: 8, kind: input, shape index: {}]   ;;  %s7873_s9 = inlined_call_operand.vmem [shape: bf16[64,64], index: 9, kind: input, shape index: {}]   ;;  %s7874_s10 = inlined_call_operand.vmem [shape: f32[1,64], index: 10, kind: input, shape index: {}]   ;;  %s7875_s11 = inlined_call_operand.vmem [shape: f32[1,64], index: 11, kind: input, shape index: {}]   ;;  %s7876_s12 = inlined_call_operand.vmem [shape: f32[1,64], index: 12, kind: input, shape index: {}]   ;;  %s7877_s13 = inlined_call_operand.vmem [shape: bf16[64,512], index: 13, kind: input, shape index: {}]   ;;  %s7878_s14 = inlined_call_operand.vmem [shape: bf16[512,64], index: 14, kind: input, shape index: {}]   ;;  %s7879_s15 = inlined_call_operand.vmem [shape: f32[2,7], index: 15, kind: input, shape index: {}]   ;;  %s7880_s16 = inlined_call_operand.vmem [shape: f32[2,32,64], index: 16, kind: output, shape index: {}, may-alias: {0,16}]  }
   0x1   :  { %7882 = sst [smem:[#allocation6_spill]] %s7864_s0 }
   0x2   :  { %21 = vsyncpa [#allocation4], 0  ;;  %s58_s23 = sshll.u32 %s7879_s15, 4  ;;  %s59_s23 = int_to_ptr.vmem [resolvable:$true] %s58_s23 }
   0x3   :  { %s6272_s24 = scalar_lea.vmem %s59_s23, 32  ;;  %p6277_p1 = scmp.lt.s32.totalorder %s59_s23, %s59_s23 }
   0x4   :  { %p6273_p0 = scmp.ne.s32.totalorder %s59_s23, %s6272_s24  ;;  %p6278_p2 = scmp.lt.s32.totalorder %s6272_s24, %s6272_s24 }
   0x6   :  { %p6279_p3 = por %p6278_p2, %p6277_p1 }
   0x8   :  { %p6280_p4 = pnand %p6279_p3, %p6273_p0 }
   0xa   :  { %6283 = shalt.err (!%p6280_p4)
}
   0xb   :  { %s6286_s25 = smov [#allocation3]  }
   0xc   :  { %61 = dma.vmem_to_smem %s59_s23, 32, %s6286_s25, [#allocation4]  }
   0xd   :  { %6284 = dma.done.wait [#allocation4], 32  }
   0xe   :  { %6285 = vsyncadd [#allocation4], 4294967264 }
   0xf   :  { %65 = sfence }
  0x10   :  { %v6186_v0 = vld [vmem:[%s7865_s1] sm:$0xff]   ;;  %v6187_v1 = vld [vmem:[%s7865_s1 + $0x8] sm:$0xff]   ;;  %v6188_v2 = vld [vmem:[%s7865_s1 + $0x10] sm:$0xff]   ;;  %s7883_s18 = sld [smem:[#allocation6_spill]]  ;;  %vm111_vm0 = vcmask 523264   ;;  %vm300_vm1 = vcmask 58368  }
  0x11   :  { %5663 = vmatprep.subr.bf16.mxu0 %v6186_v0  ;;  %v6189_v6 = vld [vmem:[%s7865_s1 + $0x18] sm:$0xff]   ;;  %v6287_v16 = vmov 0.0   ;;  %v5239_v17 = vld [vmem:[%s7869_s5 + $0x4] sm:$0xf]  ;;  %vm361_vm2 = vcmask 1043456   ;;  %vm313_vm3 = vcmask 64512  }
  0x12   :  { %5664 = vmatpush3.bf16.msra.mxu0 %v6186_v0  ;;  %301 = vst.msk [vmem:[#allocation2] sm:$0x3] %vm300_vm1, %v6287_v16  ;;  %303 = vst.msk [vmem:[#allocation2 + $0x22] sm:$0x3] %vm300_vm1, %v6287_v16  ;;  %6140 = vmatprep.subr.msk.bf16.mxu1 %vm361_vm2, %v5239_v17  ;;  %v363_v18 = vsel %vm361_vm2, %v5239_v17, 0  ;;  %s6289_s29 = smov 112  }
  0x13   :  { %5665 = vmatprep.subr.bf16.mxu0 %v6187_v1  ;;  %302 = vst.msk [vmem:[#allocation2 + $0x28] sm:$0x3] %vm300_vm1, %v6287_v16  ;;  %304 = vst.msk [vmem:[#allocation2 + $0x4a] sm:$0x3] %vm300_vm1, %v6287_v16  ;;  %5970 = vmatpush3.bf16.msra.mxu1 %v363_v18  ;;  %v6440_v19 = vld [vmem:[%s7869_s5] sm:$0xf] }
  0x14   :  { %6141 = vmatprep.subr.msk.bf16.mxu1 %vm361_vm2, %v6440_v19  ;;  %v5238_v20 = vld [vmem:[%s7866_s2] ss:$0 sm:$0xff]  ;;  %s6290_s15 = smov 104   ;;  %s6291_s1 = smov 96   ;;  %vm4295_vm4 = vcmask 1041409   ;;  %vm4300_vm5 = vcmask 1043459  }
  0x15   :  { %s6292_s30 = smov 88   ;;  %s6293_s0 = smov 80   ;;  %vm4303_vm6 = vcmask 1041408   ;;  %vm4971_vm7 = vcmask 154712   ;;  %vm4978_vm8 = vcmask 220312   ;;  %vm4985_vm9 = vcmask 285912  }
  0x16   :  { %v67_v3 = vld [vmem:[%s7883_s18] sm:$0xff]  ;;  %v68_v4 = vld [vmem:[%s7883_s18 + $0x8] sm:$0xff]  ;;  %5666 = vmatpush3.bf16.msra.mxu0 %v6187_v1  ;;  %v69_v7 = vld [vmem:[%s7883_s18 + $0x10] sm:$0xff]  ;;  %s6294_s17 = smov 72   ;;  %s7733_s28 = sld [smem:[#allocation3 + $0x1]]  ;;  %vm5008_vm10 = vcmask 23552  }
  0x17   :  { %v75_v5 = vpack.c.bf16 %v68_v4, %v67_v3  ;;  %5667 = vmatprep.subr.bf16.mxu0 %v6188_v2  ;;  %v70_v8 = vld [vmem:[%s7883_s18 + $0x18] sm:$0xff]  ;;  %v71_v9 = vld [vmem:[%s7883_s18 + $0x20] sm:$0xff]  ;;  %v72_v10 = vld [vmem:[%s7883_s18 + $0x28] sm:$0xff]  ;;  %vm5010_vm11 = vcmask 285696   ;;  %s6297_s19 = smov 126   ;;  %s6300_s20 = smov 125  }
  0x18   :  { %v76_v11 = vpack.c.bf16 %v70_v8, %v69_v7  ;;  %v77_v12 = vpack.c.bf16 %v72_v10, %v71_v9  ;;  %v73_v13 = vld [vmem:[%s7883_s18 + $0x30] sm:$0xff]  ;;  %v74_v14 = vld [vmem:[%s7883_s18 + $0x38] sm:$0xff]  ;;  %s6301_s21 = smov 124   ;;  %s6302_s22 = smov 122  }
  0x19   :  { %5671 = vmatprep.mubr.msk.bf16.mxu0 %vm111_vm0, %v75_v5  ;;  %v78_v15 = vpack.c.bf16 %v74_v14, %v73_v13 }
  0x1a   :  { %5668 = vmatpush3.bf16.msra.mxu0 %v6188_v2 }
  0x1b   :  { %5669 = vmatprep.subr.bf16.mxu0 %v6189_v6 }
  0x1e   :  { %5670 = vmatpush3.bf16.msra.mxu0 %v6189_v6 }
  0x1f   :  { %6139 = vmatprep.subr.msk.bf16.mxu0 %vm361_vm2, %v5239_v17 }
  0x21   :  { %5672 = vmatmul.mubr.msk.bf16.vlgmr.msra.gmra.mrb[0].mxu0 %vm111_vm0, %v76_v11 }
  0x22   :  { %5675 = vmatprep.mubr.msk.bf16.mxu0 %vm111_vm0, %v77_v12  ;;  %5680 = vmatpush3.bf16.msra.mxu0 %v363_v18 }
  0x29   :  { %5676 = vmatmul.mubr.msk.bf16.gmra.mrb[4].mxu0 %vm111_vm0, %v78_v15 }
  0xf4   :  { %v5673_v21 = vpop.f32.mrb[0].mxu0 }
  0xf5   :  { %v198_v22 = vadd.f32 %v5673_v21, %v5238_v20  ;;  %v158_v23 = vpop.f32.mrb[1].mxu0 }
  0xf6   :  { %v196_v24 = vadd.f32 %v5238_v20, %v158_v23  ;;  %v5674_v25 = vpop.f32.mrb[2].mxu0 }
  0xf7   :  { %v199_v26 = vadd.f32 %v5674_v25, %v5238_v20  ;;  %v161_v27 = vpop.f32.mrb[3].mxu0  ;;  %v6447_v28 = vmax.f32 %v198_v22, 0.0 }
  0xf8   :  { %v6449_v29 = vmax.f32 %v196_v24, 0.0  ;;  %v197_v30 = vadd.f32 %v5238_v20, %v161_v27 }
  0xf9   :  { %v6453_v32 = vmax.f32 %v199_v26, 0.0  ;;  %v238_v34 = vmul.f32 %v6447_v28, %v6447_v28  ;;  %v217_v39 = vsel %vm111_vm0, %v6447_v28, 0.0 }
  0xfa   :  { %v236_v31 = vmul.f32 %v6449_v29, %v6449_v29  ;;  %v6455_v33 = vmax.f32 %v197_v30, 0.0  ;;  %v214_v35 = vsel %vm111_vm0, %v6449_v29, 0.0 }
  0xfb   :  { %v239_v44 = vmul.f32 %v6453_v32, %v6453_v32  ;;  %v247_v52 = vsel %vm111_vm0, %v238_v34, 0.0  ;;  %v219_v53 = vsel %vm111_vm0, %v6453_v32, 0.0 }
  0xfc   :  { %v215_v36 = vsel %vm111_vm0, %v6455_v33, 0.0  ;;  %v237_v37 = vmul.f32 %v6455_v33, %v6455_v33  ;;  %v5677_v38 = vpop.f32.mrb[4].mxu0  ;;  %v244_v43 = vsel %vm111_vm0, %v236_v31, 0.0 }
  0xfd   :  { %v216_v40 = vadd.f32 %v215_v36, %v214_v35  ;;  %v202_v41 = vadd.f32 %v5677_v38, %v5238_v20  ;;  %v174_v42 = vpop.f32.mrb[5].mxu0  ;;  %v249_v59 = vsel %vm111_vm0, %v239_v44, 0.0  ;;  %v212_v44 = vld [vmem:[%s7867_s3] sm:$0x1]  ;;  %s6288_s3 = smov 120  }
  0xfe   :  { %v245_v45 = vsel %vm111_vm0, %v237_v37, 0.0  ;;  %v200_v46 = vadd.f32 %v5238_v20, %v174_v42  ;;  %v5678_v47 = vpop.f32.mrb[6].mxu0  ;;  %v274_v42 = vlaneseq }
  0xff   :  { %v218_v48 = vadd.f32 %v217_v39, %v216_v40  ;;  %v246_v49 = vadd.f32 %v245_v45, %v244_v43  ;;  %v203_v50 = vadd.f32 %v5678_v47, %v5238_v20  ;;  %v177_v51 = vpop.f32.mrb[7].mxu0  ;;  %v210_v57 = vmax.f32 %v202_v41, 0.0 }
 0x100   :  { %v6474_v54 = vmax.f32 %v200_v46, 0.0  ;;  %v201_v55 = vadd.f32 %v5238_v20, %v177_v51  ;;  %v6489_v43 = vshrl.u32 %v274_v42, 7 }
 0x101   :  { %v248_v56 = vadd.f32 %v247_v52, %v246_v49  ;;  %v220_v58 = vadd.f32 %v219_v53, %v218_v48  ;;  %v211_v1 = vmax.f32 %v203_v50, 0.0  ;;  %v242_v4 = vmul.f32 %v210_v57, %v210_v57  ;;  %v213_v48 = vld [vmem:[%s7868_s4] sm:$0x1] }
 0x102   :  { %v221_v60 = vsel %vm111_vm0, %v6474_v54, 0.0  ;;  %v240_v61 = vmul.f32 %v6474_v54, %v6474_v54  ;;  %v209_v62 = vmax.f32 %v201_v55, 0.0  ;;  %v225_v8 = vsel %vm111_vm0, %v210_v57, 0.0 }
 0x103   :  { %v222_v63 = vadd.f32 %v221_v60, %v220_v58  ;;  %v250_v0 = vadd.f32 %v249_v59, %v248_v56  ;;  %v243_v9 = vmul.f32 %v211_v1, %v211_v1  ;;  %v227_v12 = vsel %vm111_vm0, %v211_v1, 0.0 }
 0x104   :  { %v251_v2 = vsel %vm111_vm0, %v240_v61, 0.0  ;;  %v223_v3 = vsel %vm111_vm0, %v209_v62, 0.0  ;;  %v241_v7 = vmul.f32 %v209_v62, %v209_v62  ;;  %v255_v14 = vsel %vm111_vm0, %v242_v4, 0.0 }
 0x105   :  { %v252_v5 = vadd.f32 %v251_v2, %v250_v0  ;;  %v224_v6 = vadd.f32 %v223_v3, %v222_v63  ;;  %v257_v17 = vsel %vm111_vm0, %v243_v9, 0.0  ;;  %v6495_v45 = vsub.s32 0, %v6489_v43 }
 0x106   :  { %v253_v11 = vsel %vm111_vm0, %v241_v7, 0.0 }
 0x107   :  { %v226_v10 = vadd.f32 %v225_v8, %v224_v6  ;;  %v254_v13 = vadd.f32 %v253_v11, %v252_v5 }
 0x109   :  { %v228_v15 = vadd.f32 %v227_v12, %v226_v10  ;;  %v256_v16 = vadd.f32 %v255_v14, %v254_v13  ;;  %v443_v14 = vsel %vm361_vm2, %v6440_v19, 0 }
 0x10b   :  { %v229_v18 = vrot.slane %v228_v15, 4  ;;  %v258_v20 = vadd.f32 %v257_v17, %v256_v16  ;;  %v5248_v17 = vld [vmem:[%s7869_s5 + $0x8] sm:$0xf] }
 0x10d   :  { %v230_v21 = vadd.f32 %v229_v18, %v228_v15  ;;  %v259_v22 = vrot.slane %v258_v20, 4 }
 0x10f   :  { %v231_v23 = vrot.slane %v230_v21, 2  ;;  %v260_v24 = vadd.f32 %v259_v22, %v258_v20 }
 0x111   :  { %v232_v25 = vadd.f32 %v231_v23, %v230_v21  ;;  %v261_v26 = vrot.slane %v260_v24, 2  ;;  %v537_v23 = vsel %vm361_vm2, %v5248_v17, 0 }
 0x113   :  { %v233_v27 = vrot.slane %v232_v25, 1  ;;  %v262_v30 = vadd.f32 %v261_v26, %v260_v24 }
 0x115   :  { %v234_v31 = vadd.f32 %v233_v27, %v232_v25  ;;  %v263_v34 = vrot.slane %v262_v30, 1 }
 0x117   :  { %v235_v35 = vmul.f32 0.015625, %v234_v31  ;;  %v264_v36 = vadd.f32 %v263_v34, %v262_v30 }
 0x119   :  { %v266_v37 = vmul.f32 %v235_v35, %v235_v35  ;;  %v265_v38 = vmul.f32 0.015625, %v264_v36 }
 0x11b   :  { %v267_v39 = vsub.f32 %v265_v38, %v266_v37 }
 0x11d   :  { %v268_v40 = vmax.f32 %v267_v39, 0.0 }
 0x11f   :  { %v269_v41 = vadd.f32 1e-05, %v268_v40 }
 0x121   :  { %6246 = vrsqrt.f32 %v269_v41 }
 0x12b   :  { %v6247_v46 = vpop.eup %6246 }
 0x12c   :  { %v271_v47 = vmul.f32 %v6247_v46, %v212_v44 }
 0x12e   :  { %v272_v49 = vmul.f32 %v271_v47, %v235_v35  ;;  %v277_v50 = vrot.slane %v271_v47, %v6495_v45 }
 0x130   :  { %v273_v51 = vsub.f32 %v213_v48, %v272_v49  ;;  %v283_v52 = vmul.f32 %v277_v50, %v209_v62  ;;  %v284_v53 = vmul.f32 %v277_v50, %v210_v57  ;;  %v285_v55 = vmul.f32 %v277_v50, %v211_v1 }
 0x131   :  { %v280_v56 = vmul.f32 %v277_v50, %v6447_v28  ;;  %v278_v58 = vmul.f32 %v277_v50, %v6449_v29  ;;  %v281_v59 = vmul.f32 %v277_v50, %v6453_v32  ;;  %v279_v60 = vmul.f32 %v277_v50, %v6455_v33 }
 0x132   :  { %v290_v61 = vrot.slane %v273_v51, %v6495_v45  ;;  %v282_v63 = vmul.f32 %v277_v50, %v6474_v54  ;;  %v5255_v51 = vld [vmem:[%s7869_s5 + $0x10] sm:$0xf] }
 0x133   :  { %6143 = vmatprep.subr.msk.bf16.mxu0 %vm361_vm2, %v5255_v51 }
 0x134   :  { %v6507_v0 = vadd.f32 %v290_v61, %v283_v52  ;;  %v6509_v2 = vadd.f32 %v290_v61, %v284_v53  ;;  %v6511_v62 = vadd.f32 %v290_v61, %v285_v55  ;;  %v6513_v57 = vadd.f32 %v290_v61, %v280_v56  ;;  %v6630_v53 = vld [vmem:[%s7869_s5 + $0xc] sm:$0xf] }
 0x135   :  { %v6515_v28 = vadd.f32 %v290_v61, %v278_v58  ;;  %v6517_v29 = vadd.f32 %v290_v61, %v281_v59  ;;  %v6519_v32 = vadd.f32 %v290_v61, %v279_v60  ;;  %v6521_v33 = vadd.f32 %v290_v61, %v282_v63  ;;  %v5253_v61 = vld [vmem:[%s7870_s6] ss:$0 sm:$0xff] }
 0x136   :  { %739 = vrot.lane.b32.xlu1 %v6513_v57, %s6288_s3  ;;  %316 = vst.msk [vmem:[#allocation2 + $0x12] sm:$0xff] %vm313_vm3, %v6513_v57  ;;  %319 = vst.msk [vmem:[#allocation2 + $0x32] sm:$0xff] %vm313_vm3, %v6507_v0  ;;  %v4026_v49 = vpack.c.bf16 %v6511_v62, %v6509_v2  ;;  %v816_v52 = vsel %vm361_vm2, %v5255_v51, 0 }
 0x137   :  { %320 = vst.msk [vmem:[#allocation2 + $0x3a] sm:$0xff] %vm313_vm3, %v6509_v2  ;;  %321 = vst.msk [vmem:[#allocation2 + $0x42] sm:$0xff] %vm313_vm3, %v6511_v62  ;;  %735 = vrot.lane.b32.xlu0 %v6515_v28, %s6288_s3  ;;  %v4024_v47 = vpack.c.bf16 %v6517_v29, %v6513_v57  ;;  %v4023_v48 = vpack.c.bf16 %v6519_v32, %v6515_v28  ;;  %v4025_v50 = vpack.c.bf16 %v6507_v0, %v6521_v33 }
 0x138   :  { %314 = vst.msk [vmem:[#allocation2 + $0x2] sm:$0xff] %vm313_vm3, %v6515_v28  ;;  %315 = vst.msk [vmem:[#allocation2 + $0xa] sm:$0xff] %vm313_vm3, %v6519_v32 }
 0x139   :  { %317 = vst.msk [vmem:[#allocation2 + $0x1a] sm:$0xff] %vm313_vm3, %v6517_v29  ;;  %318 = vst.msk [vmem:[#allocation2 + $0x2a] sm:$0xff] %vm313_vm3, %v6521_v33 }
 0x13a   :  { %741 = vrot.lane.b32.xlu1 %v6517_v29, %s6288_s3 }
 0x13b   :  { %737 = vrot.lane.b32.xlu0 %v6519_v32, %s6288_s3 }
 0x13d   :  { %v340_v54 = vld [vmem:[#allocation2 + $0x32] sm:$0xff] }
 0x13e   :  { %v337_v1 = vld [vmem:[#allocation2 + $0x12] sm:$0xff]  ;;  %v341_v3 = vld [vmem:[#allocation2 + $0x3a] sm:$0xff]  ;;  %745 = vrot.lane.b32.xlu1 %v6507_v0, %s6288_s3  ;;  %v342_v10 = vld [vmem:[#allocation2 + $0x42] sm:$0xff] }
 0x13f   :  { %v335_v4 = vld [vmem:[#allocation2 + $0x2] sm:$0xff]  ;;  %v336_v5 = vld [vmem:[#allocation2 + $0xa] sm:$0xff]  ;;  %743 = vrot.lane.b32.xlu0 %v6521_v33, %s6288_s3  ;;  %v346_v13 = vpack.c.bf16 %v342_v10, %v341_v3  ;;  %v328_v25 = vld [vmem:[#allocation2 + $0x38] sm:$0xff] }
 0x140   :  { %v339_v6 = vld [vmem:[#allocation2 + $0x2a] sm:$0xff]  ;;  %v343_v7 = vpack.c.bf16 %v336_v5, %v335_v4  ;;  %v338_v9 = vld [vmem:[#allocation2 + $0x1a] sm:$0xff] }
 0x141   :  { %v345_v8 = vpack.c.bf16 %v340_v54, %v339_v6  ;;  %v322_v11 = vld [vmem:[#allocation2] sm:$0xff]  ;;  %v344_v12 = vpack.c.bf16 %v338_v9, %v337_v1  ;;  %v323_v15 = vld [vmem:[#allocation2 + $0x8] sm:$0xff]  ;;  %v324_v19 = vld [vmem:[#allocation2 + $0x10] sm:$0xff] }
 0x142   :  { %5681 = vmatprep.mubr.msk.bf16.mxu0 %vm313_vm3, %v343_v7  ;;  %v330_v16 = vpack.c.bf16 %v323_v15, %v322_v11  ;;  %749 = vrot.lane.b32.xlu1 %v6511_v62, %s6288_s3  ;;  %v325_v18 = vld [vmem:[#allocation2 + $0x18] sm:$0xff]  ;;  %v326_v20 = vld [vmem:[#allocation2 + $0x28] sm:$0xff]  ;;  %v327_v21 = vld [vmem:[#allocation2 + $0x30] sm:$0xff] }
 0x143   :  { %5685 = vmatprep.mubr.msk.bf16.mxu1 %vm313_vm3, %v345_v8  ;;  %5682 = vmatmul.mubr.msk.bf16.vlgmr.msra.gmra.mrb[8].mxu0 %vm313_vm3, %v344_v12  ;;  %v331_v22 = vpack.c.bf16 %v325_v18, %v324_v19  ;;  %v332_v24 = vpack.c.bf16 %v327_v21, %v326_v20  ;;  %v329_v26 = vld [vmem:[#allocation2 + $0x40] sm:$0xff]  ;;  %v511_v30 = vld [vmem:[#allocation2 + $0xc] sm:$0xff]  ;;  %v512_v35 = vld [vmem:[#allocation2 + $0x14] sm:$0xff] }
 0x144   :  { %5686 = vmatmul.mubr.msk.bf16.vlgmr.msra.gmra.mrb[0].mxu1 %vm313_vm3, %v346_v13  ;;  %747 = vrot.lane.b32.xlu0 %v6509_v2, %s6288_s3  ;;  %v510_v27 = vld [vmem:[#allocation2 + $0x4] sm:$0xff]  ;;  %v333_v31 = vpack.c.bf16 %v329_v26, %v328_v25  ;;  %v513_v36 = vld [vmem:[#allocation2 + $0x1c] sm:$0xff]  ;;  %v514_v37 = vld [vmem:[#allocation2 + $0x2c] sm:$0xff] }
 0x145   :  { %5690 = vmatpush3.bf16.msra.mxu1 %v443_v14  ;;  %5691 = vmatprep.mubr.msk.bf16.mxu1 %vm313_vm3, %v330_v16  ;;  %v518_v34 = vpack.c.bf16 %v511_v30, %v510_v27  ;;  %v515_v38 = vld [vmem:[#allocation2 + $0x34] sm:$0xff]  ;;  %v519_v39 = vpack.c.bf16 %v513_v36, %v512_v35  ;;  %v516_v41 = vld [vmem:[#allocation2 + $0x3c] sm:$0xff]  ;;  %v517_v44 = vld [vmem:[#allocation2 + $0x44] sm:$0xff] }
 0x146   :  { %6142 = vmatprep.subr.msk.bf16.mxu1 %vm361_vm2, %v5248_v17  ;;  %1345 = vrot.lane.b32.xlu1 %v6519_v32, %s6289_s29  ;;  %v520_v40 = vpack.c.bf16 %v515_v38, %v514_v37  ;;  %v521_v46 = vpack.c.bf16 %v517_v44, %v516_v41 }
 0x147   :  { %5710 = vmatpush3.bf16.msra.mxu0 %v816_v52 }
 0x148   :  { %1343 = vrot.lane.b32.xlu0 %v6515_v28, %s6289_s29  ;;  %6144 = vmatprep.subr.msk.bf16.mxu0 %vm361_vm2, %v6630_v53 }
 0x14a   :  { %1349 = vrot.lane.b32.xlu1 %v6517_v29, %s6289_s29 }
 0x14c   :  { %5692 = vmatmul.mubr.msk.bf16.vlgmr.msra.gmra.mrb[4].mxu1 %vm313_vm3, %v331_v22  ;;  %1347 = vrot.lane.b32.xlu0 %v6513_v57, %s6289_s29 }
 0x14d   :  { %5700 = vmatpush3.bf16.msra.mxu1 %v537_v23  ;;  %5695 = vmatprep.mubr.msk.bf16.mxu1 %vm313_vm3, %v332_v24 }
 0x14e   :  { %1353 = vrot.lane.b32.xlu1 %v6507_v0, %s6289_s29 }
 0x150   :  { %1351 = vrot.lane.b32.xlu0 %v6521_v33, %s6289_s29 }
 0x152   :  { %1357 = vrot.lane.b32.xlu1 %v6511_v62, %s6289_s29 }
 0x154   :  { %5696 = vmatmul.mubr.msk.bf16.gmra.mrb[0].mxu1 %vm313_vm3, %v333_v31  ;;  %1355 = vrot.lane.b32.xlu0 %v6509_v2, %s6289_s29  ;;  %s7742_s29 = sld [smem:[#allocation3]] }
 0x155   :  { %5701 = vmatprep.mubr.msk.bf16.mxu1 %vm313_vm3, %v518_v34 }
 0x156   :  { %1881 = vrot.lane.b32.xlu1 %v6519_v32, %s6290_s15 }
 0x158   :  { %1879 = vrot.lane.b32.xlu0 %v6515_v28, %s6290_s15 }
 0x15a   :  { %1885 = vrot.lane.b32.xlu1 %v6517_v29, %s6290_s15 }
 0x15c   :  { %5702 = vmatmul.mubr.msk.bf16.vlgmr.msra.gmra.mrb[4].mxu1 %vm313_vm3, %v519_v39  ;;  %1883 = vrot.lane.b32.xlu0 %v6513_v57, %s6290_s15 }
 0x15d   :  { %5705 = vmatprep.mubr.msk.bf16.mxu1 %vm313_vm3, %v520_v40 }
 0x15e   :  { %1889 = vrot.lane.b32.xlu1 %v6507_v0, %s6290_s15 }
 0x160   :  { %1887 = vrot.lane.b32.xlu0 %v6521_v33, %s6290_s15 }
 0x162   :  { %1893 = vrot.lane.b32.xlu1 %v6511_v62, %s6290_s15 }
 0x164   :  { %5706 = vmatmul.mubr.msk.bf16.gmra.mrb[0].mxu1 %vm313_vm3, %v521_v46  ;;  %1891 = vrot.lane.b32.xlu0 %v6509_v2, %s6290_s15  ;;  %s7744_s15 = sld [smem:[#allocation3 + $0x80]] }
 0x166   :  { %2417 = vrot.lane.b32.xlu1 %v6519_v32, %s6291_s1 }
 0x168   :  { %2415 = vrot.lane.b32.xlu0 %v6515_v28, %s6291_s1 }
 0x16a   :  { %2421 = vrot.lane.b32.xlu1 %v6517_v29, %s6291_s1 }
 0x16c   :  { %2419 = vrot.lane.b32.xlu0 %v6513_v57, %s6291_s1 }
 0x16e   :  { %2425 = vrot.lane.b32.xlu1 %v6507_v0, %s6291_s1 }
 0x170   :  { %2423 = vrot.lane.b32.xlu0 %v6521_v33, %s6291_s1 }
 0x172   :  { %2429 = vrot.lane.b32.xlu1 %v6511_v62, %s6291_s1 }
 0x174   :  { %2427 = vrot.lane.b32.xlu0 %v6509_v2, %s6291_s1  ;;  %s7755_s1 = sld [smem:[#allocation3 + $0x3]] }
 0x176   :  { %2953 = vrot.lane.b32.xlu1 %v6519_v32, %s6292_s30 }
 0x178   :  { %2951 = vrot.lane.b32.xlu0 %v6515_v28, %s6292_s30 }
 0x17a   :  { %2957 = vrot.lane.b32.xlu1 %v6517_v29, %s6292_s30 }
 0x17c   :  { %2955 = vrot.lane.b32.xlu0 %v6513_v57, %s6292_s30 }
 0x17e   :  { %2961 = vrot.lane.b32.xlu1 %v6507_v0, %s6292_s30 }
 0x180   :  { %2959 = vrot.lane.b32.xlu0 %v6521_v33, %s6292_s30 }
 0x182   :  { %2965 = vrot.lane.b32.xlu1 %v6511_v62, %s6292_s30 }
 0x184   :  { %2963 = vrot.lane.b32.xlu0 %v6509_v2, %s6292_s30  ;;  %s7762_s30 = sld [smem:[#allocation3 + $0x84]] }
 0x186   :  { %3489 = vrot.lane.b32.xlu1 %v6519_v32, %s6293_s0 }
 0x188   :  { %3487 = vrot.lane.b32.xlu0 %v6515_v28, %s6293_s0 }
 0x18a   :  { %3493 = vrot.lane.b32.xlu1 %v6517_v29, %s6293_s0 }
 0x18c   :  { %3491 = vrot.lane.b32.xlu0 %v6513_v57, %s6293_s0 }
 0x18e   :  { %3497 = vrot.lane.b32.xlu1 %v6507_v0, %s6293_s0 }
 0x190   :  { %3495 = vrot.lane.b32.xlu0 %v6521_v33, %s6293_s0 }
 0x192   :  { %3501 = vrot.lane.b32.xlu1 %v6511_v62, %s6293_s0 }
 0x194   :  { %3499 = vrot.lane.b32.xlu0 %v6509_v2, %s6293_s0  ;;  %s7780_s0 = sld [smem:[#allocation3 + $0x86]] }
 0x196   :  { %4033 = vrot.lane.b32.xlu1 %v4024_v47, %s6294_s17 }
 0x198   :  { %4031 = vrot.lane.b32.xlu0 %v4023_v48, %s6294_s17 }
 0x19a   :  { %4037 = vrot.lane.b32.xlu1 %v4026_v49, %s6294_s17 }
 0x19c   :  { %4035 = vrot.lane.b32.xlu0 %v4025_v50, %s6294_s17  ;;  %s7782_s17 = sld [smem:[#allocation3 + $0x6]] }
 0x216   :  { %v5683_v55 = vpop.f32.mrb[8].mxu0 }
 0x217   :  { %v399_v56 = vpop.f32.mrb[9].mxu0 }
 0x218   :  { %v5684_v58 = vpop.f32.mrb[10].mxu0 }
 0x219   :  { %v402_v59 = vpop.f32.mrb[11].mxu0 }
 0x22f   :  { %v5703_v60 = vpop.f32.mrb[4].mxu1 }
 0x230   :  { %v5971_v63 = vadd.f32 %v5703_v60, %v5683_v55  ;;  %v573_v0 = vpop.f32.mrb[5].mxu1 }
 0x231   :  { %v5972_v2 = vadd.f32 %v573_v0, %v399_v56  ;;  %v5704_v62 = vpop.f32.mrb[6].mxu1 }
 0x232   :  { %v621_v57 = vadd.f32 %v5971_v63, %v5253_v61  ;;  %v5973_v28 = vadd.f32 %v5704_v62, %v5684_v58  ;;  %v576_v29 = vpop.f32.mrb[7].mxu1 }
 0x233   :  { %v619_v32 = vadd.f32 %v5972_v2, %v5253_v61  ;;  %v5974_v33 = vadd.f32 %v576_v29, %v402_v59 }
 0x234   :  { %v6637_v54 = vmax.f32 %v621_v57, 0.0  ;;  %v622_v1 = vadd.f32 %v5973_v28, %v5253_v61 }
 0x235   :  { %v6639_v3 = vmax.f32 %v619_v32, 0.0  ;;  %v620_v4 = vadd.f32 %v5974_v33, %v5253_v61 }
 0x236   :  { %v6641_v5 = vmax.f32 %v622_v1, 0.0  ;;  %v661_v9 = vmul.f32 %v6637_v54, %v6637_v54  ;;  %v640_v17 = vsel %vm313_vm3, %v6637_v54, 0.0 }
 0x237   :  { %v659_v6 = vmul.f32 %v6639_v3, %v6639_v3  ;;  %v6645_v7 = vmax.f32 %v620_v4, 0.0  ;;  %v5707_v8 = vpop.f32.mrb[0].mxu1  ;;  %v637_v10 = vsel %vm313_vm3, %v6639_v3, 0.0 }
 0x238   :  { %v589_v11 = vpop.f32.mrb[1].mxu1  ;;  %v625_v14 = vadd.f32 %v5707_v8, %v5253_v61  ;;  %v662_v18 = vmul.f32 %v6641_v5, %v6641_v5  ;;  %v670_v26 = vsel %vm313_vm3, %v661_v9, 0.0  ;;  %v642_v31 = vsel %vm313_vm3, %v6641_v5, 0.0 }
 0x239   :  { %v638_v12 = vsel %vm313_vm3, %v6645_v7, 0.0  ;;  %v660_v13 = vmul.f32 %v6645_v7, %v6645_v7  ;;  %v623_v15 = vadd.f32 %v5253_v61, %v589_v11  ;;  %v5708_v16 = vpop.f32.mrb[2].mxu1  ;;  %v667_v19 = vsel %vm313_vm3, %v659_v6, 0.0 }
 0x23a   :  { %v639_v20 = vadd.f32 %v638_v12, %v637_v10  ;;  %v592_v21 = vpop.f32.mrb[3].mxu1  ;;  %v626_v24 = vadd.f32 %v5708_v16, %v5253_v61  ;;  %v6666_v34 = vmax.f32 %v625_v14, 0.0  ;;  %v672_v39 = vsel %vm313_vm3, %v662_v18, 0.0  ;;  %v740_v18 = vpop.permute.xlu1 %739 }
 0x23b   :  { %v668_v22 = vsel %vm313_vm3, %v660_v13, 0.0  ;;  %v6661_v23 = vmax.f32 %v623_v15, 0.0  ;;  %v624_v25 = vadd.f32 %v5253_v61, %v592_v21  ;;  %v635_v21 = vld [vmem:[%s7871_s7] sm:$0x1] }
 0x23c   :  { %v669_v27 = vadd.f32 %v668_v22, %v667_v19  ;;  %v641_v30 = vadd.f32 %v640_v17, %v639_v20  ;;  %v634_v41 = vmax.f32 %v626_v24, 0.0  ;;  %v665_v48 = vmul.f32 %v6666_v34, %v6666_v34  ;;  %v736_v20 = vpop.permute.xlu0 %735 }
 0x23d   :  { %v663_v35 = vmul.f32 %v6661_v23, %v6661_v23  ;;  %v632_v36 = vmax.f32 %v624_v25, 0.0  ;;  %v644_v40 = vsel %vm313_vm3, %v6661_v23, 0.0  ;;  %v648_v55 = vsel %vm313_vm3, %v6666_v34, 0.0 }
 0x23e   :  { %v643_v37 = vadd.f32 %v642_v31, %v641_v30  ;;  %v671_v38 = vadd.f32 %v670_v26, %v669_v27  ;;  %v666_v56 = vmul.f32 %v634_v41, %v634_v41  ;;  %v678_v61 = vsel %vm313_vm3, %v665_v48, 0.0  ;;  %v742_v22 = vpop.permute.xlu1 %741  ;;  %v636_v27 = vld [vmem:[%s7872_s8] sm:$0x1] }
 0x23f   :  { %v664_v47 = vmul.f32 %v632_v36, %v632_v36  ;;  %v674_v49 = vsel %vm313_vm3, %v663_v35, 0.0  ;;  %v646_v50 = vsel %vm313_vm3, %v632_v36, 0.0  ;;  %v650_v63 = vsel %vm313_vm3, %v634_v41, 0.0 }
 0x240   :  { %v645_v44 = vadd.f32 %v644_v40, %v643_v37  ;;  %v673_v46 = vadd.f32 %v672_v39, %v671_v38  ;;  %v680_v62 = vsel %vm313_vm3, %v666_v56, 0.0  ;;  %v738_v24 = vpop.permute.xlu0 %737 }
 0x241   :  { %v676_v58 = vsel %vm313_vm3, %v664_v47, 0.0 }
 0x242   :  { %v675_v51 = vadd.f32 %v674_v49, %v673_v46  ;;  %v647_v52 = vadd.f32 %v646_v50, %v645_v44  ;;  %v746_v35 = vpop.permute.xlu1 %745 }
 0x244   :  { %v649_v59 = vadd.f32 %v648_v55, %v647_v52  ;;  %v677_v60 = vadd.f32 %v676_v58, %v675_v51  ;;  %v744_v37 = vpop.permute.xlu0 %743 }
 0x246   :  { %v651_v0 = vadd.f32 %v650_v63, %v649_v59  ;;  %v679_v2 = vadd.f32 %v678_v61, %v677_v60 }
 0x248   :  { %v652_v57 = vrot.slane %v651_v0, 4  ;;  %v681_v28 = vadd.f32 %v680_v62, %v679_v2 }
 0x24a   :  { %v653_v29 = vadd.f32 %v652_v57, %v651_v0  ;;  %v682_v32 = vrot.slane %v681_v28, 4 }
 0x24c   :  { %v654_v33 = vrot.slane %v653_v29, 2  ;;  %v683_v1 = vadd.f32 %v682_v32, %v681_v28 }
 0x24e   :  { %v655_v4 = vadd.f32 %v654_v33, %v653_v29  ;;  %v684_v6 = vrot.slane %v683_v1, 2 }
 0x250   :  { %v656_v8 = vrot.slane %v655_v4, 1  ;;  %v685_v9 = vadd.f32 %v684_v6, %v683_v1 }
 0x252   :  { %v657_v10 = vadd.f32 %v656_v8, %v655_v4  ;;  %v686_v11 = vrot.slane %v685_v9, 1 }
 0x254   :  { %v658_v12 = vmul.f32 0.015625, %v657_v10  ;;  %v687_v13 = vadd.f32 %v686_v11, %v685_v9  ;;  %v896_v11 = vsel %vm361_vm2, %v6630_v53, 0 }
 0x256   :  { %v688_v14 = vmul.f32 0.015625, %v687_v13  ;;  %v689_v15 = vmul.f32 %v658_v12, %v658_v12  ;;  %v5264_v13 = vld [vmem:[%s7869_s5 + $0x14] sm:$0xf] }
 0x258   :  { %v690_v16 = vsub.f32 %v688_v14, %v689_v15 }
 0x25a   :  { %v691_v17 = vmax.f32 %v690_v16, 0.0 }
 0x25c   :  { %v692_v19 = vadd.f32 1e-05, %v691_v17 }
 0x25e   :  { %6248 = vrsqrt.f32 %v692_v19 }
 0x268   :  { %v6249_v25 = vpop.eup %6248 }
 0x269   :  { %v694_v26 = vmul.f32 %v6249_v25, %v635_v21  ;;  %v990_v25 = vsel %vm361_vm2, %v5264_v13, 0 }
 0x26b   :  { %v695_v30 = vmul.f32 %v694_v26, %v658_v12  ;;  %v700_v31 = vrot.slane %v694_v26, %v6495_v45 }
 0x26d   :  { %v696_v38 = vsub.f32 %v636_v27, %v695_v30  ;;  %v701_v39 = vmul.f32 %v700_v31, %v6639_v3  ;;  %v702_v40 = vmul.f32 %v700_v31, %v6645_v7  ;;  %v703_v44 = vmul.f32 %v700_v31, %v6637_v54 }
 0x26e   :  { %v704_v46 = vmul.f32 %v700_v31, %v6641_v5  ;;  %v705_v47 = vmul.f32 %v700_v31, %v6661_v23  ;;  %v706_v48 = vmul.f32 %v700_v31, %v632_v36  ;;  %v707_v49 = vmul.f32 %v700_v31, %v6666_v34  ;;  %v750_v34 = vpop.permute.xlu1 %749  ;;  %v748_v36 = vpop.permute.xlu0 %747 }
 0x26f   :  { %v708_v50 = vmul.f32 %v700_v31, %v634_v41  ;;  %v713_v51 = vrot.slane %v696_v38, %v6495_v45 }
 0x271   :  { %v6697_v52 = vadd.f32 %v713_v51, %v701_v39  ;;  %v6699_v55 = vadd.f32 %v713_v51, %v702_v40  ;;  %v6701_v56 = vadd.f32 %v713_v51, %v703_v44  ;;  %v6703_v3 = vadd.f32 %v713_v51, %v704_v46 }
 0x272   :  { %v6705_v7 = vadd.f32 %v713_v51, %v705_v47  ;;  %v6707_v54 = vadd.f32 %v713_v51, %v706_v48  ;;  %v6709_v5 = vadd.f32 %v713_v51, %v707_v49  ;;  %v6711_v23 = vadd.f32 %v713_v51, %v708_v50 }
 0x273   :  { %v759_v41 = vadd.f32 %v736_v20, %v6697_v52  ;;  %v760_v58 = vadd.f32 %v738_v24, %v6699_v55  ;;  %v761_v59 = vadd.f32 %v740_v18, %v6701_v56  ;;  %v762_v60 = vadd.f32 %v742_v22, %v6703_v3 }
 0x274   :  { %v763_v61 = vadd.f32 %v744_v37, %v6705_v7  ;;  %v764_v63 = vadd.f32 %v746_v35, %v6707_v54  ;;  %v765_v0 = vadd.f32 %v748_v36, %v6709_v5  ;;  %v766_v2 = vadd.f32 %v750_v34, %v6711_v23  ;;  %v5282_v34 = vld [vmem:[%s7869_s5 + $0x1c] sm:$0xf]  ;;  %v306_v36 = vld [vmem:[%s7873_s9 + $0x4] sm:$0xf] }
 0x275   :  { %767 = vst.msk [vmem:[#allocation2 + $0x2] sm:$0xff] %vm313_vm3, %v759_v41  ;;  %768 = vst.msk [vmem:[#allocation2 + $0xa] sm:$0xff] %vm313_vm3, %v760_v58  ;;  %v723_v62 = vpack.c.bf16 %v6699_v55, %v6697_v52  ;;  %v724_v57 = vpack.c.bf16 %v6703_v3, %v6701_v56  ;;  %v725_v28 = vpack.c.bf16 %v6707_v54, %v6705_v7  ;;  %v1424_v41 = vsel %vm361_vm2, %v5282_v34, 0 }
 0x276   :  { %769 = vst.msk [vmem:[#allocation2 + $0x12] sm:$0xff] %vm313_vm3, %v761_v59  ;;  %770 = vst.msk [vmem:[#allocation2 + $0x1a] sm:$0xff] %vm313_vm3, %v762_v60  ;;  %v726_v29 = vpack.c.bf16 %v6711_v23, %v6709_v5  ;;  %6146 = vmatprep.subr.msk.bf16.mxu1 %vm361_vm2, %v306_v36  ;;  %v1196_v58 = vsel %vm361_vm2, %v306_v36, 0  ;;  %v6769_v59 = vld [vmem:[%s7869_s5 + $0x18] sm:$0xf] }
 0x277   :  { %771 = vst.msk [vmem:[#allocation2 + $0x2a] sm:$0xff] %vm313_vm3, %v763_v61  ;;  %772 = vst.msk [vmem:[#allocation2 + $0x32] sm:$0xff] %vm313_vm3, %v764_v63  ;;  %5740 = vmatpush3.bf16.msra.mxu1 %v1196_v58  ;;  %v6776_v60 = vld [vmem:[%s7873_s9] sm:$0xf] }
 0x278   :  { %773 = vst.msk [vmem:[#allocation2 + $0x3a] sm:$0xff] %vm313_vm3, %v765_v0  ;;  %774 = vst.msk [vmem:[#allocation2 + $0x42] sm:$0xff] %vm313_vm3, %v766_v2  ;;  %6147 = vmatprep.subr.msk.bf16.mxu1 %vm361_vm2, %v6776_v60  ;;  %v5270_v61 = vld [vmem:[%s7870_s6 + $0x1] ss:$0 sm:$0xff] }
 0x27c   :  { %v789_v32 = vld [vmem:[#allocation2 + $0x2] sm:$0xff]  ;;  %v790_v33 = vld [vmem:[#allocation2 + $0xa] sm:$0xff] }
 0x27d   :  { %v791_v1 = vld [vmem:[#allocation2 + $0x12] sm:$0xff]  ;;  %v797_v4 = vpack.c.bf16 %v790_v33, %v789_v32  ;;  %v792_v6 = vld [vmem:[#allocation2 + $0x1a] sm:$0xff]  ;;  %v776_v17 = vld [vmem:[#allocation2 + $0x8] sm:$0xff] }
 0x27e   :  { %v793_v8 = vld [vmem:[#allocation2 + $0x2a] sm:$0xff]  ;;  %v794_v9 = vld [vmem:[#allocation2 + $0x32] sm:$0xff]  ;;  %v798_v10 = vpack.c.bf16 %v792_v6, %v791_v1  ;;  %v775_v16 = vld [vmem:[#allocation2] sm:$0xff] }
 0x27f   :  { %5711 = vmatprep.mubr.msk.bf16.mxu0 %vm313_vm3, %v797_v4  ;;  %v799_v12 = vpack.c.bf16 %v794_v9, %v793_v8  ;;  %v795_v14 = vld [vmem:[#allocation2 + $0x3a] sm:$0xff]  ;;  %v796_v15 = vld [vmem:[#allocation2 + $0x42] sm:$0xff]  ;;  %v783_v53 = vpack.c.bf16 %v776_v17, %v775_v16  ;;  %v777_v18 = vld [vmem:[#allocation2 + $0x10] sm:$0xff] }
 0x280   :  { %5712 = vmatmul.mubr.msk.bf16.vlgmr.msra.gmra.mrb[12].mxu0 %vm313_vm3, %v798_v10  ;;  %v800_v19 = vpack.c.bf16 %v796_v15, %v795_v14  ;;  %v778_v20 = vld [vmem:[#allocation2 + $0x18] sm:$0xff]  ;;  %v779_v21 = vld [vmem:[#allocation2 + $0x28] sm:$0xff]  ;;  %v780_v22 = vld [vmem:[#allocation2 + $0x30] sm:$0xff] }
 0x281   :  { %5720 = vmatpush3.bf16.msra.mxu0 %v896_v11  ;;  %5715 = vmatprep.mubr.msk.bf16.mxu0 %vm313_vm3, %v799_v12  ;;  %v784_v24 = vpack.c.bf16 %v778_v20, %v777_v18  ;;  %v785_v26 = vpack.c.bf16 %v780_v22, %v779_v21  ;;  %v781_v27 = vld [vmem:[#allocation2 + $0x38] sm:$0xff]  ;;  %v782_v30 = vld [vmem:[#allocation2 + $0x40] sm:$0xff]  ;;  %v964_v35 = vld [vmem:[#allocation2 + $0xc] sm:$0xff] }
 0x282   :  { %6145 = vmatprep.subr.msk.bf16.mxu0 %vm361_vm2, %v5264_v13  ;;  %v963_v31 = vld [vmem:[#allocation2 + $0x4] sm:$0xff]  ;;  %v786_v37 = vpack.c.bf16 %v782_v30, %v781_v27  ;;  %v965_v39 = vld [vmem:[#allocation2 + $0x14] sm:$0xff]  ;;  %v966_v40 = vld [vmem:[#allocation2 + $0x1c] sm:$0xff] }
 0x283   :  { %v971_v38 = vpack.c.bf16 %v964_v35, %v963_v31  ;;  %v967_v44 = vld [vmem:[#allocation2 + $0x2c] sm:$0xff]  ;;  %v968_v46 = vld [vmem:[#allocation2 + $0x34] sm:$0xff]  ;;  %v972_v47 = vpack.c.bf16 %v966_v40, %v965_v39  ;;  %v969_v49 = vld [vmem:[#allocation2 + $0x3c] sm:$0xff] }
 0x284   :  { %v973_v48 = vpack.c.bf16 %v968_v46, %v967_v44  ;;  %v970_v50 = vld [vmem:[#allocation2 + $0x44] sm:$0xff] }
 0x285   :  { %v974_v51 = vpack.c.bf16 %v970_v50, %v969_v49 }
 0x288   :  { %5716 = vmatmul.mubr.msk.bf16.gmra.mrb[16].mxu0 %vm313_vm3, %v800_v19 }
 0x289   :  { %5721 = vmatprep.mubr.msk.bf16.mxu0 %vm313_vm3, %v783_v53 }
 0x290   :  { %5722 = vmatmul.mubr.msk.bf16.vlgmr.msra.gmra.mrb[12].mxu0 %vm313_vm3, %v784_v24 }
 0x291   :  { %5730 = vmatpush3.bf16.msra.mxu0 %v990_v25  ;;  %5725 = vmatprep.mubr.msk.bf16.mxu0 %vm313_vm3, %v785_v26 }
 0x292   :  { %6148 = vmatprep.subr.msk.bf16.mxu0 %vm361_vm2, %v5282_v34 }
 0x298   :  { %5726 = vmatmul.mubr.msk.bf16.gmra.mrb[16].mxu0 %vm313_vm3, %v786_v37 }
 0x299   :  { %5731 = vmatprep.mubr.msk.bf16.mxu0 %vm313_vm3, %v971_v38 }
 0x2a0   :  { %5732 = vmatmul.mubr.msk.bf16.vlgmr.msra.gmra.mrb[12].mxu0 %vm313_vm3, %v972_v47 }
 0x2a1   :  { %5735 = vmatprep.mubr.msk.bf16.mxu0 %vm313_vm3, %v973_v48  ;;  %5760 = vmatpush3.bf16.msra.mxu0 %v1424_v41 }
 0x2a2   :  { %6149 = vmatprep.subr.msk.bf16.mxu0 %vm361_vm2, %v6769_v59 }
 0x2a8   :  { %5736 = vmatmul.mubr.msk.bf16.gmra.mrb[16].mxu0 %vm313_vm3, %v974_v51 }
 0x373   :  { %v5733_v63 = vpop.f32.mrb[12].mxu0 }
 0x374   :  { %v1075_v0 = vadd.f32 %v5733_v63, %v5270_v61  ;;  %v1026_v2 = vpop.f32.mrb[13].mxu0 }
 0x375   :  { %v1073_v32 = vadd.f32 %v5270_v61, %v1026_v2  ;;  %v5734_v33 = vpop.f32.mrb[14].mxu0 }
 0x376   :  { %v1076_v1 = vadd.f32 %v5734_v33, %v5270_v61  ;;  %v1029_v4 = vpop.f32.mrb[15].mxu0  ;;  %v6783_v6 = vmax.f32 %v1075_v0, 0.0 }
 0x377   :  { %v6785_v8 = vmax.f32 %v1073_v32, 0.0  ;;  %v1074_v9 = vadd.f32 %v5270_v61, %v1029_v4 }
 0x378   :  { %v6789_v11 = vmax.f32 %v1076_v1, 0.0  ;;  %v1117_v13 = vmul.f32 %v6783_v6, %v6783_v6  ;;  %v1096_v19 = vsel %vm313_vm3, %v6783_v6, 0.0 }
 0x379   :  { %v1115_v10 = vmul.f32 %v6785_v8, %v6785_v8  ;;  %v6791_v12 = vmax.f32 %v1074_v9, 0.0  ;;  %v1093_v14 = vsel %vm313_vm3, %v6785_v8, 0.0 }
 0x37a   :  { %v1118_v22 = vmul.f32 %v6789_v11, %v6789_v11  ;;  %v1126_v37 = vsel %vm313_vm3, %v1117_v13, 0.0  ;;  %v1098_v38 = vsel %vm313_vm3, %v6789_v11, 0.0 }
 0x37b   :  { %v1094_v15 = vsel %vm313_vm3, %v6791_v12, 0.0  ;;  %v1116_v16 = vmul.f32 %v6791_v12, %v6791_v12  ;;  %v5737_v17 = vpop.f32.mrb[16].mxu0  ;;  %v1123_v21 = vsel %vm313_vm3, %v1115_v10, 0.0 }
 0x37c   :  { %v1095_v53 = vadd.f32 %v1094_v15, %v1093_v14  ;;  %v1079_v18 = vadd.f32 %v5737_v17, %v5270_v61  ;;  %v1042_v20 = vpop.f32.mrb[17].mxu0  ;;  %v1128_v48 = vsel %vm313_vm3, %v1118_v22, 0.0 }
 0x37d   :  { %v1124_v24 = vsel %vm313_vm3, %v1116_v16, 0.0  ;;  %v1077_v25 = vadd.f32 %v5270_v61, %v1042_v20  ;;  %v5738_v26 = vpop.f32.mrb[18].mxu0 }
 0x37e   :  { %v1097_v27 = vadd.f32 %v1096_v19, %v1095_v53  ;;  %v1125_v30 = vadd.f32 %v1124_v24, %v1123_v21  ;;  %v1080_v31 = vadd.f32 %v5738_v26, %v5270_v61  ;;  %v1045_v35 = vpop.f32.mrb[19].mxu0  ;;  %v6812_v46 = vmax.f32 %v1079_v18, 0.0 }
 0x37f   :  { %v6810_v39 = vmax.f32 %v1077_v25, 0.0  ;;  %v1078_v40 = vadd.f32 %v5270_v61, %v1045_v35 }
 0x380   :  { %v1127_v44 = vadd.f32 %v1126_v37, %v1125_v30  ;;  %v1099_v47 = vadd.f32 %v1098_v38, %v1097_v27  ;;  %v1088_v41 = vmax.f32 %v1080_v31, 0.0  ;;  %v1121_v63 = vmul.f32 %v6812_v46, %v6812_v46 }
 0x381   :  { %v1100_v49 = vsel %vm313_vm3, %v6810_v39, 0.0  ;;  %v1119_v50 = vmul.f32 %v6810_v39, %v6810_v39  ;;  %v1086_v51 = vmax.f32 %v1078_v40, 0.0  ;;  %v1104_v33 = vsel %vm313_vm3, %v6812_v46, 0.0 }
 0x382   :  { %v1101_v34 = vadd.f32 %v1100_v49, %v1099_v47  ;;  %v1129_v36 = vadd.f32 %v1128_v48, %v1127_v44  ;;  %v1122_v1 = vmul.f32 %v1088_v41, %v1088_v41  ;;  %v1106_v10 = vsel %vm313_vm3, %v1088_v41, 0.0  ;;  %v1346_v49 = vpop.permute.xlu1 %1345 }
 0x383   :  { %v1130_v58 = vsel %vm313_vm3, %v1119_v50, 0.0  ;;  %v1102_v61 = vsel %vm313_vm3, %v1086_v51, 0.0  ;;  %v1120_v32 = vmul.f32 %v1086_v51, %v1086_v51  ;;  %v1134_v14 = vsel %vm313_vm3, %v1121_v63, 0.0  ;;  %v1344_v50 = vpop.permute.xlu0 %1343 }
 0x384   :  { %v1131_v0 = vadd.f32 %v1130_v58, %v1129_v36  ;;  %v1103_v2 = vadd.f32 %v1102_v61, %v1101_v34  ;;  %v1136_v17 = vsel %vm313_vm3, %v1122_v1, 0.0  ;;  %v5271_v34 = vld [vmem:[%s7871_s7 + $0x1] sm:$0x1] }
 0x385   :  { %v1132_v9 = vsel %vm313_vm3, %v1120_v32, 0.0 }
 0x386   :  { %v1105_v4 = vadd.f32 %v1104_v33, %v1103_v2  ;;  %v1133_v13 = vadd.f32 %v1132_v9, %v1131_v0  ;;  %v1350_v58 = vpop.permute.xlu1 %1349  ;;  %v5272_v0 = vld [vmem:[%s7872_s8 + $0x1] sm:$0x1] }
 0x387   :  { %v1348_v61 = vpop.permute.xlu0 %1347 }
 0x388   :  { %v1107_v15 = vadd.f32 %v1106_v10, %v1105_v4  ;;  %v1135_v16 = vadd.f32 %v1134_v14, %v1133_v13 }
 0x38a   :  { %v1108_v19 = vrot.slane %v1107_v15, 4  ;;  %v1137_v53 = vadd.f32 %v1136_v17, %v1135_v16  ;;  %v1354_v10 = vpop.permute.xlu1 %1353 }
 0x38b   :  { %v1352_v13 = vpop.permute.xlu0 %1351 }
 0x38c   :  { %v1109_v18 = vadd.f32 %v1108_v19, %v1107_v15  ;;  %v1138_v20 = vrot.slane %v1137_v53, 4 }
 0x38e   :  { %v1110_v21 = vrot.slane %v1109_v18, 2  ;;  %v1139_v22 = vadd.f32 %v1138_v20, %v1137_v53 }
 0x390   :  { %v1111_v24 = vadd.f32 %v1110_v21, %v1109_v18  ;;  %v1140_v25 = vrot.slane %v1139_v22, 2 }
 0x392   :  { %v1112_v26 = vrot.slane %v1111_v24, 1  ;;  %v1141_v27 = vadd.f32 %v1140_v25, %v1139_v22 }
 0x394   :  { %v1113_v30 = vadd.f32 %v1112_v26, %v1111_v24  ;;  %v1142_v31 = vrot.slane %v1141_v27, 1 }
 0x396   :  { %v1114_v35 = vmul.f32 0.015625, %v1113_v30  ;;  %v1143_v37 = vadd.f32 %v1142_v31, %v1141_v27  ;;  %v1358_v27 = vpop.permute.xlu1 %1357 }
 0x398   :  { %v1145_v38 = vmul.f32 %v1114_v35, %v1114_v35  ;;  %v1144_v40 = vmul.f32 0.015625, %v1143_v37 }
 0x39a   :  { %v1146_v44 = vsub.f32 %v1144_v40, %v1145_v38 }
 0x39c   :  { %v1147_v47 = vmax.f32 %v1146_v44, 0.0 }
 0x39e   :  { %v1148_v48 = vadd.f32 1e-05, %v1147_v47 }
 0x3a0   :  { %6250 = vrsqrt.f32 %v1148_v48 }
 0x3aa   :  { %v6251_v36 = vpop.eup %6250 }
 0x3ab   :  { %v1150_v63 = vmul.f32 %v6251_v36, %v5271_v34 }
 0x3ad   :  { %v1151_v2 = vmul.f32 %v1150_v63, %v1114_v35  ;;  %v1156_v32 = vrot.slane %v1150_v63, %v6495_v45 }
 0x3af   :  { %v1152_v33 = vsub.f32 %v5272_v0, %v1151_v2  ;;  %v1162_v1 = vmul.f32 %v1156_v32, %v1086_v51  ;;  %v1157_v4 = vmul.f32 %v1156_v32, %v6785_v8  ;;  %v1158_v9 = vmul.f32 %v1156_v32, %v6791_v12  ;;  %v5291_v0 = vld [vmem:[%s7869_s5 + $0x20] sm:$0xf] }
 0x3b0   :  { %v1159_v14 = vmul.f32 %v1156_v32, %v6783_v6  ;;  %v1160_v15 = vmul.f32 %v1156_v32, %v6789_v11  ;;  %v1161_v16 = vmul.f32 %v1156_v32, %v6810_v39  ;;  %v1163_v17 = vmul.f32 %v1156_v32, %v6812_v46  ;;  %v1356_v46 = vpop.permute.xlu0 %1355 }
 0x3b1   :  { %v1169_v19 = vrot.slane %v1152_v33, %v6495_v45  ;;  %v1164_v53 = vmul.f32 %v1156_v32, %v1088_v41  ;;  %v1276_v51 = vsel %vm361_vm2, %v6776_v60, 0  ;;  %v1598_v3 = vsel %vm361_vm2, %v5291_v0, 0 }
 0x3b3   :  { %v1176_v18 = vadd.f32 %v1169_v19, %v1162_v1  ;;  %v1171_v8 = vadd.f32 %v1169_v19, %v1157_v4  ;;  %v1172_v20 = vadd.f32 %v1169_v19, %v1158_v9  ;;  %v1173_v12 = vadd.f32 %v1169_v19, %v1159_v14 }
 0x3b4   :  { %v1174_v21 = vadd.f32 %v1169_v19, %v1160_v15  ;;  %v1175_v22 = vadd.f32 %v1169_v19, %v1161_v16  ;;  %v1177_v24 = vadd.f32 %v1169_v19, %v1163_v17  ;;  %v1178_v6 = vadd.f32 %v1169_v19, %v1164_v53 }
 0x3b5   :  { %v1372_v25 = vadd.f32 %v1354_v10, %v1176_v18  ;;  %v1179_v11 = vpack.c.bf16 %v1172_v20, %v1171_v8  ;;  %v1367_v26 = vadd.f32 %v1344_v50, %v1171_v8  ;;  %v1368_v39 = vadd.f32 %v1346_v49, %v1172_v20  ;;  %v6898_v8 = vld [vmem:[%s7869_s5 + $0x28] sm:$0xf] }
 0x3b6   :  { %v1180_v30 = vpack.c.bf16 %v1174_v21, %v1173_v12  ;;  %v1369_v31 = vadd.f32 %v1348_v61, %v1173_v12  ;;  %v1370_v41 = vadd.f32 %v1350_v58, %v1174_v21  ;;  %v1181_v35 = vpack.c.bf16 %v1176_v18, %v1175_v22  ;;  %v307_v18 = vld [vmem:[%s7873_s9 + $0x8] sm:$0xf]  ;;  %v5297_v12 = vld [vmem:[%s7870_s6 + $0x2] ss:$0 sm:$0xff] }
 0x3b7   :  { %1380 = vst.msk [vmem:[#allocation2 + $0x32] sm:$0xff] %vm313_vm3, %v1372_v25  ;;  %5741 = vmatprep.mubr.msk.bf16.mxu1 %vm313_vm3, %v1179_v11  ;;  %1375 = vst.msk [vmem:[#allocation2 + $0x2] sm:$0xff] %vm313_vm3, %v1367_v26  ;;  %v1371_v60 = vadd.f32 %v1352_v13, %v1175_v22  ;;  %v1182_v37 = vpack.c.bf16 %v1178_v6, %v1177_v24  ;;  %v1373_v38 = vadd.f32 %v1356_v46, %v1177_v24 }
 0x3b8   :  { %1376 = vst.msk [vmem:[#allocation2 + $0xa] sm:$0xff] %vm313_vm3, %v1368_v39  ;;  %v1374_v40 = vadd.f32 %v1358_v27, %v1178_v6  ;;  %5742 = vmatmul.mubr.msk.bf16.vlgmr.msra.gmra.mrb[8].mxu1 %vm313_vm3, %v1180_v30  ;;  %1377 = vst.msk [vmem:[#allocation2 + $0x12] sm:$0xff] %vm313_vm3, %v1369_v31  ;;  %v1504_v58 = vsel %vm361_vm2, %v6769_v59, 0  ;;  %v1804_v20 = vsel %vm361_vm2, %v307_v18, 0 }
 0x3b9   :  { %1378 = vst.msk [vmem:[#allocation2 + $0x1a] sm:$0xff] %vm313_vm3, %v1370_v41  ;;  %5745 = vmatprep.mubr.msk.bf16.mxu1 %vm313_vm3, %v1181_v35  ;;  %1379 = vst.msk [vmem:[#allocation2 + $0x2a] sm:$0xff] %vm313_vm3, %v1371_v60  ;;  %5750 = vmatpush3.bf16.msra.mxu1 %v1276_v51 }
 0x3ba   :  { %1381 = vst.msk [vmem:[#allocation2 + $0x3a] sm:$0xff] %vm313_vm3, %v1373_v38  ;;  %1382 = vst.msk [vmem:[#allocation2 + $0x42] sm:$0xff] %vm313_vm3, %v1374_v40  ;;  %6151 = vmatprep.subr.msk.bf16.mxu1 %vm361_vm2, %v307_v18 }
 0x3be   :  { %v1397_v44 = vld [vmem:[#allocation2 + $0x2] sm:$0xff]  ;;  %v1402_v48 = vld [vmem:[#allocation2 + $0x32] sm:$0xff] }
 0x3bf   :  { %v1398_v47 = vld [vmem:[#allocation2 + $0xa] sm:$0xff]  ;;  %v1399_v50 = vld [vmem:[#allocation2 + $0x12] sm:$0xff]  ;;  %v1383_v32 = vld [vmem:[#allocation2] sm:$0xff] }
 0x3c0   :  { %v1405_v49 = vpack.c.bf16 %v1398_v47, %v1397_v44  ;;  %v1400_v34 = vld [vmem:[#allocation2 + $0x1a] sm:$0xff]  ;;  %5746 = vmatmul.mubr.msk.bf16.gmra.mrb[12].mxu1 %vm313_vm3, %v1182_v37  ;;  %v1401_v61 = vld [vmem:[#allocation2 + $0x2a] sm:$0xff] }
 0x3c1   :  { %v1406_v36 = vpack.c.bf16 %v1400_v34, %v1399_v50  ;;  %5751 = vmatprep.mubr.msk.bf16.mxu1 %vm313_vm3, %v723_v62  ;;  %v1407_v63 = vpack.c.bf16 %v1402_v48, %v1401_v61  ;;  %v1403_v59 = vld [vmem:[#allocation2 + $0x3a] sm:$0xff]  ;;  %v1404_v2 = vld [vmem:[#allocation2 + $0x42] sm:$0xff]  ;;  %v1385_v33 = vld [vmem:[#allocation2 + $0x10] sm:$0xff] }
 0x3c2   :  { %5761 = vmatprep.mubr.msk.bf16.mxu0 %vm313_vm3, %v1405_v49  ;;  %v1384_v52 = vld [vmem:[#allocation2 + $0x8] sm:$0xff]  ;;  %v1408_v55 = vpack.c.bf16 %v1404_v2, %v1403_v59  ;;  %v1386_v1 = vld [vmem:[#allocation2 + $0x18] sm:$0xff]  ;;  %v1388_v9 = vld [vmem:[#allocation2 + $0x30] sm:$0xff] }
 0x3c3   :  { %5762 = vmatmul.mubr.msk.bf16.vlgmr.msra.gmra.mrb[20].mxu0 %vm313_vm3, %v1406_v36  ;;  %v1391_v62 = vpack.c.bf16 %v1384_v52, %v1383_v32  ;;  %v1387_v4 = vld [vmem:[#allocation2 + $0x28] sm:$0xff]  ;;  %v1392_v56 = vpack.c.bf16 %v1386_v1, %v1385_v33  ;;  %v1389_v54 = vld [vmem:[#allocation2 + $0x38] sm:$0xff] }
 0x3c4   :  { %5770 = vmatpush3.bf16.msra.mxu0 %v1504_v58  ;;  %5765 = vmatprep.mubr.msk.bf16.mxu0 %vm313_vm3, %v1407_v63  ;;  %v1393_v7 = vpack.c.bf16 %v1388_v9, %v1387_v4  ;;  %v1572_v10 = vld [vmem:[#allocation2 + $0xc] sm:$0xff]  ;;  %v1573_v5 = vld [vmem:[#allocation2 + $0x14] sm:$0xff]  ;;  %v1574_v23 = vld [vmem:[#allocation2 + $0x1c] sm:$0xff] }
 0x3c5   :  { %6150 = vmatprep.subr.msk.bf16.mxu0 %vm361_vm2, %v5291_v0  ;;  %v1576_v15 = vld [vmem:[#allocation2 + $0x34] sm:$0xff]  ;;  %v1580_v16 = vpack.c.bf16 %v1574_v23, %v1573_v5  ;;  %v1577_v19 = vld [vmem:[#allocation2 + $0x3c] sm:$0xff]  ;;  %v1578_v53 = vld [vmem:[#allocation2 + $0x44] sm:$0xff] }
 0x3c6   :  { %v1582_v51 = vpack.c.bf16 %v1578_v53, %v1577_v19 }
 0x3c8   :  { %5752 = vmatmul.mubr.msk.bf16.vlgmr.msra.gmra.mrb[8].mxu1 %vm313_vm3, %v724_v57  ;;  %v1390_v57 = vld [vmem:[#allocation2 + $0x40] sm:$0xff] }
 0x3c9   :  { %5755 = vmatprep.mubr.msk.bf16.mxu1 %vm313_vm3, %v725_v28  ;;  %v1571_v28 = vld [vmem:[#allocation2 + $0x4] sm:$0xff]  ;;  %v1394_v13 = vpack.c.bf16 %v1390_v57, %v1389_v54  ;;  %5790 = vmatpush3.bf16.msra.mxu1 %v1804_v20 }
 0x3ca   :  { %v1579_v14 = vpack.c.bf16 %v1572_v10, %v1571_v28  ;;  %6152 = vmatprep.subr.msk.bf16.mxu1 %vm361_vm2, %v6898_v8 }
 0x3cb   :  { %5766 = vmatmul.mubr.msk.bf16.gmra.mrb[24].mxu0 %vm313_vm3, %v1408_v55 }
 0x3cc   :  { %5771 = vmatprep.mubr.msk.bf16.mxu0 %vm313_vm3, %v1391_v62 }
 0x3d0   :  { %5756 = vmatmul.mubr.msk.bf16.gmra.mrb[12].mxu1 %vm313_vm3, %v726_v29  ;;  %v1575_v29 = vld [vmem:[#allocation2 + $0x2c] sm:$0xff] }
 0x3d1   :  { %v1581_v17 = vpack.c.bf16 %v1576_v15, %v1575_v29 }
 0x3d3   :  { %5772 = vmatmul.mubr.msk.bf16.vlgmr.msra.gmra.mrb[20].mxu0 %vm313_vm3, %v1392_v56 }
 0x3d4   :  { %5780 = vmatpush3.bf16.msra.mxu0 %v1598_v3  ;;  %5775 = vmatprep.mubr.msk.bf16.mxu0 %vm313_vm3, %v1393_v7 }
 0x3db   :  { %5776 = vmatmul.mubr.msk.bf16.gmra.mrb[24].mxu0 %vm313_vm3, %v1394_v13 }
 0x3dc   :  { %5781 = vmatprep.mubr.msk.bf16.mxu0 %vm313_vm3, %v1579_v14 }
 0x3e3   :  { %5782 = vmatmul.mubr.msk.bf16.vlgmr.msra.gmra.mrb[20].mxu0 %vm313_vm3, %v1580_v16 }
 0x3e4   :  { %5785 = vmatprep.mubr.msk.bf16.mxu0 %vm313_vm3, %v1581_v17 }
 0x3eb   :  { %5786 = vmatmul.mubr.msk.bf16.gmra.mrb[24].mxu0 %vm313_vm3, %v1582_v51 }
 0x4b6   :  { %v5783_v21 = vpop.f32.mrb[20].mxu0 }
 0x4b7   :  { %v1683_v22 = vadd.f32 %v5783_v21, %v5297_v12  ;;  %v1634_v24 = vpop.f32.mrb[21].mxu0 }
 0x4b8   :  { %v1681_v6 = vadd.f32 %v5297_v12, %v1634_v24  ;;  %v5784_v25 = vpop.f32.mrb[22].mxu0 }
 0x4b9   :  { %v1684_v11 = vadd.f32 %v5784_v25, %v5297_v12  ;;  %v1637_v26 = vpop.f32.mrb[23].mxu0  ;;  %v6907_v39 = vmax.f32 %v1683_v22, 0.0 }
 0x4ba   :  { %v6909_v27 = vmax.f32 %v1681_v6, 0.0  ;;  %v1682_v46 = vadd.f32 %v5297_v12, %v1637_v26 }
 0x4bb   :  { %v6913_v31 = vmax.f32 %v1684_v11, 0.0  ;;  %v1725_v35 = vmul.f32 %v6907_v39, %v6907_v39  ;;  %v1704_v44 = vsel %vm313_vm3, %v6907_v39, 0.0 }
 0x4bc   :  { %v1723_v30 = vmul.f32 %v6909_v27, %v6909_v27  ;;  %v6915_v41 = vmax.f32 %v1682_v46, 0.0  ;;  %v1701_v60 = vsel %vm313_vm3, %v6909_v27, 0.0 }
 0x4bd   :  { %v1726_v34 = vmul.f32 %v6913_v31, %v6913_v31  ;;  %v1734_v32 = vsel %vm313_vm3, %v1725_v35, 0.0  ;;  %v1706_v52 = vsel %vm313_vm3, %v6913_v31, 0.0 }
 0x4be   :  { %v1702_v37 = vsel %vm313_vm3, %v6915_v41, 0.0  ;;  %v1724_v38 = vmul.f32 %v6915_v41, %v6915_v41  ;;  %v5787_v40 = vpop.f32.mrb[24].mxu0  ;;  %v1731_v50 = vsel %vm313_vm3, %v1723_v30, 0.0 }
 0x4bf   :  { %v1703_v47 = vadd.f32 %v1702_v37, %v1701_v60  ;;  %v1687_v48 = vadd.f32 %v5787_v40, %v5297_v12  ;;  %v1650_v49 = vpop.f32.mrb[25].mxu0  ;;  %v1736_v9 = vsel %vm313_vm3, %v1726_v34, 0.0 }
 0x4c0   :  { %v1732_v36 = vsel %vm313_vm3, %v1724_v38, 0.0  ;;  %v1685_v58 = vadd.f32 %v5297_v12, %v1650_v49  ;;  %v5788_v61 = vpop.f32.mrb[26].mxu0 }
 0x4c1   :  { %v1705_v63 = vadd.f32 %v1704_v44, %v1703_v47  ;;  %v1733_v0 = vadd.f32 %v1732_v36, %v1731_v50  ;;  %v1688_v59 = vadd.f32 %v5788_v61, %v5297_v12  ;;  %v1653_v2 = vpop.f32.mrb[27].mxu0  ;;  %v6936_v1 = vmax.f32 %v1687_v48, 0.0  ;;  %v1882_v36 = vpop.permute.xlu1 %1881  ;;  %v5298_v61 = vld [vmem:[%s7871_s7 + $0x2] sm:$0x1] }
 0x4c2   :  { %v6934_v55 = vmax.f32 %v1685_v58, 0.0  ;;  %v1686_v62 = vadd.f32 %v5297_v12, %v1653_v2  ;;  %v1880_v58 = vpop.permute.xlu0 %1879 }
 0x4c3   :  { %v1735_v33 = vadd.f32 %v1734_v32, %v1733_v0  ;;  %v1707_v4 = vadd.f32 %v1706_v52, %v1705_v63  ;;  %v1696_v28 = vmax.f32 %v1688_v59, 0.0  ;;  %v1729_v14 = vmul.f32 %v6936_v1, %v6936_v1  ;;  %v5299_v32 = vld [vmem:[%s7872_s8 + $0x2] sm:$0x1] }
 0x4c4   :  { %v1708_v56 = vsel %vm313_vm3, %v6934_v55, 0.0  ;;  %v1727_v3 = vmul.f32 %v6934_v55, %v6934_v55  ;;  %v1694_v7 = vmax.f32 %v1686_v62, 0.0  ;;  %v1712_v15 = vsel %vm313_vm3, %v6936_v1, 0.0 }
 0x4c5   :  { %v1709_v54 = vadd.f32 %v1708_v56, %v1707_v4  ;;  %v1737_v57 = vadd.f32 %v1736_v9, %v1735_v33  ;;  %v1730_v16 = vmul.f32 %v1696_v28, %v1696_v28  ;;  %v1714_v53 = vsel %vm313_vm3, %v1696_v28, 0.0  ;;  %v1886_v0 = vpop.permute.xlu1 %1885 }
 0x4c6   :  { %v1738_v10 = vsel %vm313_vm3, %v1727_v3, 0.0  ;;  %v1710_v13 = vsel %vm313_vm3, %v1694_v7, 0.0  ;;  %v1728_v29 = vmul.f32 %v1694_v7, %v1694_v7  ;;  %v1742_v18 = vsel %vm313_vm3, %v1729_v14, 0.0  ;;  %v1884_v59 = vpop.permute.xlu0 %1883 }
 0x4c7   :  { %v1739_v5 = vadd.f32 %v1738_v10, %v1737_v57  ;;  %v1711_v23 = vadd.f32 %v1710_v13, %v1709_v54  ;;  %v1744_v21 = vsel %vm313_vm3, %v1730_v16, 0.0 }
 0x4c8   :  { %v1740_v19 = vsel %vm313_vm3, %v1728_v29, 0.0 }
 0x4c9   :  { %v1713_v17 = vadd.f32 %v1712_v15, %v1711_v23  ;;  %v1741_v51 = vadd.f32 %v1740_v19, %v1739_v5  ;;  %v1890_v3 = vpop.permute.xlu1 %1889 }
 0x4ca   :  { %v1888_v54 = vpop.permute.xlu0 %1887 }
 0x4cb   :  { %v1715_v20 = vadd.f32 %v1714_v53, %v1713_v17  ;;  %v1743_v12 = vadd.f32 %v1742_v18, %v1741_v51 }
 0x4cd   :  { %v1716_v22 = vrot.slane %v1715_v20, 4  ;;  %v1745_v24 = vadd.f32 %v1744_v21, %v1743_v12  ;;  %v1894_v18 = vpop.permute.xlu1 %1893 }
 0x4cf   :  { %v1717_v6 = vadd.f32 %v1716_v22, %v1715_v20  ;;  %v1746_v25 = vrot.slane %v1745_v24, 4 }
 0x4d1   :  { %v1718_v11 = vrot.slane %v1717_v6, 2  ;;  %v1747_v26 = vadd.f32 %v1746_v25, %v1745_v24  ;;  %v5304_v25 = vld [vmem:[%s7869_s5 + $0x24] sm:$0xf] }
 0x4d3   :  { %v1719_v46 = vadd.f32 %v1718_v11, %v1717_v6  ;;  %v1748_v30 = vrot.slane %v1747_v26, 2 }
 0x4d5   :  { %v1720_v35 = vrot.slane %v1719_v46, 1  ;;  %v1749_v60 = vadd.f32 %v1748_v30, %v1747_v26 }
 0x4d7   :  { %v1721_v37 = vadd.f32 %v1720_v35, %v1719_v46  ;;  %v1750_v38 = vrot.slane %v1749_v60, 1 }
 0x4d9   :  { %v1722_v40 = vmul.f32 0.015625, %v1721_v37  ;;  %v1751_v44 = vadd.f32 %v1750_v38, %v1749_v60 }
 0x4db   :  { %v1753_v47 = vmul.f32 %v1722_v40, %v1722_v40  ;;  %v1752_v48 = vmul.f32 0.015625, %v1751_v44 }
 0x4dd   :  { %v1754_v49 = vsub.f32 %v1752_v48, %v1753_v47  ;;  %v5314_v47 = vld [vmem:[%s7869_s5 + $0x2c] sm:$0xf] }
 0x4df   :  { %v1755_v50 = vmax.f32 %v1754_v49, 0.0 }
 0x4e1   :  { %v1756_v34 = vadd.f32 1e-05, %v1755_v50 }
 0x4e3   :  { %6252 = vrsqrt.f32 %v1756_v34 }
 0x4ed   :  { %v6253_v63 = vpop.eup %6252 }
 0x4ee   :  { %v1758_v2 = vmul.f32 %v6253_v63, %v5298_v61 }
 0x4f0   :  { %v1759_v52 = vmul.f32 %v1758_v2, %v1722_v40  ;;  %v1764_v62 = vrot.slane %v1758_v2, %v6495_v45  ;;  %v2040_v40 = vsel %vm361_vm2, %v5304_v25, 0 }
 0x4f2   :  { %v1760_v33 = vsub.f32 %v5299_v32, %v1759_v52  ;;  %v1770_v4 = vmul.f32 %v1764_v62, %v1694_v7  ;;  %v1765_v9 = vmul.f32 %v1764_v62, %v6909_v27  ;;  %v1766_v56 = vmul.f32 %v1764_v62, %v6915_v41 }
 0x4f3   :  { %v1767_v57 = vmul.f32 %v1764_v62, %v6907_v39  ;;  %v1768_v10 = vmul.f32 %v1764_v62, %v6913_v31  ;;  %v1769_v13 = vmul.f32 %v1764_v62, %v6934_v55  ;;  %v1771_v14 = vmul.f32 %v1764_v62, %v6936_v1  ;;  %v1892_v1 = vpop.permute.xlu0 %1891 }
 0x4f4   :  { %v1777_v5 = vrot.slane %v1760_v33, %v6495_v45  ;;  %v1772_v23 = vmul.f32 %v1764_v62, %v1696_v28  ;;  %v1960_v7 = vsel %vm361_vm2, %v6898_v8, 0  ;;  %v2134_v32 = vsel %vm361_vm2, %v5314_v47, 0 }
 0x4f6   :  { %v1784_v29 = vadd.f32 %v1777_v5, %v1770_v4  ;;  %v1779_v27 = vadd.f32 %v1777_v5, %v1765_v9  ;;  %v1780_v15 = vadd.f32 %v1777_v5, %v1766_v56  ;;  %v1781_v41 = vadd.f32 %v1777_v5, %v1767_v57 }
 0x4f7   :  { %v1782_v16 = vadd.f32 %v1777_v5, %v1768_v10  ;;  %v1783_v17 = vadd.f32 %v1777_v5, %v1769_v13  ;;  %v1785_v19 = vadd.f32 %v1777_v5, %v1771_v14  ;;  %v1786_v39 = vadd.f32 %v1777_v5, %v1772_v23 }
 0x4f8   :  { %v1908_v53 = vadd.f32 %v1890_v3, %v1784_v29  ;;  %v1787_v31 = vpack.c.bf16 %v1780_v15, %v1779_v27  ;;  %v1903_v51 = vadd.f32 %v1880_v58, %v1779_v27  ;;  %v1904_v55 = vadd.f32 %v1882_v36, %v1780_v15  ;;  %v5328_v27 = vld [vmem:[%s7869_s5 + $0x34] sm:$0xf]  ;;  %v308_v15 = vld [vmem:[%s7873_s9 + $0xc] sm:$0xf] }
 0x4f9   :  { %v1788_v20 = vpack.c.bf16 %v1782_v16, %v1781_v41  ;;  %v1905_v12 = vadd.f32 %v1884_v59, %v1781_v41  ;;  %v1906_v28 = vadd.f32 %v1886_v0, %v1782_v16  ;;  %v1789_v21 = vpack.c.bf16 %v1784_v29, %v1783_v17  ;;  %6156 = vmatprep.subr.msk.bf16.mxu0 %vm361_vm2, %v5328_v27 }
 0x4fa   :  { %1916 = vst.msk [vmem:[#allocation2 + $0x32] sm:$0xff] %vm313_vm3, %v1908_v53  ;;  %5791 = vmatprep.mubr.msk.bf16.mxu1 %vm313_vm3, %v1787_v31  ;;  %1911 = vst.msk [vmem:[#allocation2 + $0x2] sm:$0xff] %vm313_vm3, %v1903_v51  ;;  %v1907_v8 = vadd.f32 %v1888_v54, %v1783_v17  ;;  %v1790_v22 = vpack.c.bf16 %v1786_v39, %v1785_v19  ;;  %v1909_v24 = vadd.f32 %v1892_v1, %v1785_v19  ;;  %v7016_v17 = vld [vmem:[%s7869_s5 + $0x30] sm:$0xf]  ;;  %v5320_v19 = vld [vmem:[%s7870_s6 + $0x3] ss:$0 sm:$0xff] }
 0x4fb   :  { %1912 = vst.msk [vmem:[#allocation2 + $0xa] sm:$0xff] %vm313_vm3, %v1904_v55  ;;  %v1910_v6 = vadd.f32 %v1894_v18, %v1786_v39  ;;  %5792 = vmatmul.mubr.msk.bf16.vlgmr.msra.gmra.mrb[8].mxu1 %vm313_vm3, %v1788_v20  ;;  %1913 = vst.msk [vmem:[#allocation2 + $0x12] sm:$0xff] %vm313_vm3, %v1905_v12  ;;  %v2496_v41 = vsel %vm361_vm2, %v5328_v27, 0  ;;  %v2340_v16 = vsel %vm361_vm2, %v308_v15, 0 }
 0x4fc   :  { %1914 = vst.msk [vmem:[#allocation2 + $0x1a] sm:$0xff] %vm313_vm3, %v1906_v28  ;;  %5800 = vmatpush3.bf16.msra.mxu1 %v1960_v7  ;;  %5795 = vmatprep.mubr.msk.bf16.mxu1 %vm313_vm3, %v1789_v21  ;;  %1915 = vst.msk [vmem:[#allocation2 + $0x2a] sm:$0xff] %vm313_vm3, %v1907_v8 }
 0x4fd   :  { %1917 = vst.msk [vmem:[#allocation2 + $0x3a] sm:$0xff] %vm313_vm3, %v1909_v24  ;;  %1918 = vst.msk [vmem:[#allocation2 + $0x42] sm:$0xff] %vm313_vm3, %v1910_v6  ;;  %6153 = vmatprep.subr.msk.bf16.mxu1 %vm361_vm2, %v5304_v25  ;;  %5840 = vmatpush3.bf16.msra.mxu0 %v2496_v41 }
 0x4fe   :  { %6157 = vmatprep.subr.msk.bf16.mxu0 %vm361_vm2, %v7016_v17 }
 0x501   :  { %v1933_v11 = vld [vmem:[#allocation2 + $0x2] sm:$0xff]  ;;  %v1938_v37 = vld [vmem:[#allocation2 + $0x32] sm:$0xff] }
 0x502   :  { %v1934_v26 = vld [vmem:[#allocation2 + $0xa] sm:$0xff]  ;;  %v1935_v30 = vld [vmem:[#allocation2 + $0x12] sm:$0xff]  ;;  %v1919_v50 = vld [vmem:[#allocation2] sm:$0xff] }
 0x503   :  { %v1941_v46 = vpack.c.bf16 %v1934_v26, %v1933_v11  ;;  %5796 = vmatmul.mubr.msk.bf16.gmra.mrb[12].mxu1 %vm313_vm3, %v1790_v22  ;;  %v1936_v35 = vld [vmem:[#allocation2 + $0x1a] sm:$0xff]  ;;  %v1937_v60 = vld [vmem:[#allocation2 + $0x2a] sm:$0xff] }
 0x504   :  { %v1942_v38 = vpack.c.bf16 %v1936_v35, %v1935_v30  ;;  %v1943_v44 = vpack.c.bf16 %v1938_v37, %v1937_v60  ;;  %v1939_v48 = vld [vmem:[#allocation2 + $0x3a] sm:$0xff]  ;;  %v1940_v49 = vld [vmem:[#allocation2 + $0x42] sm:$0xff]  ;;  %v1921_v61 = vld [vmem:[#allocation2 + $0x10] sm:$0xff] }
 0x505   :  { %5801 = vmatprep.mubr.msk.bf16.mxu1 %vm313_vm3, %v1941_v46  ;;  %v1920_v34 = vld [vmem:[#allocation2 + $0x8] sm:$0xff]  ;;  %v1944_v36 = vpack.c.bf16 %v1940_v49, %v1939_v48  ;;  %v1922_v63 = vld [vmem:[#allocation2 + $0x18] sm:$0xff]  ;;  %v1924_v59 = vld [vmem:[#allocation2 + $0x30] sm:$0xff] }
 0x506   :  { %v1927_v58 = vpack.c.bf16 %v1920_v34, %v1919_v50  ;;  %v1923_v0 = vld [vmem:[#allocation2 + $0x28] sm:$0xff]  ;;  %v1928_v2 = vpack.c.bf16 %v1922_v63, %v1921_v61  ;;  %v1925_v62 = vld [vmem:[#allocation2 + $0x38] sm:$0xff]  ;;  %v1926_v33 = vld [vmem:[#allocation2 + $0x40] sm:$0xff] }
 0x507   :  { %v1929_v52 = vpack.c.bf16 %v1924_v59, %v1923_v0  ;;  %v2107_v4 = vld [vmem:[#allocation2 + $0x4] sm:$0xff]  ;;  %v2108_v9 = vld [vmem:[#allocation2 + $0xc] sm:$0xff]  ;;  %v1930_v56 = vpack.c.bf16 %v1926_v33, %v1925_v62  ;;  %v2109_v54 = vld [vmem:[#allocation2 + $0x14] sm:$0xff] }
 0x508   :  { %v2115_v3 = vpack.c.bf16 %v2108_v9, %v2107_v4  ;;  %v2110_v57 = vld [vmem:[#allocation2 + $0x1c] sm:$0xff]  ;;  %v2111_v10 = vld [vmem:[#allocation2 + $0x2c] sm:$0xff]  ;;  %v2112_v13 = vld [vmem:[#allocation2 + $0x34] sm:$0xff] }
 0x509   :  { %v2116_v14 = vpack.c.bf16 %v2110_v57, %v2109_v54  ;;  %v2117_v5 = vpack.c.bf16 %v2112_v13, %v2111_v10  ;;  %v2113_v23 = vld [vmem:[#allocation2 + $0x3c] sm:$0xff]  ;;  %v2114_v7 = vld [vmem:[#allocation2 + $0x44] sm:$0xff] }
 0x50a   :  { %v2118_v29 = vpack.c.bf16 %v2114_v7, %v2113_v23 }
 0x50b   :  { %5802 = vmatmul.mubr.msk.bf16.vlgmr.msra.gmra.mrb[16].mxu1 %vm313_vm3, %v1942_v38 }
 0x50c   :  { %5810 = vmatpush3.bf16.msra.mxu1 %v2040_v40  ;;  %5805 = vmatprep.mubr.msk.bf16.mxu1 %vm313_vm3, %v1943_v44 }
 0x50d   :  { %6154 = vmatprep.subr.msk.bf16.mxu1 %vm361_vm2, %v5314_v47 }
 0x513   :  { %5806 = vmatmul.mubr.msk.bf16.gmra.mrb[20].mxu1 %vm313_vm3, %v1944_v36 }
 0x514   :  { %5811 = vmatprep.mubr.msk.bf16.mxu1 %vm313_vm3, %v1927_v58 }
 0x51b   :  { %5812 = vmatmul.mubr.msk.bf16.vlgmr.msra.gmra.mrb[16].mxu1 %vm313_vm3, %v1928_v2 }
 0x51c   :  { %5820 = vmatpush3.bf16.msra.mxu1 %v2134_v32  ;;  %5815 = vmatprep.mubr.msk.bf16.mxu1 %vm313_vm3, %v1929_v52 }
 0x51d   :  { %6155 = vmatprep.subr.msk.bf16.mxu1 %vm361_vm2, %v308_v15 }
 0x523   :  { %5816 = vmatmul.mubr.msk.bf16.gmra.mrb[20].mxu1 %vm313_vm3, %v1930_v56 }
 0x524   :  { %5821 = vmatprep.mubr.msk.bf16.mxu1 %vm313_vm3, %v2115_v3 }
 0x52b   :  { %5822 = vmatmul.mubr.msk.bf16.vlgmr.msra.gmra.mrb[16].mxu1 %vm313_vm3, %v2116_v14 }
 0x52c   :  { %5825 = vmatprep.mubr.msk.bf16.mxu1 %vm313_vm3, %v2117_v5  ;;  %5830 = vmatpush3.bf16.msra.mxu1 %v2340_v16 }
 0x533   :  { %5826 = vmatmul.mubr.msk.bf16.gmra.mrb[20].mxu1 %vm313_vm3, %v2118_v29 }
 0x5fe   :  { %v5823_v39 = vpop.f32.mrb[16].mxu1 }
 0x5ff   :  { %v2219_v53 = vadd.f32 %v5823_v39, %v5320_v19  ;;  %v2170_v31 = vpop.f32.mrb[17].mxu1 }
 0x600   :  { %v2217_v51 = vadd.f32 %v5320_v19, %v2170_v31  ;;  %v5824_v55 = vpop.f32.mrb[18].mxu1 }
 0x601   :  { %v2220_v18 = vadd.f32 %v5824_v55, %v5320_v19  ;;  %v2173_v1 = vpop.f32.mrb[19].mxu1  ;;  %v7023_v20 = vmax.f32 %v2219_v53, 0.0 }
 0x602   :  { %v7025_v12 = vmax.f32 %v2217_v51, 0.0  ;;  %v2218_v28 = vadd.f32 %v5320_v19, %v2173_v1 }
 0x603   :  { %v7029_v8 = vmax.f32 %v2220_v18, 0.0  ;;  %v2261_v24 = vmul.f32 %v7023_v20, %v7023_v20  ;;  %v2240_v46 = vsel %vm313_vm3, %v7023_v20, 0.0 }
 0x604   :  { %v2259_v21 = vmul.f32 %v7025_v12, %v7025_v12  ;;  %v7031_v22 = vmax.f32 %v2218_v28, 0.0  ;;  %v2237_v6 = vsel %vm313_vm3, %v7025_v12, 0.0 }
 0x605   :  { %v2262_v38 = vmul.f32 %v7029_v8, %v7029_v8  ;;  %v2270_v36 = vsel %vm313_vm3, %v2261_v24, 0.0  ;;  %v2242_v58 = vsel %vm313_vm3, %v7029_v8, 0.0 }
 0x606   :  { %v2238_v25 = vsel %vm313_vm3, %v7031_v22, 0.0  ;;  %v2260_v11 = vmul.f32 %v7031_v22, %v7031_v22  ;;  %v5827_v26 = vpop.f32.mrb[20].mxu1  ;;  %v2267_v37 = vsel %vm313_vm3, %v2259_v21, 0.0 }
 0x607   :  { %v2239_v30 = vadd.f32 %v2238_v25, %v2237_v6  ;;  %v2223_v35 = vadd.f32 %v5827_v26, %v5320_v19  ;;  %v2186_v60 = vpop.f32.mrb[21].mxu1  ;;  %v2272_v32 = vsel %vm313_vm3, %v2262_v38, 0.0 }
 0x608   :  { %v2268_v40 = vsel %vm313_vm3, %v2260_v11, 0.0  ;;  %v2221_v44 = vadd.f32 %v5320_v19, %v2186_v60  ;;  %v5828_v47 = vpop.f32.mrb[22].mxu1 }
 0x609   :  { %v2241_v48 = vadd.f32 %v2240_v46, %v2239_v30  ;;  %v2269_v49 = vadd.f32 %v2268_v40, %v2267_v37  ;;  %v2224_v50 = vadd.f32 %v5828_v47, %v5320_v19  ;;  %v2189_v34 = vpop.f32.mrb[23].mxu1  ;;  %v7052_v59 = vmax.f32 %v2223_v35, 0.0  ;;  %v2418_v40 = vpop.permute.xlu1 %2417  ;;  %v5321_v47 = vld [vmem:[%s7871_s7 + $0x3] sm:$0x1] }
 0x60a   :  { %v7050_v61 = vmax.f32 %v2221_v44, 0.0  ;;  %v2222_v63 = vadd.f32 %v5320_v19, %v2189_v34  ;;  %v2416_v44 = vpop.permute.xlu0 %2415 }
 0x60b   :  { %v2271_v0 = vadd.f32 %v2270_v36, %v2269_v49  ;;  %v2243_v2 = vadd.f32 %v2242_v58, %v2241_v48  ;;  %v2232_v56 = vmax.f32 %v2224_v50, 0.0  ;;  %v2265_v57 = vmul.f32 %v7052_v59, %v7052_v59  ;;  %v5322_v36 = vld [vmem:[%s7872_s8 + $0x3] sm:$0x1] }
 0x60c   :  { %v2244_v52 = vsel %vm313_vm3, %v7050_v61, 0.0  ;;  %v2263_v62 = vmul.f32 %v7050_v61, %v7050_v61  ;;  %v2230_v33 = vmax.f32 %v2222_v63, 0.0  ;;  %v2248_v5 = vsel %vm313_vm3, %v7052_v59, 0.0 }
 0x60d   :  { %v2245_v4 = vadd.f32 %v2244_v52, %v2243_v2  ;;  %v2273_v9 = vadd.f32 %v2272_v32, %v2271_v0  ;;  %v2266_v23 = vmul.f32 %v2232_v56, %v2232_v56  ;;  %v2250_v27 = vsel %vm313_vm3, %v2232_v56, 0.0  ;;  %v2422_v49 = vpop.permute.xlu1 %2421 }
 0x60e   :  { %v2274_v3 = vsel %vm313_vm3, %v2263_v62, 0.0  ;;  %v2246_v54 = vsel %vm313_vm3, %v2230_v33, 0.0  ;;  %v2264_v14 = vmul.f32 %v2230_v33, %v2230_v33  ;;  %v2278_v41 = vsel %vm313_vm3, %v2265_v57, 0.0  ;;  %v2420_v50 = vpop.permute.xlu0 %2419 }
 0x60f   :  { %v2275_v10 = vadd.f32 %v2274_v3, %v2273_v9  ;;  %v2247_v13 = vadd.f32 %v2246_v54, %v2245_v4  ;;  %v2280_v39 = vsel %vm313_vm3, %v2266_v23, 0.0 }
 0x610   :  { %v2276_v29 = vsel %vm313_vm3, %v2264_v14, 0.0 }
 0x611   :  { %v2249_v7 = vadd.f32 %v2248_v5, %v2247_v13  ;;  %v2277_v15 = vadd.f32 %v2276_v29, %v2275_v10  ;;  %v2426_v62 = vpop.permute.xlu1 %2425 }
 0x612   :  { %v2424_v4 = vpop.permute.xlu0 %2423 }
 0x613   :  { %v2251_v16 = vadd.f32 %v2250_v27, %v2249_v7  ;;  %v2279_v19 = vadd.f32 %v2278_v41, %v2277_v15 }
 0x615   :  { %v2252_v53 = vrot.slane %v2251_v16, 4  ;;  %v2281_v31 = vadd.f32 %v2280_v39, %v2279_v19 }
 0x617   :  { %v2253_v51 = vadd.f32 %v2252_v53, %v2251_v16  ;;  %v2282_v55 = vrot.slane %v2281_v31, 4  ;;  %v2428_v16 = vpop.permute.xlu0 %2427 }
 0x619   :  { %v2254_v18 = vrot.slane %v2253_v51, 2  ;;  %v2283_v1 = vadd.f32 %v2282_v55, %v2281_v31 }
 0x61b   :  { %v2255_v28 = vadd.f32 %v2254_v18, %v2253_v51  ;;  %v2284_v21 = vrot.slane %v2283_v1, 2 }
 0x61d   :  { %v2256_v24 = vrot.slane %v2255_v28, 1  ;;  %v2285_v6 = vadd.f32 %v2284_v21, %v2283_v1 }
 0x61f   :  { %v2257_v25 = vadd.f32 %v2256_v24, %v2255_v28  ;;  %v2286_v11 = vrot.slane %v2285_v6, 1 }
 0x621   :  { %v2258_v26 = vmul.f32 0.015625, %v2257_v25  ;;  %v2287_v46 = vadd.f32 %v2286_v11, %v2285_v6  ;;  %v2576_v25 = vsel %vm361_vm2, %v7016_v17, 0 }
 0x623   :  { %v2289_v30 = vmul.f32 %v2258_v26, %v2258_v26  ;;  %v2288_v35 = vmul.f32 0.015625, %v2287_v46  ;;  %v5337_v46 = vld [vmem:[%s7869_s5 + $0x38] sm:$0xf] }
 0x625   :  { %v2290_v60 = vsub.f32 %v2288_v35, %v2289_v30 }
 0x627   :  { %v2291_v37 = vmax.f32 %v2290_v60, 0.0 }
 0x629   :  { %v2292_v38 = vadd.f32 1e-05, %v2291_v37 }
 0x62b   :  { %6254 = vrsqrt.f32 %v2292_v38 }
 0x635   :  { %v6255_v48 = vpop.eup %6254 }
 0x636   :  { %v2294_v34 = vmul.f32 %v6255_v48, %v5321_v47 }
 0x638   :  { %v2295_v58 = vmul.f32 %v2294_v34, %v2258_v26  ;;  %v2300_v63 = vrot.slane %v2294_v34, %v6495_v45 }
 0x63a   :  { %v2296_v0 = vsub.f32 %v5322_v36, %v2295_v58  ;;  %v2306_v2 = vmul.f32 %v2300_v63, %v2230_v33  ;;  %v2301_v32 = vmul.f32 %v2300_v63, %v7025_v12  ;;  %v2302_v52 = vmul.f32 %v2300_v63, %v7031_v22 }
 0x63b   :  { %v2303_v9 = vmul.f32 %v2300_v63, %v7023_v20  ;;  %v2304_v3 = vmul.f32 %v2300_v63, %v7029_v8  ;;  %v2305_v54 = vmul.f32 %v2300_v63, %v7050_v61  ;;  %v2307_v57 = vmul.f32 %v2300_v63, %v7052_v59  ;;  %v2430_v8 = vpop.permute.xlu1 %2429 }
 0x63c   :  { %v2313_v10 = vrot.slane %v2296_v0, %v6495_v45  ;;  %v2308_v13 = vmul.f32 %v2300_v63, %v2232_v56 }
 0x63e   :  { %v2320_v14 = vadd.f32 %v2313_v10, %v2306_v2  ;;  %v2315_v5 = vadd.f32 %v2313_v10, %v2301_v32  ;;  %v2316_v33 = vadd.f32 %v2313_v10, %v2302_v52  ;;  %v2317_v23 = vadd.f32 %v2313_v10, %v2303_v9 }
 0x63f   :  { %v2318_v12 = vadd.f32 %v2313_v10, %v2304_v3  ;;  %v2319_v7 = vadd.f32 %v2313_v10, %v2305_v54  ;;  %v2321_v22 = vadd.f32 %v2313_v10, %v2307_v57  ;;  %v2322_v29 = vadd.f32 %v2313_v10, %v2308_v13 }
 0x640   :  { %v2444_v27 = vadd.f32 %v2426_v62, %v2320_v14  ;;  %v2323_v15 = vpack.c.bf16 %v2316_v33, %v2315_v5  ;;  %v2439_v20 = vadd.f32 %v2416_v44, %v2315_v5  ;;  %v2440_v41 = vadd.f32 %v2418_v40, %v2316_v33  ;;  %v309_v5 = vld [vmem:[%s7873_s9 + $0x10] sm:$0xf] }
 0x641   :  { %v2324_v61 = vpack.c.bf16 %v2318_v12, %v2317_v23  ;;  %v2441_v19 = vadd.f32 %v2420_v50, %v2317_v23  ;;  %v2442_v59 = vadd.f32 %v2422_v49, %v2318_v12  ;;  %v2325_v39 = vpack.c.bf16 %v2320_v14, %v2319_v7  ;;  %v5351_v14 = vld [vmem:[%s7869_s5 + $0x40] sm:$0xf]  ;;  %6159 = vmatprep.subr.msk.bf16.mxu1 %vm361_vm2, %v309_v5  ;;  %v7127_v12 = vld [vmem:[%s7869_s5 + $0x3c] sm:$0xf] }
 0x642   :  { %2452 = vst.msk [vmem:[#allocation2 + $0x32] sm:$0xff] %vm313_vm3, %v2444_v27  ;;  %5831 = vmatprep.mubr.msk.bf16.mxu1 %vm313_vm3, %v2323_v15  ;;  %2447 = vst.msk [vmem:[#allocation2 + $0x2] sm:$0xff] %vm313_vm3, %v2439_v20  ;;  %v2443_v56 = vadd.f32 %v2424_v4, %v2319_v7  ;;  %v2326_v53 = vpack.c.bf16 %v2322_v29, %v2321_v22  ;;  %v2445_v31 = vadd.f32 %v2428_v16, %v2321_v22  ;;  %v5343_v7 = vld [vmem:[%s7870_s6 + $0x4] ss:$0 sm:$0xff] }
 0x643   :  { %2448 = vst.msk [vmem:[#allocation2 + $0xa] sm:$0xff] %vm313_vm3, %v2440_v41  ;;  %v2446_v51 = vadd.f32 %v2430_v8, %v2322_v29  ;;  %5832 = vmatmul.mubr.msk.bf16.vlgmr.msra.gmra.mrb[8].mxu1 %vm313_vm3, %v2324_v61  ;;  %2449 = vst.msk [vmem:[#allocation2 + $0x12] sm:$0xff] %vm313_vm3, %v2441_v19  ;;  %v2670_v50 = vsel %vm361_vm2, %v5337_v46, 0  ;;  %v3032_v33 = vsel %vm361_vm2, %v5351_v14, 0  ;;  %v2876_v23 = vsel %vm361_vm2, %v309_v5, 0 }
 0x644   :  { %2450 = vst.msk [vmem:[#allocation2 + $0x1a] sm:$0xff] %vm313_vm3, %v2442_v59  ;;  %5835 = vmatprep.mubr.msk.bf16.mxu1 %vm313_vm3, %v2325_v39  ;;  %2451 = vst.msk [vmem:[#allocation2 + $0x2a] sm:$0xff] %vm313_vm3, %v2443_v56  ;;  %5870 = vmatpush3.bf16.msra.mxu1 %v2876_v23 }
 0x645   :  { %2453 = vst.msk [vmem:[#allocation2 + $0x3a] sm:$0xff] %vm313_vm3, %v2445_v31  ;;  %2454 = vst.msk [vmem:[#allocation2 + $0x42] sm:$0xff] %vm313_vm3, %v2446_v51 }
 0x649   :  { %v2469_v55 = vld [vmem:[#allocation2 + $0x2] sm:$0xff]  ;;  %v2474_v1 = vld [vmem:[#allocation2 + $0x32] sm:$0xff] }
 0x64a   :  { %v2470_v18 = vld [vmem:[#allocation2 + $0xa] sm:$0xff]  ;;  %v2471_v21 = vld [vmem:[#allocation2 + $0x12] sm:$0xff]  ;;  %v2455_v60 = vld [vmem:[#allocation2] sm:$0xff] }
 0x64b   :  { %v2477_v28 = vpack.c.bf16 %v2470_v18, %v2469_v55  ;;  %v2472_v24 = vld [vmem:[#allocation2 + $0x1a] sm:$0xff]  ;;  %5836 = vmatmul.mubr.msk.bf16.gmra.mrb[12].mxu1 %vm313_vm3, %v2326_v53  ;;  %v2473_v11 = vld [vmem:[#allocation2 + $0x2a] sm:$0xff] }
 0x64c   :  { %v2478_v6 = vpack.c.bf16 %v2472_v24, %v2471_v21  ;;  %v2479_v26 = vpack.c.bf16 %v2474_v1, %v2473_v11  ;;  %v2475_v30 = vld [vmem:[#allocation2 + $0x3a] sm:$0xff]  ;;  %v2476_v35 = vld [vmem:[#allocation2 + $0x42] sm:$0xff]  ;;  %v2457_v40 = vld [vmem:[#allocation2 + $0x10] sm:$0xff] }
 0x64d   :  { %5841 = vmatprep.mubr.msk.bf16.mxu0 %vm313_vm3, %v2477_v28  ;;  %v2456_v37 = vld [vmem:[#allocation2 + $0x8] sm:$0xff]  ;;  %v2480_v17 = vpack.c.bf16 %v2476_v35, %v2475_v30  ;;  %v2458_v44 = vld [vmem:[#allocation2 + $0x18] sm:$0xff]  ;;  %v2460_v48 = vld [vmem:[#allocation2 + $0x30] sm:$0xff] }
 0x64e   :  { %5842 = vmatmul.mubr.msk.bf16.vlgmr.msra.gmra.mrb[28].mxu0 %vm313_vm3, %v2478_v6  ;;  %v2463_v38 = vpack.c.bf16 %v2456_v37, %v2455_v60  ;;  %v2459_v47 = vld [vmem:[#allocation2 + $0x28] sm:$0xff]  ;;  %v2464_v49 = vpack.c.bf16 %v2458_v44, %v2457_v40  ;;  %v2461_v36 = vld [vmem:[#allocation2 + $0x38] sm:$0xff]  ;;  %v2462_v58 = vld [vmem:[#allocation2 + $0x40] sm:$0xff] }
 0x64f   :  { %5850 = vmatpush3.bf16.msra.mxu0 %v2576_v25  ;;  %5845 = vmatprep.mubr.msk.bf16.mxu0 %vm313_vm3, %v2479_v26  ;;  %v2465_v34 = vpack.c.bf16 %v2460_v48, %v2459_v47  ;;  %v2643_v63 = vld [vmem:[#allocation2 + $0x4] sm:$0xff]  ;;  %v2644_v0 = vld [vmem:[#allocation2 + $0xc] sm:$0xff]  ;;  %v2466_v2 = vpack.c.bf16 %v2462_v58, %v2461_v36  ;;  %v2645_v52 = vld [vmem:[#allocation2 + $0x14] sm:$0xff] }
 0x650   :  { %6158 = vmatprep.subr.msk.bf16.mxu0 %vm361_vm2, %v5337_v46  ;;  %v2651_v32 = vpack.c.bf16 %v2644_v0, %v2643_v63  ;;  %v2646_v62 = vld [vmem:[#allocation2 + $0x1c] sm:$0xff]  ;;  %v2647_v4 = vld [vmem:[#allocation2 + $0x2c] sm:$0xff]  ;;  %v2648_v9 = vld [vmem:[#allocation2 + $0x34] sm:$0xff] }
 0x651   :  { %v2652_v3 = vpack.c.bf16 %v2646_v62, %v2645_v52  ;;  %v2653_v54 = vpack.c.bf16 %v2648_v9, %v2647_v4  ;;  %v2649_v57 = vld [vmem:[#allocation2 + $0x3c] sm:$0xff]  ;;  %v2650_v10 = vld [vmem:[#allocation2 + $0x44] sm:$0xff] }
 0x652   :  { %v2654_v13 = vpack.c.bf16 %v2650_v10, %v2649_v57 }
 0x656   :  { %5846 = vmatmul.mubr.msk.bf16.gmra.mrb[32].mxu0 %vm313_vm3, %v2480_v17 }
 0x657   :  { %5851 = vmatprep.mubr.msk.bf16.mxu0 %vm313_vm3, %v2463_v38 }
 0x65e   :  { %5852 = vmatmul.mubr.msk.bf16.vlgmr.msra.gmra.mrb[28].mxu0 %vm313_vm3, %v2464_v49 }
 0x65f   :  { %5860 = vmatpush3.bf16.msra.mxu0 %v2670_v50  ;;  %5855 = vmatprep.mubr.msk.bf16.mxu0 %vm313_vm3, %v2465_v34 }
 0x660   :  { %6160 = vmatprep.subr.msk.bf16.mxu0 %vm361_vm2, %v5351_v14 }
 0x666   :  { %5856 = vmatmul.mubr.msk.bf16.gmra.mrb[32].mxu0 %vm313_vm3, %v2466_v2 }
 0x667   :  { %5861 = vmatprep.mubr.msk.bf16.mxu0 %vm313_vm3, %v2651_v32 }
 0x66e   :  { %5862 = vmatmul.mubr.msk.bf16.vlgmr.msra.gmra.mrb[28].mxu0 %vm313_vm3, %v2652_v3 }
 0x66f   :  { %5865 = vmatprep.mubr.msk.bf16.mxu0 %vm313_vm3, %v2653_v54  ;;  %5880 = vmatpush3.bf16.msra.mxu0 %v3032_v33 }
 0x670   :  { %6161 = vmatprep.subr.msk.bf16.mxu0 %vm361_vm2, %v7127_v12 }
 0x676   :  { %5866 = vmatmul.mubr.msk.bf16.gmra.mrb[32].mxu0 %vm313_vm3, %v2654_v13 }
 0x741   :  { %v5863_v22 = vpop.f32.mrb[28].mxu0 }
 0x742   :  { %v2755_v29 = vadd.f32 %v5863_v22, %v5343_v7  ;;  %v2706_v27 = vpop.f32.mrb[29].mxu0 }
 0x743   :  { %v2753_v15 = vadd.f32 %v5343_v7, %v2706_v27  ;;  %v5864_v20 = vpop.f32.mrb[30].mxu0 }
 0x744   :  { %v2756_v41 = vadd.f32 %v5864_v20, %v5343_v7  ;;  %v2709_v8 = vpop.f32.mrb[31].mxu0  ;;  %v7134_v16 = vmax.f32 %v2755_v29, 0.0 }
 0x745   :  { %v7136_v61 = vmax.f32 %v2753_v15, 0.0  ;;  %v2754_v19 = vadd.f32 %v5343_v7, %v2709_v8 }
 0x746   :  { %v7140_v39 = vmax.f32 %v2756_v41, 0.0  ;;  %v2797_v53 = vmul.f32 %v7134_v16, %v7134_v16  ;;  %v2776_v1 = vsel %vm313_vm3, %v7134_v16, 0.0 }
 0x747   :  { %v2795_v59 = vmul.f32 %v7136_v61, %v7136_v61  ;;  %v7142_v56 = vmax.f32 %v2754_v19, 0.0  ;;  %v2773_v31 = vsel %vm313_vm3, %v7136_v61, 0.0 }
 0x748   :  { %v2798_v25 = vmul.f32 %v7140_v39, %v7140_v39  ;;  %v2806_v17 = vsel %vm313_vm3, %v2797_v53, 0.0  ;;  %v2778_v38 = vsel %vm313_vm3, %v7140_v39, 0.0 }
 0x749   :  { %v2774_v51 = vsel %vm313_vm3, %v7142_v56, 0.0  ;;  %v2796_v55 = vmul.f32 %v7142_v56, %v7142_v56  ;;  %v5867_v18 = vpop.f32.mrb[32].mxu0  ;;  %v2803_v6 = vsel %vm313_vm3, %v2795_v59, 0.0 }
 0x74a   :  { %v2775_v28 = vadd.f32 %v2774_v51, %v2773_v31  ;;  %v2759_v21 = vadd.f32 %v5867_v18, %v5343_v7  ;;  %v2722_v24 = vpop.f32.mrb[33].mxu0  ;;  %v2808_v50 = vsel %vm313_vm3, %v2798_v25, 0.0 }
 0x74b   :  { %v2804_v11 = vsel %vm313_vm3, %v2796_v55, 0.0  ;;  %v2757_v26 = vadd.f32 %v5343_v7, %v2722_v24  ;;  %v5868_v46 = vpop.f32.mrb[34].mxu0 }
 0x74c   :  { %v2777_v30 = vadd.f32 %v2776_v1, %v2775_v28  ;;  %v2805_v35 = vadd.f32 %v2804_v11, %v2803_v6  ;;  %v2760_v60 = vadd.f32 %v5868_v46, %v5343_v7  ;;  %v2725_v37 = vpop.f32.mrb[35].mxu0  ;;  %v7163_v48 = vmax.f32 %v2759_v21, 0.0  ;;  %v2954_v11 = vpop.permute.xlu1 %2953  ;;  %v5344_v46 = vld [vmem:[%s7871_s7 + $0x4] sm:$0x1] }
 0x74d   :  { %v7161_v40 = vmax.f32 %v2757_v26, 0.0  ;;  %v2758_v44 = vadd.f32 %v5343_v7, %v2725_v37  ;;  %v2952_v26 = vpop.permute.xlu0 %2951 }
 0x74e   :  { %v2807_v47 = vadd.f32 %v2806_v17, %v2805_v35  ;;  %v2779_v49 = vadd.f32 %v2778_v38, %v2777_v30  ;;  %v2768_v2 = vmax.f32 %v2760_v60, 0.0  ;;  %v2801_v62 = vmul.f32 %v7163_v48, %v7163_v48  ;;  %v5345_v17 = vld [vmem:[%s7872_s8 + $0x4] sm:$0x1] }
 0x74f   :  { %v2780_v34 = vsel %vm313_vm3, %v7161_v40, 0.0  ;;  %v2799_v36 = vmul.f32 %v7161_v40, %v7161_v40  ;;  %v2766_v58 = vmax.f32 %v2758_v44, 0.0  ;;  %v2784_v54 = vsel %vm313_vm3, %v7163_v48, 0.0 }
 0x750   :  { %v2781_v63 = vadd.f32 %v2780_v34, %v2779_v49  ;;  %v2809_v0 = vadd.f32 %v2808_v50, %v2807_v47  ;;  %v2802_v57 = vmul.f32 %v2768_v2, %v2768_v2  ;;  %v2786_v14 = vsel %vm313_vm3, %v2768_v2, 0.0  ;;  %v2958_v35 = vpop.permute.xlu1 %2957 }
 0x751   :  { %v2810_v32 = vsel %vm313_vm3, %v2799_v36, 0.0  ;;  %v2782_v52 = vsel %vm313_vm3, %v2766_v58, 0.0  ;;  %v2800_v3 = vmul.f32 %v2766_v58, %v2766_v58  ;;  %v2814_v33 = vsel %vm313_vm3, %v2801_v62, 0.0  ;;  %v2956_v60 = vpop.permute.xlu0 %2955 }
 0x752   :  { %v2811_v4 = vadd.f32 %v2810_v32, %v2809_v0  ;;  %v2783_v9 = vadd.f32 %v2782_v52, %v2781_v63  ;;  %v2816_v22 = vsel %vm313_vm3, %v2802_v57, 0.0 }
 0x753   :  { %v2812_v13 = vsel %vm313_vm3, %v2800_v3, 0.0 }
 0x754   :  { %v2785_v10 = vadd.f32 %v2784_v54, %v2783_v9  ;;  %v2813_v5 = vadd.f32 %v2812_v13, %v2811_v4  ;;  %v2962_v36 = vpop.permute.xlu1 %2961 }
 0x755   :  { %v2960_v63 = vpop.permute.xlu0 %2959 }
 0x756   :  { %v2787_v23 = vadd.f32 %v2786_v14, %v2785_v10  ;;  %v2815_v7 = vadd.f32 %v2814_v33, %v2813_v5 }
 0x758   :  { %v2788_v29 = vrot.slane %v2787_v23, 4  ;;  %v2817_v27 = vadd.f32 %v2816_v22, %v2815_v7 }
 0x75a   :  { %v2789_v15 = vadd.f32 %v2788_v29, %v2787_v23  ;;  %v2818_v20 = vrot.slane %v2817_v27, 4  ;;  %v2964_v23 = vpop.permute.xlu0 %2963 }
 0x75c   :  { %v2790_v41 = vrot.slane %v2789_v15, 2  ;;  %v2819_v8 = vadd.f32 %v2818_v20, %v2817_v27 }
 0x75e   :  { %v2791_v19 = vadd.f32 %v2790_v41, %v2789_v15  ;;  %v2820_v59 = vrot.slane %v2819_v8, 2 }
 0x760   :  { %v2792_v53 = vrot.slane %v2791_v19, 1  ;;  %v2821_v31 = vadd.f32 %v2820_v59, %v2819_v8 }
 0x762   :  { %v2793_v51 = vadd.f32 %v2792_v53, %v2791_v19  ;;  %v2822_v55 = vrot.slane %v2821_v31, 1 }
 0x764   :  { %v2794_v18 = vmul.f32 0.015625, %v2793_v51  ;;  %v2823_v1 = vadd.f32 %v2822_v55, %v2821_v31  ;;  %v3112_v51 = vsel %vm361_vm2, %v7127_v12, 0 }
 0x766   :  { %v2825_v28 = vmul.f32 %v2794_v18, %v2794_v18  ;;  %v2824_v21 = vmul.f32 0.015625, %v2823_v1  ;;  %v5360_v1 = vld [vmem:[%s7869_s5 + $0x44] sm:$0xf] }
 0x768   :  { %v2826_v24 = vsub.f32 %v2824_v21, %v2825_v28 }
 0x76a   :  { %v2827_v6 = vmax.f32 %v2826_v24, 0.0 }
 0x76c   :  { %v2828_v25 = vadd.f32 1e-05, %v2827_v6 }
 0x76e   :  { %6256 = vrsqrt.f32 %v2828_v25 }
 0x778   :  { %v6257_v30 = vpop.eup %6256 }
 0x779   :  { %v2830_v37 = vmul.f32 %v6257_v30, %v5344_v46 }
 0x77b   :  { %v2831_v38 = vmul.f32 %v2830_v37, %v2794_v18  ;;  %v2836_v44 = vrot.slane %v2830_v37, %v6495_v45 }
 0x77d   :  { %v2832_v47 = vsub.f32 %v5345_v17, %v2831_v38  ;;  %v2842_v49 = vmul.f32 %v2836_v44, %v2766_v58  ;;  %v2837_v50 = vmul.f32 %v2836_v44, %v7136_v61  ;;  %v2838_v34 = vmul.f32 %v2836_v44, %v7142_v56 }
 0x77e   :  { %v2839_v0 = vmul.f32 %v2836_v44, %v7134_v16  ;;  %v2840_v32 = vmul.f32 %v2836_v44, %v7140_v39  ;;  %v2841_v52 = vmul.f32 %v2836_v44, %v7161_v40  ;;  %v2843_v62 = vmul.f32 %v2836_v44, %v7163_v48  ;;  %v2966_v39 = vpop.permute.xlu1 %2965 }
 0x77f   :  { %v2849_v4 = vrot.slane %v2832_v47, %v6495_v45  ;;  %v2844_v9 = vmul.f32 %v2836_v44, %v2768_v2 }
 0x781   :  { %v2856_v3 = vadd.f32 %v2849_v4, %v2842_v49  ;;  %v2851_v54 = vadd.f32 %v2849_v4, %v2837_v50  ;;  %v2852_v58 = vadd.f32 %v2849_v4, %v2838_v34  ;;  %v2853_v57 = vadd.f32 %v2849_v4, %v2839_v0 }
 0x782   :  { %v2854_v61 = vadd.f32 %v2849_v4, %v2840_v32  ;;  %v2855_v10 = vadd.f32 %v2849_v4, %v2841_v52  ;;  %v2857_v56 = vadd.f32 %v2849_v4, %v2843_v62  ;;  %v2858_v13 = vadd.f32 %v2849_v4, %v2844_v9 }
 0x783   :  { %v2980_v14 = vadd.f32 %v2962_v36, %v2856_v3  ;;  %v2859_v5 = vpack.c.bf16 %v2852_v58, %v2851_v54  ;;  %v2975_v16 = vadd.f32 %v2952_v26, %v2851_v54  ;;  %v2976_v33 = vadd.f32 %v2954_v11, %v2852_v58  ;;  %v7231_v54 = vld [vmem:[%s7869_s5 + $0x4c] sm:$0xf] }
 0x784   :  { %v2860_v40 = vpack.c.bf16 %v2854_v61, %v2853_v57  ;;  %v2977_v7 = vadd.f32 %v2956_v60, %v2853_v57  ;;  %v2978_v48 = vadd.f32 %v2958_v35, %v2854_v61  ;;  %v2861_v22 = vpack.c.bf16 %v2856_v3, %v2855_v10  ;;  %v310_v3 = vld [vmem:[%s7873_s9 + $0x14] sm:$0xf]  ;;  %v5366_v57 = vld [vmem:[%s7870_s6 + $0x5] ss:$0 sm:$0xff] }
 0x785   :  { %2988 = vst.msk [vmem:[#allocation2 + $0x32] sm:$0xff] %vm313_vm3, %v2980_v14  ;;  %5871 = vmatprep.mubr.msk.bf16.mxu1 %vm313_vm3, %v2859_v5  ;;  %2983 = vst.msk [vmem:[#allocation2 + $0x2] sm:$0xff] %vm313_vm3, %v2975_v16  ;;  %v2979_v2 = vadd.f32 %v2960_v63, %v2855_v10  ;;  %v2862_v29 = vpack.c.bf16 %v2858_v13, %v2857_v56  ;;  %v2981_v27 = vadd.f32 %v2964_v23, %v2857_v56 }
 0x786   :  { %2984 = vst.msk [vmem:[#allocation2 + $0xa] sm:$0xff] %vm313_vm3, %v2976_v33  ;;  %v2982_v15 = vadd.f32 %v2966_v39, %v2858_v13  ;;  %5872 = vmatmul.mubr.msk.bf16.vlgmr.msra.gmra.mrb[8].mxu1 %vm313_vm3, %v2860_v40  ;;  %2985 = vst.msk [vmem:[#allocation2 + $0x12] sm:$0xff] %vm313_vm3, %v2977_v7  ;;  %v3206_v60 = vsel %vm361_vm2, %v5360_v1, 0  ;;  %6163 = vmatprep.subr.msk.bf16.mxu1 %vm361_vm2, %v310_v3  ;;  %v3412_v58 = vsel %vm361_vm2, %v310_v3, 0 }
 0x787   :  { %2986 = vst.msk [vmem:[#allocation2 + $0x1a] sm:$0xff] %vm313_vm3, %v2978_v48  ;;  %5875 = vmatprep.mubr.msk.bf16.mxu1 %vm313_vm3, %v2861_v22  ;;  %2987 = vst.msk [vmem:[#allocation2 + $0x2a] sm:$0xff] %vm313_vm3, %v2979_v2  ;;  %5910 = vmatpush3.bf16.msra.mxu1 %v3412_v58 }
 0x788   :  { %2989 = vst.msk [vmem:[#allocation2 + $0x3a] sm:$0xff] %vm313_vm3, %v2981_v27  ;;  %2990 = vst.msk [vmem:[#allocation2 + $0x42] sm:$0xff] %vm313_vm3, %v2982_v15  ;;  %6164 = vmatprep.subr.msk.bf16.mxu1 %vm361_vm2, %v7231_v54 }
 0x78c   :  { %v3005_v20 = vld [vmem:[#allocation2 + $0x2] sm:$0xff]  ;;  %v3010_v8 = vld [vmem:[#allocation2 + $0x32] sm:$0xff] }
 0x78d   :  { %v3006_v41 = vld [vmem:[#allocation2 + $0xa] sm:$0xff]  ;;  %v3007_v59 = vld [vmem:[#allocation2 + $0x12] sm:$0xff]  ;;  %v2991_v24 = vld [vmem:[#allocation2] sm:$0xff] }
 0x78e   :  { %v3013_v19 = vpack.c.bf16 %v3006_v41, %v3005_v20  ;;  %v3008_v53 = vld [vmem:[#allocation2 + $0x1a] sm:$0xff]  ;;  %5876 = vmatmul.mubr.msk.bf16.gmra.mrb[12].mxu1 %vm313_vm3, %v2862_v29  ;;  %v3009_v55 = vld [vmem:[#allocation2 + $0x2a] sm:$0xff] }
 0x78f   :  { %v3014_v31 = vpack.c.bf16 %v3008_v53, %v3007_v59  ;;  %v3015_v18 = vpack.c.bf16 %v3010_v8, %v3009_v55  ;;  %v3011_v28 = vld [vmem:[#allocation2 + $0x3a] sm:$0xff]  ;;  %v3012_v21 = vld [vmem:[#allocation2 + $0x42] sm:$0xff]  ;;  %v2993_v11 = vld [vmem:[#allocation2 + $0x10] sm:$0xff] }
 0x790   :  { %5881 = vmatprep.mubr.msk.bf16.mxu0 %vm313_vm3, %v3013_v19  ;;  %v2992_v6 = vld [vmem:[#allocation2 + $0x8] sm:$0xff]  ;;  %v3016_v12 = vpack.c.bf16 %v3012_v21, %v3011_v28  ;;  %v2994_v26 = vld [vmem:[#allocation2 + $0x18] sm:$0xff]  ;;  %v2996_v30 = vld [vmem:[#allocation2 + $0x30] sm:$0xff] }
 0x791   :  { %5882 = vmatmul.mubr.msk.bf16.vlgmr.msra.gmra.mrb[36].mxu0 %vm313_vm3, %v3014_v31  ;;  %v2999_v25 = vpack.c.bf16 %v2992_v6, %v2991_v24  ;;  %v2995_v46 = vld [vmem:[#allocation2 + $0x28] sm:$0xff]  ;;  %v3000_v35 = vpack.c.bf16 %v2994_v26, %v2993_v11  ;;  %v2997_v17 = vld [vmem:[#allocation2 + $0x38] sm:$0xff]  ;;  %v2998_v38 = vld [vmem:[#allocation2 + $0x40] sm:$0xff] }
 0x792   :  { %5890 = vmatpush3.bf16.msra.mxu0 %v3112_v51  ;;  %5885 = vmatprep.mubr.msk.bf16.mxu0 %vm313_vm3, %v3015_v18  ;;  %v3001_v37 = vpack.c.bf16 %v2996_v30, %v2995_v46  ;;  %v3179_v44 = vld [vmem:[#allocation2 + $0x4] sm:$0xff]  ;;  %v3180_v47 = vld [vmem:[#allocation2 + $0xc] sm:$0xff]  ;;  %v3002_v49 = vpack.c.bf16 %v2998_v38, %v2997_v17  ;;  %v3181_v34 = vld [vmem:[#allocation2 + $0x14] sm:$0xff] }
 0x793   :  { %6162 = vmatprep.subr.msk.bf16.mxu0 %vm361_vm2, %v5360_v1  ;;  %v3187_v50 = vpack.c.bf16 %v3180_v47, %v3179_v44  ;;  %v3182_v36 = vld [vmem:[#allocation2 + $0x1c] sm:$0xff]  ;;  %v3183_v63 = vld [vmem:[#allocation2 + $0x2c] sm:$0xff]  ;;  %v3184_v0 = vld [vmem:[#allocation2 + $0x34] sm:$0xff] }
 0x794   :  { %v3188_v32 = vpack.c.bf16 %v3182_v36, %v3181_v34  ;;  %v3189_v52 = vpack.c.bf16 %v3184_v0, %v3183_v63  ;;  %v3185_v62 = vld [vmem:[#allocation2 + $0x3c] sm:$0xff]  ;;  %v3186_v4 = vld [vmem:[#allocation2 + $0x44] sm:$0xff] }
 0x795   :  { %v3190_v9 = vpack.c.bf16 %v3186_v4, %v3185_v62 }
 0x799   :  { %5886 = vmatmul.mubr.msk.bf16.gmra.mrb[40].mxu0 %vm313_vm3, %v3016_v12 }
 0x79a   :  { %5891 = vmatprep.mubr.msk.bf16.mxu0 %vm313_vm3, %v2999_v25 }
 0x7a1   :  { %5892 = vmatmul.mubr.msk.bf16.vlgmr.msra.gmra.mrb[36].mxu0 %vm313_vm3, %v3000_v35 }
 0x7a2   :  { %5900 = vmatpush3.bf16.msra.mxu0 %v3206_v60  ;;  %5895 = vmatprep.mubr.msk.bf16.mxu0 %vm313_vm3, %v3001_v37 }
 0x7a9   :  { %5896 = vmatmul.mubr.msk.bf16.gmra.mrb[40].mxu0 %vm313_vm3, %v3002_v49 }
 0x7aa   :  { %5901 = vmatprep.mubr.msk.bf16.mxu0 %vm313_vm3, %v3187_v50 }
 0x7b1   :  { %5902 = vmatmul.mubr.msk.bf16.vlgmr.msra.gmra.mrb[36].mxu0 %vm313_vm3, %v3188_v32 }
 0x7b2   :  { %5905 = vmatprep.mubr.msk.bf16.mxu0 %vm313_vm3, %v3189_v52 }
 0x7b9   :  { %5906 = vmatmul.mubr.msk.bf16.gmra.mrb[40].mxu0 %vm313_vm3, %v3190_v9 }
 0x884   :  { %v5903_v61 = vpop.f32.mrb[36].mxu0 }
 0x885   :  { %v3291_v10 = vadd.f32 %v5903_v61, %v5366_v57  ;;  %v3242_v56 = vpop.f32.mrb[37].mxu0 }
 0x886   :  { %v3289_v13 = vadd.f32 %v5366_v57, %v3242_v56  ;;  %v5904_v14 = vpop.f32.mrb[38].mxu0 }
 0x887   :  { %v3292_v5 = vadd.f32 %v5904_v14, %v5366_v57  ;;  %v3245_v16 = vpop.f32.mrb[39].mxu0  ;;  %v7240_v33 = vmax.f32 %v3291_v10, 0.0 }
 0x888   :  { %v7242_v39 = vmax.f32 %v3289_v13, 0.0  ;;  %v3290_v23 = vadd.f32 %v5366_v57, %v3245_v16 }
 0x889   :  { %v7246_v7 = vmax.f32 %v3292_v5, 0.0  ;;  %v3333_v22 = vmul.f32 %v7240_v33, %v7240_v33  ;;  %v3312_v20 = vsel %vm313_vm3, %v7240_v33, 0.0 }
 0x88a   :  { %v3331_v40 = vmul.f32 %v7242_v39, %v7242_v39  ;;  %v7248_v48 = vmax.f32 %v3290_v23, 0.0  ;;  %v3309_v2 = vsel %vm313_vm3, %v7242_v39, 0.0 }
 0x88b   :  { %v3334_v53 = vmul.f32 %v7246_v7, %v7246_v7  ;;  %v3342_v24 = vsel %vm313_vm3, %v3333_v22, 0.0  ;;  %v3314_v6 = vsel %vm313_vm3, %v7246_v7, 0.0 }
 0x88c   :  { %v3310_v29 = vsel %vm313_vm3, %v7248_v48, 0.0  ;;  %v3332_v27 = vmul.f32 %v7248_v48, %v7248_v48  ;;  %v5907_v15 = vpop.f32.mrb[40].mxu0  ;;  %v3339_v59 = vsel %vm313_vm3, %v3331_v40, 0.0 }
 0x88d   :  { %v3311_v41 = vadd.f32 %v3310_v29, %v3309_v2  ;;  %v3295_v8 = vadd.f32 %v5907_v15, %v5366_v57  ;;  %v3258_v19 = vpop.f32.mrb[41].mxu0  ;;  %v3344_v30 = vsel %vm313_vm3, %v3334_v53, 0.0 }
 0x88e   :  { %v3340_v31 = vsel %vm313_vm3, %v3332_v27, 0.0  ;;  %v3293_v51 = vadd.f32 %v5366_v57, %v3258_v19  ;;  %v5908_v55 = vpop.f32.mrb[42].mxu0 }
 0x88f   :  { %v3313_v18 = vadd.f32 %v3312_v20, %v3311_v41  ;;  %v3341_v1 = vadd.f32 %v3340_v31, %v3339_v59  ;;  %v3296_v28 = vadd.f32 %v5908_v55, %v5366_v57  ;;  %v3261_v21 = vpop.f32.mrb[43].mxu0  ;;  %v7269_v26 = vmax.f32 %v3295_v8, 0.0  ;;  %v3490_v31 = vpop.permute.xlu1 %3489  ;;  %v5367_v55 = vld [vmem:[%s7871_s7 + $0x5] sm:$0x1] }
 0x890   :  { %v7267_v12 = vmax.f32 %v3293_v51, 0.0  ;;  %v3294_v25 = vadd.f32 %v5366_v57, %v3261_v21  ;;  %v3488_v51 = vpop.permute.xlu0 %3487 }
 0x891   :  { %v3343_v11 = vadd.f32 %v3342_v24, %v3341_v1  ;;  %v3315_v46 = vadd.f32 %v3314_v6, %v3313_v18  ;;  %v3304_v44 = vmax.f32 %v3296_v28, 0.0  ;;  %v3337_v50 = vmul.f32 %v7269_v26, %v7269_v26  ;;  %v5368_v24 = vld [vmem:[%s7872_s8 + $0x5] sm:$0x1] }
 0x892   :  { %v3316_v35 = vsel %vm313_vm3, %v7267_v12, 0.0  ;;  %v3335_v60 = vmul.f32 %v7267_v12, %v7267_v12  ;;  %v3302_v37 = vmax.f32 %v3294_v25, 0.0  ;;  %v3320_v0 = vsel %vm313_vm3, %v7269_v26, 0.0 }
 0x893   :  { %v3317_v17 = vadd.f32 %v3316_v35, %v3315_v46  ;;  %v3345_v38 = vadd.f32 %v3344_v30, %v3343_v11  ;;  %v3338_v32 = vmul.f32 %v3304_v44, %v3304_v44  ;;  %v3322_v4 = vsel %vm313_vm3, %v3304_v44, 0.0  ;;  %v3494_v1 = vpop.permute.xlu1 %3493 }
 0x894   :  { %v3346_v47 = vsel %vm313_vm3, %v3335_v60, 0.0  ;;  %v3318_v49 = vsel %vm313_vm3, %v3302_v37, 0.0  ;;  %v3336_v63 = vmul.f32 %v3302_v37, %v3302_v37  ;;  %v3350_v3 = vsel %vm313_vm3, %v3337_v50, 0.0  ;;  %v3492_v28 = vpop.permute.xlu0 %3491 }
 0x895   :  { %v3347_v34 = vadd.f32 %v3346_v47, %v3345_v38  ;;  %v3319_v36 = vadd.f32 %v3318_v49, %v3317_v17  ;;  %v3352_v61 = vsel %vm313_vm3, %v3338_v32, 0.0 }
 0x896   :  { %v3348_v62 = vsel %vm313_vm3, %v3336_v63, 0.0 }
 0x897   :  { %v3321_v52 = vadd.f32 %v3320_v0, %v3319_v36  ;;  %v3349_v9 = vadd.f32 %v3348_v62, %v3347_v34  ;;  %v3498_v60 = vpop.permute.xlu1 %3497 }
 0x898   :  { %v3496_v17 = vpop.permute.xlu0 %3495 }
 0x899   :  { %v3323_v58 = vadd.f32 %v3322_v4, %v3321_v52  ;;  %v3351_v57 = vadd.f32 %v3350_v3, %v3349_v9 }
 0x89b   :  { %v3324_v10 = vrot.slane %v3323_v58, 4  ;;  %v3353_v56 = vadd.f32 %v3352_v61, %v3351_v57  ;;  %v3502_v3 = vpop.permute.xlu1 %3501 }
 0x89d   :  { %v3325_v13 = vadd.f32 %v3324_v10, %v3323_v58  ;;  %v3354_v14 = vrot.slane %v3353_v56, 4 }
 0x89f   :  { %v3326_v5 = vrot.slane %v3325_v13, 2  ;;  %v3355_v16 = vadd.f32 %v3354_v14, %v3353_v56  ;;  %v5373_v14 = vld [vmem:[%s7869_s5 + $0x48] sm:$0xf] }
 0x8a1   :  { %v3327_v23 = vadd.f32 %v3326_v5, %v3325_v13  ;;  %v3356_v40 = vrot.slane %v3355_v16, 2 }
 0x8a3   :  { %v3328_v22 = vrot.slane %v3327_v23, 1  ;;  %v3357_v2 = vadd.f32 %v3356_v40, %v3355_v16 }
 0x8a5   :  { %v3329_v29 = vadd.f32 %v3328_v22, %v3327_v23  ;;  %v3358_v27 = vrot.slane %v3357_v2, 1 }
 0x8a7   :  { %v3330_v15 = vmul.f32 0.015625, %v3329_v29  ;;  %v3359_v20 = vadd.f32 %v3358_v27, %v3357_v2 }
 0x8a9   :  { %v3361_v41 = vmul.f32 %v3330_v15, %v3330_v15  ;;  %v3360_v8 = vmul.f32 0.015625, %v3359_v20 }
 0x8ab   :  { %v3362_v19 = vsub.f32 %v3360_v8, %v3361_v41  ;;  %v5383_v41 = vld [vmem:[%s7869_s5 + $0x50] sm:$0xf] }
 0x8ad   :  { %v3363_v59 = vmax.f32 %v3362_v19, 0.0 }
 0x8af   :  { %v3364_v53 = vadd.f32 1e-05, %v3363_v59 }
 0x8b1   :  { %6258 = vrsqrt.f32 %v3364_v53 }
 0x8bb   :  { %v6259_v18 = vpop.eup %6258 }
 0x8bc   :  { %v3366_v21 = vmul.f32 %v6259_v18, %v5367_v55 }
 0x8be   :  { %v3367_v6 = vmul.f32 %v3366_v21, %v3330_v15  ;;  %v3372_v25 = vrot.slane %v3366_v21, %v6495_v45  ;;  %v3648_v15 = vsel %vm361_vm2, %v5373_v14, 0 }
 0x8c0   :  { %v3368_v11 = vsub.f32 %v5368_v24, %v3367_v6  ;;  %v3378_v46 = vmul.f32 %v3372_v25, %v3302_v37  ;;  %v3373_v30 = vmul.f32 %v3372_v25, %v7242_v39  ;;  %v3374_v35 = vmul.f32 %v3372_v25, %v7248_v48 }
 0x8c1   :  { %v3375_v38 = vmul.f32 %v3372_v25, %v7240_v33  ;;  %v3376_v47 = vmul.f32 %v3372_v25, %v7246_v7  ;;  %v3377_v49 = vmul.f32 %v3372_v25, %v7267_v12  ;;  %v3379_v50 = vmul.f32 %v3372_v25, %v7269_v26  ;;  %v3500_v26 = vpop.permute.xlu0 %3499 }
 0x8c2   :  { %v3385_v34 = vrot.slane %v3368_v11, %v6495_v45  ;;  %v3380_v36 = vmul.f32 %v3372_v25, %v3304_v44  ;;  %v3568_v37 = vsel %vm361_vm2, %v7231_v54, 0  ;;  %v3742_v24 = vsel %vm361_vm2, %v5383_v41, 0 }
 0x8c4   :  { %v3392_v63 = vadd.f32 %v3385_v34, %v3378_v46  ;;  %v3387_v39 = vadd.f32 %v3385_v34, %v3373_v30  ;;  %v3388_v0 = vadd.f32 %v3385_v34, %v3374_v35  ;;  %v3389_v48 = vadd.f32 %v3385_v34, %v3375_v38 }
 0x8c5   :  { %v3390_v32 = vadd.f32 %v3385_v34, %v3376_v47  ;;  %v3391_v52 = vadd.f32 %v3385_v34, %v3377_v49  ;;  %v3393_v62 = vadd.f32 %v3385_v34, %v3379_v50  ;;  %v3394_v33 = vadd.f32 %v3385_v34, %v3380_v36 }
 0x8c6   :  { %v3516_v4 = vadd.f32 %v3498_v60, %v3392_v63  ;;  %v3395_v7 = vpack.c.bf16 %v3388_v0, %v3387_v39  ;;  %v3511_v9 = vadd.f32 %v3488_v51, %v3387_v39  ;;  %v3512_v12 = vadd.f32 %v3490_v31, %v3388_v0  ;;  %v311_v39 = vld [vmem:[%s7873_s9 + $0x18] sm:$0xf] }
 0x8c7   :  { %v3396_v58 = vpack.c.bf16 %v3390_v32, %v3389_v48  ;;  %v3513_v57 = vadd.f32 %v3492_v28, %v3389_v48  ;;  %v3514_v44 = vadd.f32 %v3494_v1, %v3390_v32  ;;  %v3397_v61 = vpack.c.bf16 %v3392_v63, %v3391_v52  ;;  %v7344_v48 = vld [vmem:[%s7873_s9 + $0x1c] sm:$0xf]  ;;  %v5389_v32 = vld [vmem:[%s7870_s6 + $0x6] ss:$0 sm:$0xff]  ;;  %s7736_s6 = sld [smem:[#allocation3 + $0x82]]  ;;  %s7738_s9 = sld [smem:[#allocation3 + $0x81]] }
 0x8c8   :  { %3524 = vst.msk [vmem:[#allocation2 + $0x32] sm:$0xff] %vm313_vm3, %v3516_v4  ;;  %5911 = vmatprep.mubr.msk.bf16.mxu1 %vm313_vm3, %v3395_v7  ;;  %3519 = vst.msk [vmem:[#allocation2 + $0x2] sm:$0xff] %vm313_vm3, %v3511_v9  ;;  %v3515_v54 = vadd.f32 %v3496_v17, %v3391_v52  ;;  %v3398_v10 = vpack.c.bf16 %v3394_v33, %v3393_v62  ;;  %v3517_v56 = vadd.f32 %v3500_v26, %v3393_v62 }
 0x8c9   :  { %3520 = vst.msk [vmem:[#allocation2 + $0xa] sm:$0xff] %vm313_vm3, %v3512_v12  ;;  %v3518_v13 = vadd.f32 %v3502_v3, %v3394_v33  ;;  %5912 = vmatmul.mubr.msk.bf16.vlgmr.msra.gmra.mrb[8].mxu1 %vm313_vm3, %v3396_v58  ;;  %3521 = vst.msk [vmem:[#allocation2 + $0x12] sm:$0xff] %vm313_vm3, %v3513_v57  ;;  %v3948_v0 = vsel %vm361_vm2, %v311_v39, 0 }
 0x8ca   :  { %3522 = vst.msk [vmem:[#allocation2 + $0x1a] sm:$0xff] %vm313_vm3, %v3514_v44  ;;  %5920 = vmatpush3.bf16.msra.mxu1 %v3568_v37  ;;  %5915 = vmatprep.mubr.msk.bf16.mxu1 %vm313_vm3, %v3397_v61  ;;  %3523 = vst.msk [vmem:[#allocation2 + $0x2a] sm:$0xff] %vm313_vm3, %v3515_v54 }
 0x8cb   :  { %3525 = vst.msk [vmem:[#allocation2 + $0x3a] sm:$0xff] %vm313_vm3, %v3517_v56  ;;  %3526 = vst.msk [vmem:[#allocation2 + $0x42] sm:$0xff] %vm313_vm3, %v3518_v13  ;;  %6165 = vmatprep.subr.msk.bf16.mxu1 %vm361_vm2, %v5373_v14 }
 0x8cf   :  { %v3541_v5 = vld [vmem:[#allocation2 + $0x2] sm:$0xff]  ;;  %v3546_v29 = vld [vmem:[#allocation2 + $0x32] sm:$0xff] }
 0x8d0   :  { %v3542_v16 = vld [vmem:[#allocation2 + $0xa] sm:$0xff]  ;;  %v3543_v40 = vld [vmem:[#allocation2 + $0x12] sm:$0xff]  ;;  %v3527_v59 = vld [vmem:[#allocation2] sm:$0xff] }
 0x8d1   :  { %v3549_v23 = vpack.c.bf16 %v3542_v16, %v3541_v5  ;;  %5916 = vmatmul.mubr.msk.bf16.gmra.mrb[12].mxu1 %vm313_vm3, %v3398_v10  ;;  %v3544_v22 = vld [vmem:[#allocation2 + $0x1a] sm:$0xff]  ;;  %v3545_v2 = vld [vmem:[#allocation2 + $0x2a] sm:$0xff] }
 0x8d2   :  { %v3550_v27 = vpack.c.bf16 %v3544_v22, %v3543_v40  ;;  %v3551_v20 = vpack.c.bf16 %v3546_v29, %v3545_v2  ;;  %v3547_v8 = vld [vmem:[#allocation2 + $0x3a] sm:$0xff]  ;;  %v3548_v19 = vld [vmem:[#allocation2 + $0x42] sm:$0xff]  ;;  %v3529_v55 = vld [vmem:[#allocation2 + $0x10] sm:$0xff] }
 0x8d3   :  { %5921 = vmatprep.mubr.msk.bf16.mxu1 %vm313_vm3, %v3549_v23  ;;  %v3528_v53 = vld [vmem:[#allocation2 + $0x8] sm:$0xff]  ;;  %v3552_v31 = vpack.c.bf16 %v3548_v19, %v3547_v8  ;;  %v3530_v18 = vld [vmem:[#allocation2 + $0x18] sm:$0xff]  ;;  %v3532_v28 = vld [vmem:[#allocation2 + $0x30] sm:$0xff] }
 0x8d4   :  { %v3535_v51 = vpack.c.bf16 %v3528_v53, %v3527_v59  ;;  %v3531_v1 = vld [vmem:[#allocation2 + $0x28] sm:$0xff]  ;;  %v3536_v21 = vpack.c.bf16 %v3530_v18, %v3529_v55  ;;  %v3533_v25 = vld [vmem:[#allocation2 + $0x38] sm:$0xff]  ;;  %v3534_v11 = vld [vmem:[#allocation2 + $0x40] sm:$0xff] }
 0x8d5   :  { %v3537_v6 = vpack.c.bf16 %v3532_v28, %v3531_v1  ;;  %v3715_v46 = vld [vmem:[#allocation2 + $0x4] sm:$0xff]  ;;  %v3716_v30 = vld [vmem:[#allocation2 + $0xc] sm:$0xff]  ;;  %v3538_v35 = vpack.c.bf16 %v3534_v11, %v3533_v25  ;;  %v3717_v17 = vld [vmem:[#allocation2 + $0x14] sm:$0xff] }
 0x8d6   :  { %v3723_v60 = vpack.c.bf16 %v3716_v30, %v3715_v46  ;;  %v3718_v38 = vld [vmem:[#allocation2 + $0x1c] sm:$0xff]  ;;  %v3719_v47 = vld [vmem:[#allocation2 + $0x2c] sm:$0xff]  ;;  %v3720_v49 = vld [vmem:[#allocation2 + $0x34] sm:$0xff] }
 0x8d7   :  { %v3724_v50 = vpack.c.bf16 %v3718_v38, %v3717_v17  ;;  %v3725_v34 = vpack.c.bf16 %v3720_v49, %v3719_v47  ;;  %v3721_v36 = vld [vmem:[#allocation2 + $0x3c] sm:$0xff]  ;;  %v3722_v37 = vld [vmem:[#allocation2 + $0x44] sm:$0xff] }
 0x8d8   :  { %v3726_v63 = vpack.c.bf16 %v3722_v37, %v3721_v36 }
 0x8d9   :  { %5922 = vmatmul.mubr.msk.bf16.vlgmr.msra.gmra.mrb[24].mxu1 %vm313_vm3, %v3550_v27 }
 0x8da   :  { %5930 = vmatpush3.bf16.msra.mxu1 %v3648_v15  ;;  %5925 = vmatprep.mubr.msk.bf16.mxu1 %vm313_vm3, %v3551_v20 }
 0x8db   :  { %6166 = vmatprep.subr.msk.bf16.mxu1 %vm361_vm2, %v5383_v41 }
 0x8e1   :  { %5926 = vmatmul.mubr.msk.bf16.gmra.mrb[28].mxu1 %vm313_vm3, %v3552_v31 }
 0x8e2   :  { %5931 = vmatprep.mubr.msk.bf16.mxu1 %vm313_vm3, %v3535_v51 }
 0x8e9   :  { %5932 = vmatmul.mubr.msk.bf16.vlgmr.msra.gmra.mrb[24].mxu1 %vm313_vm3, %v3536_v21 }
 0x8ea   :  { %5940 = vmatpush3.bf16.msra.mxu1 %v3742_v24  ;;  %5935 = vmatprep.mubr.msk.bf16.mxu1 %vm313_vm3, %v3537_v6 }
 0x8eb   :  { %6167 = vmatprep.subr.msk.bf16.mxu1 %vm361_vm2, %v311_v39 }
 0x8f1   :  { %5936 = vmatmul.mubr.msk.bf16.gmra.mrb[28].mxu1 %vm313_vm3, %v3538_v35 }
 0x8f2   :  { %5941 = vmatprep.mubr.msk.bf16.mxu1 %vm313_vm3, %v3723_v60 }
 0x8f9   :  { %5942 = vmatmul.mubr.msk.bf16.vlgmr.msra.gmra.mrb[24].mxu1 %vm313_vm3, %v3724_v50 }
 0x8fa   :  { %5945 = vmatprep.mubr.msk.bf16.mxu1 %vm313_vm3, %v3725_v34  ;;  %5950 = vmatpush3.bf16.msra.mxu1 %v3948_v0 }
 0x8fb   :  { %6168 = vmatprep.subr.msk.bf16.mxu1 %vm361_vm2, %v7344_v48 }
 0x901   :  { %5946 = vmatmul.mubr.msk.bf16.gmra.mrb[28].mxu1 %vm313_vm3, %v3726_v63 }
 0x9cc   :  { %v5943_v52 = vpop.f32.mrb[24].mxu1 }
 0x9cd   :  { %v3827_v62 = vadd.f32 %v5943_v52, %v5389_v32  ;;  %v3778_v33 = vpop.f32.mrb[25].mxu1 }
 0x9ce   :  { %v3825_v4 = vadd.f32 %v5389_v32, %v3778_v33  ;;  %v5944_v7 = vpop.f32.mrb[26].mxu1 }
 0x9cf   :  { %v3828_v9 = vadd.f32 %v5944_v7, %v5389_v32  ;;  %v3781_v12 = vpop.f32.mrb[27].mxu1  ;;  %v7351_v3 = vmax.f32 %v3827_v62, 0.0 }
 0x9d0   :  { %v7353_v26 = vmax.f32 %v3825_v4, 0.0  ;;  %v3826_v58 = vadd.f32 %v5389_v32, %v3781_v12 }
 0x9d1   :  { %v7357_v44 = vmax.f32 %v3828_v9, 0.0  ;;  %v3869_v54 = vmul.f32 %v7351_v3, %v7351_v3  ;;  %v3848_v5 = vsel %vm313_vm3, %v7351_v3, 0.0 }
 0x9d2   :  { %v3867_v57 = vmul.f32 %v7353_v26, %v7353_v26  ;;  %v7359_v61 = vmax.f32 %v3826_v58, 0.0  ;;  %v3845_v10 = vsel %vm313_vm3, %v7353_v26, 0.0 }
 0x9d3   :  { %v3870_v2 = vmul.f32 %v7357_v44, %v7357_v44  ;;  %v3878_v59 = vsel %vm313_vm3, %v3869_v54, 0.0  ;;  %v3850_v53 = vsel %vm313_vm3, %v7357_v44, 0.0 }
 0x9d4   :  { %v3846_v56 = vsel %vm313_vm3, %v7359_v61, 0.0  ;;  %v3868_v13 = vmul.f32 %v7359_v61, %v7359_v61  ;;  %v5947_v14 = vpop.f32.mrb[28].mxu1  ;;  %v3875_v22 = vsel %vm313_vm3, %v3867_v57, 0.0 }
 0x9d5   :  { %v3847_v16 = vadd.f32 %v3846_v56, %v3845_v10  ;;  %v3831_v23 = vadd.f32 %v5947_v14, %v5389_v32  ;;  %v3794_v40 = vpop.f32.mrb[29].mxu1  ;;  %v3880_v28 = vsel %vm313_vm3, %v3870_v2, 0.0 }
 0x9d6   :  { %v3876_v29 = vsel %vm313_vm3, %v3868_v13, 0.0  ;;  %v3829_v27 = vadd.f32 %v5389_v32, %v3794_v40  ;;  %v5948_v15 = vpop.f32.mrb[30].mxu1 }
 0x9d7   :  { %v3849_v20 = vadd.f32 %v3848_v5, %v3847_v16  ;;  %v3877_v41 = vadd.f32 %v3876_v29, %v3875_v22  ;;  %v3832_v8 = vadd.f32 %v5948_v15, %v5389_v32  ;;  %v3797_v19 = vpop.f32.mrb[31].mxu1  ;;  %v3839_v18 = vmax.f32 %v3831_v23, 0.0  ;;  %v5390_v29 = vld [vmem:[%s7871_s7 + $0x6] sm:$0x1]  ;;  %s7748_s7 = sld [smem:[#allocation3 + $0x85]] }
 0x9d8   :  { %v3837_v31 = vmax.f32 %v3829_v27, 0.0  ;;  %v3830_v51 = vadd.f32 %v5389_v32, %v3797_v19 }
 0x9d9   :  { %v3879_v55 = vadd.f32 %v3878_v59, %v3877_v41  ;;  %v3851_v1 = vadd.f32 %v3850_v53, %v3849_v20  ;;  %v3840_v46 = vmax.f32 %v3832_v8, 0.0  ;;  %v3873_v60 = vmul.f32 %v3839_v18, %v3839_v18  ;;  %v5391_v20 = vld [vmem:[%s7872_s8 + $0x6] sm:$0x1]  ;;  %s7750_s8 = sld [smem:[#allocation3 + $0x83]] }
 0x9da   :  { %v3852_v21 = vsel %vm313_vm3, %v3837_v31, 0.0  ;;  %v3871_v24 = vmul.f32 %v3837_v31, %v3837_v31  ;;  %v3838_v6 = vmax.f32 %v3830_v51, 0.0  ;;  %v3856_v49 = vsel %vm313_vm3, %v3839_v18, 0.0 }
 0x9db   :  { %v3853_v25 = vadd.f32 %v3852_v21, %v3851_v1  ;;  %v3881_v11 = vadd.f32 %v3880_v28, %v3879_v55  ;;  %v3874_v50 = vmul.f32 %v3840_v46, %v3840_v46  ;;  %v3858_v37 = vsel %vm313_vm3, %v3840_v46, 0.0 }
 0x9dc   :  { %v3882_v30 = vsel %vm313_vm3, %v3871_v24, 0.0  ;;  %v3854_v35 = vsel %vm313_vm3, %v3838_v6, 0.0  ;;  %v3872_v47 = vmul.f32 %v3838_v6, %v3838_v6  ;;  %v3886_v39 = vsel %vm313_vm3, %v3873_v60, 0.0 }
 0x9dd   :  { %v3883_v17 = vadd.f32 %v3882_v30, %v3881_v11  ;;  %v3855_v38 = vadd.f32 %v3854_v35, %v3853_v25  ;;  %v3888_v52 = vsel %vm313_vm3, %v3874_v50, 0.0  ;;  %v6192_v50 = vld [vmem:[%s7877_s13 + $0x4] ss:$16 sps:$4 sm:$0xff]  }
 0x9de   :  { %v3884_v36 = vsel %vm313_vm3, %v3872_v47, 0.0  ;;  %4405 = vmatprep.subr.bf16.mxu0 %v6192_v50 }
 0x9df   :  { %v3857_v34 = vadd.f32 %v3856_v49, %v3855_v38  ;;  %v3885_v63 = vadd.f32 %v3884_v36, %v3883_v17  ;;  %v6193_v36 = vld [vmem:[%s7877_s13 + $0x20] ss:$16 sps:$4 sm:$0xff]  }
 0x9e1   :  { %v3859_v0 = vadd.f32 %v3858_v37, %v3857_v34  ;;  %v3887_v32 = vadd.f32 %v3886_v39, %v3885_v63  ;;  %v6190_v34 = vld [vmem:[%s7877_s13] ss:$16 sps:$4 sm:$0xff]   ;;  %v6195_v37 = vld [vmem:[%s7877_s13 + $0x24] ss:$16 sps:$4 sm:$0xff]  }
 0x9e2   :  { %4406 = vmatpush1.bf16.msra.mxu0 %v6190_v34  ;;  %v6198_v63 = vld [vmem:[%s7877_s13 + $0x44] ss:$16 sps:$4 sm:$0xff]   ;;  %v6196_v39 = vld [vmem:[%s7877_s13 + $0x40] ss:$16 sps:$4 sm:$0xff]  }
 0x9e3   :  { %v3860_v62 = vrot.slane %v3859_v0, 4  ;;  %v3889_v33 = vadd.f32 %v3888_v52, %v3887_v32  ;;  %4407 = vmatprep.subr.bf16.mxu0 %v6195_v37  ;;  %v6201_v32 = vld [vmem:[%s7877_s13 + $0x64] ss:$16 sps:$4 sm:$0xff]   ;;  %v6199_v52 = vld [vmem:[%s7877_s13 + $0x60] ss:$16 sps:$4 sm:$0xff]  }
 0x9e5   :  { %v3861_v4 = vadd.f32 %v3860_v62, %v3859_v0  ;;  %v3890_v7 = vrot.slane %v3889_v33, 4  ;;  %v6295_v0 = vmov 0   ;;  %v6204_v62 = vld [vmem:[%s7877_s13 + $0xc] ss:$16 sps:$4 sm:$0xff]  }
 0x9e6   :  { %4408 = vmatpush1.bf16.msra.mxu0 %v6193_v36  ;;  %4437 = vmatprep.mubr.bf16.mxu0 %v6295_v0 }
 0x9e7   :  { %v3862_v9 = vrot.slane %v3861_v4, 2  ;;  %v3891_v12 = vadd.f32 %v3890_v7, %v3889_v33  ;;  %4409 = vmatprep.subr.bf16.mxu0 %v6198_v63  ;;  %v6222_v33 = vld [vmem:[%s7878_s14 + $0xc0] sm:$0xff]  }
 0x9e8   :  { %v5400_v7 = vld [vmem:[%s7874_s10] ss:$0 sm:$0xff]  ;;  %s7772_s10 = sld [smem:[#allocation3 + $0x4]] }
 0x9e9   :  { %v3863_v58 = vadd.f32 %v3862_v9, %v3861_v4  ;;  %v3892_v57 = vrot.slane %v3891_v12, 2  ;;  %v6224_v4 = vld [vmem:[%s7878_s14 + $0x80] sm:$0xff]   ;;  %v6226_v9 = vld [vmem:[%s7878_s14 + $0xc8] sm:$0xff]  }
 0x9ea   :  { %4410 = vmatpush1.bf16.msra.mxu0 %v6196_v39 }
 0x9eb   :  { %v3864_v54 = vrot.slane %v3863_v58, 1  ;;  %v3893_v10 = vadd.f32 %v3892_v57, %v3891_v12  ;;  %4411 = vmatprep.subr.bf16.mxu0 %v6201_v32 }
 0x9ed   :  { %v3865_v56 = vadd.f32 %v3864_v54, %v3863_v58  ;;  %v3894_v13 = vrot.slane %v3893_v10, 1  ;;  %v6228_v58 = vld [vmem:[%s7878_s14 + $0x88] sm:$0xff]  }
 0x9ee   :  { %4412 = vmatpush1.bf16.msra.mxu0 %v6199_v52 }
 0x9ef   :  { %v3866_v14 = vmul.f32 0.015625, %v3865_v56  ;;  %v3895_v5 = vadd.f32 %v3894_v13, %v3893_v10  ;;  %4446 = vmatprep.subr.bf16.mxu0 %v6204_v62 }
 0x9f1   :  { %v3897_v16 = vmul.f32 %v3866_v14, %v3866_v14  ;;  %v3896_v23 = vmul.f32 0.015625, %v3895_v5 }
 0x9f3   :  { %v3898_v40 = vsub.f32 %v3896_v23, %v3897_v16 }
 0x9f5   :  { %v3899_v22 = vmax.f32 %v3898_v40, 0.0 }
 0x9f7   :  { %v3900_v2 = vadd.f32 1e-05, %v3899_v22 }
 0x9f9   :  { %6260 = vrsqrt.f32 %v3900_v2 }
 0xa03   :  { %v6261_v27 = vpop.eup %6260 }
 0xa04   :  { %v3902_v15 = vmul.f32 %v6261_v27, %v5390_v29 }
 0xa06   :  { %v3903_v41 = vmul.f32 %v3902_v15, %v3866_v14  ;;  %v3908_v8 = vrot.slane %v3902_v15, %v6495_v45 }
 0xa08   :  { %v3904_v19 = vsub.f32 %v5391_v20, %v3903_v41  ;;  %v3914_v59 = vmul.f32 %v3908_v8, %v3838_v6  ;;  %v3909_v53 = vmul.f32 %v3908_v8, %v7353_v26  ;;  %v3910_v51 = vmul.f32 %v3908_v8, %v7359_v61 }
 0xa09   :  { %v3911_v55 = vmul.f32 %v3908_v8, %v7351_v3  ;;  %v3912_v1 = vmul.f32 %v3908_v8, %v7357_v44  ;;  %v3913_v28 = vmul.f32 %v3908_v8, %v3837_v31  ;;  %v3915_v21 = vmul.f32 %v3908_v8, %v3839_v18  ;;  %v4032_v31 = vpop.permute.xlu0 %4031  ;;  %v4034_v18 = vpop.permute.xlu1 %4033 }
 0xa0a   :  { %v3921_v24 = vrot.slane %v3904_v19, %v6495_v45  ;;  %v3916_v25 = vmul.f32 %v3908_v8, %v3840_v46  ;;  %v4052_v3 = vsel %vm361_vm2, %v7344_v48, 0 }
 0xa0c   :  { %v3928_v11 = vadd.f32 %v3921_v24, %v3914_v59  ;;  %v3923_v30 = vadd.f32 %v3921_v24, %v3909_v53  ;;  %v3924_v35 = vadd.f32 %v3921_v24, %v3910_v51  ;;  %v3925_v60 = vadd.f32 %v3921_v24, %v3911_v55 }
 0xa0d   :  { %v3926_v17 = vadd.f32 %v3921_v24, %v3912_v1  ;;  %v3927_v38 = vadd.f32 %v3921_v24, %v3913_v28  ;;  %v3929_v6 = vadd.f32 %v3921_v24, %v3915_v21  ;;  %v3930_v47 = vadd.f32 %v3921_v24, %v3916_v25  ;;  %v4036_v46 = vpop.permute.xlu0 %4035  ;;  %v4038_v48 = vpop.permute.xlu1 %4037 }
 0xa0e   :  { %v3931_v26 = vpack.c.bf16 %v3924_v35, %v3923_v30 }
 0xa0f   :  { %v3932_v49 = vpack.c.bf16 %v3926_v17, %v3925_v60  ;;  %v3933_v61 = vpack.c.bf16 %v3928_v11, %v3927_v38  ;;  %v3934_v44 = vpack.c.bf16 %v3930_v47, %v3929_v6 }
 0xa10   :  { %5951 = vmatprep.mubr.msk.bf16.mxu1 %vm313_vm3, %v3931_v26 }
 0xa11   :  { %5952 = vmatmul.mubr.msk.bf16.vlgmr.msra.gmra.mrb[8].mxu1 %vm313_vm3, %v3932_v49 }
 0xa12   :  { %5960 = vmatpush3.bf16.msra.mxu1 %v4052_v3  ;;  %5955 = vmatprep.mubr.msk.bf16.mxu1 %vm313_vm3, %v3933_v61 }
 0xa13   :  { %5641 = vmatprep.subr.bf16.mxu1 %v6222_v33 }
 0xa19   :  { %5956 = vmatmul.mubr.msk.bf16.gmra.mrb[12].mxu1 %vm313_vm3, %v3934_v44 }
 0xa1a   :  { %5961 = vmatprep.mubr.msk.bf16.mxu1 %vm313_vm3, %v4032_v31 }
 0xa21   :  { %5962 = vmatmul.mubr.msk.bf16.vlgmr.msra.gmra.mrb[8].mxu1 %vm313_vm3, %v4034_v18 }
 0xa22   :  { %5965 = vmatprep.mubr.msk.bf16.mxu1 %vm313_vm3, %v4036_v46  ;;  %5642 = vmatpush3.bf16.msra.mxu1 %v6224_v4 }
 0xa23   :  { %5643 = vmatprep.subr.bf16.mxu1 %v6226_v9 }
 0xa26   :  { %5644 = vmatpush3.bf16.msra.mxu1 %v6228_v58 }
 0xa29   :  { %5966 = vmatmul.mubr.msk.bf16.gmra.mrb[12].mxu1 %vm313_vm3, %v4038_v48 }
 0xaf4   :  { %v5963_v12 = vpop.f32.mrb[8].mxu1 }
 0xaf5   :  { %v4136_v57 = vadd.f32 %v5963_v12, %v5400_v7  ;;  %v4088_v54 = vpop.f32.mrb[9].mxu1 }
 0xaf6   :  { %v4134_v10 = vadd.f32 %v5400_v7, %v4088_v54  ;;  %v5964_v56 = vpop.f32.mrb[10].mxu1 }
 0xaf7   :  { %v4137_v13 = vadd.f32 %v5964_v56, %v5400_v7  ;;  %v4091_v14 = vpop.f32.mrb[11].mxu1  ;;  %v7452_v5 = vmax.f32 %v4136_v57, 0.0 }
 0xaf8   :  { %v7454_v16 = vmax.f32 %v4134_v10, 0.0  ;;  %v4135_v23 = vadd.f32 %v5400_v7, %v4091_v14 }
 0xaf9   :  { %v7458_v22 = vmax.f32 %v4137_v13, 0.0  ;;  %v4176_v29 = vmul.f32 %v7452_v5, %v7452_v5  ;;  %v4155_v8 = vsel %vm111_vm0, %v7452_v5, 0.0 }
 0xafa   :  { %v4174_v40 = vmul.f32 %v7454_v16, %v7454_v16  ;;  %v7460_v2 = vmax.f32 %v4135_v23, 0.0  ;;  %v4152_v27 = vsel %vm111_vm0, %v7454_v16, 0.0 }
 0xafb   :  { %v4177_v55 = vmul.f32 %v7458_v22, %v7458_v22  ;;  %v4185_v35 = vsel %vm111_vm0, %v4176_v29, 0.0  ;;  %v4157_v60 = vsel %vm111_vm0, %v7458_v22, 0.0 }
 0xafc   :  { %v4153_v15 = vsel %vm111_vm0, %v7460_v2, 0.0  ;;  %v4175_v20 = vmul.f32 %v7460_v2, %v7460_v2  ;;  %v5967_v41 = vpop.f32.mrb[12].mxu1  ;;  %v4182_v51 = vsel %vm111_vm0, %v4174_v40, 0.0 }
 0xafd   :  { %v4154_v19 = vadd.f32 %v4153_v15, %v4152_v27  ;;  %v4140_v59 = vadd.f32 %v5967_v41, %v5400_v7  ;;  %v4104_v53 = vpop.f32.mrb[13].mxu1  ;;  %v4187_v49 = vsel %vm111_vm0, %v4177_v55, 0.0 }
 0xafe   :  { %v4183_v1 = vsel %vm111_vm0, %v4175_v20, 0.0  ;;  %v4138_v28 = vadd.f32 %v5400_v7, %v4104_v53  ;;  %v5968_v21 = vpop.f32.mrb[14].mxu1 }
 0xaff   :  { %v4156_v24 = vadd.f32 %v4155_v8, %v4154_v19  ;;  %v4184_v25 = vadd.f32 %v4183_v1, %v4182_v51  ;;  %v4141_v11 = vadd.f32 %v5968_v21, %v5400_v7  ;;  %v4107_v30 = vpop.f32.mrb[15].mxu1  ;;  %v4148_v47 = vmax.f32 %v4140_v59, 0.0  ;;  %v4150_v1 = vld [vmem:[%s7875_s11] sm:$0x1]  ;;  %s6298_s11 = smov 127  }
 0xb00   :  { %v4146_v17 = vmax.f32 %v4138_v28, 0.0  ;;  %v4139_v38 = vadd.f32 %v5400_v7, %v4107_v30 }
 0xb01   :  { %v4186_v6 = vadd.f32 %v4185_v35, %v4184_v25  ;;  %v4158_v26 = vadd.f32 %v4157_v60, %v4156_v24  ;;  %v4149_v46 = vmax.f32 %v4141_v11, 0.0  ;;  %v4180_v34 = vmul.f32 %v4148_v47, %v4148_v47  ;;  %v4151_v24 = vld [vmem:[%s7876_s12] sm:$0x1]  ;;  %s6299_s12 = smov 123  }
 0xb02   :  { %v4159_v3 = vsel %vm111_vm0, %v4146_v17, 0.0  ;;  %v4178_v61 = vmul.f32 %v4146_v17, %v4146_v17  ;;  %v4147_v44 = vmax.f32 %v4139_v38, 0.0  ;;  %v4163_v39 = vsel %vm111_vm0, %v4148_v47, 0.0 }
 0xb03   :  { %v4160_v31 = vadd.f32 %v4159_v3, %v4158_v26  ;;  %v4188_v18 = vadd.f32 %v4187_v49, %v4186_v6  ;;  %v4181_v32 = vmul.f32 %v4149_v46, %v4149_v46  ;;  %v4165_v33 = vsel %vm111_vm0, %v4149_v46, 0.0 }
 0xb04   :  { %v4189_v48 = vsel %vm111_vm0, %v4178_v61, 0.0  ;;  %v4161_v50 = vsel %vm111_vm0, %v4147_v44, 0.0  ;;  %v4179_v63 = vmul.f32 %v4147_v44, %v4147_v44  ;;  %v4193_v7 = vsel %vm111_vm0, %v4180_v34, 0.0 }
 0xb05   :  { %v4190_v36 = vadd.f32 %v4189_v48, %v4188_v18  ;;  %v4162_v37 = vadd.f32 %v4161_v50, %v4160_v31  ;;  %v4195_v58 = vsel %vm111_vm0, %v4181_v32, 0.0 }
 0xb06   :  { %v4191_v62 = vsel %vm111_vm0, %v4179_v63, 0.0 }
 0xb07   :  { %v4164_v52 = vadd.f32 %v4163_v39, %v4162_v37  ;;  %v4192_v4 = vadd.f32 %v4191_v62, %v4190_v36 }
 0xb09   :  { %v4166_v9 = vadd.f32 %v4165_v33, %v4164_v52  ;;  %v4194_v12 = vadd.f32 %v4193_v7, %v4192_v4 }
 0xb0b   :  { %v4167_v57 = vrot.slane %v4166_v9, 4  ;;  %v4196_v54 = vadd.f32 %v4195_v58, %v4194_v12 }
 0xb0d   :  { %v4168_v10 = vadd.f32 %v4167_v57, %v4166_v9  ;;  %v4197_v56 = vrot.slane %v4196_v54, 4 }
 0xb0f   :  { %v4169_v13 = vrot.slane %v4168_v10, 2  ;;  %v4198_v14 = vadd.f32 %v4197_v56, %v4196_v54 }
 0xb11   :  { %v4170_v23 = vadd.f32 %v4169_v13, %v4168_v10  ;;  %v4199_v40 = vrot.slane %v4198_v14, 2 }
 0xb13   :  { %v4171_v29 = vrot.slane %v4170_v23, 1  ;;  %v4200_v27 = vadd.f32 %v4199_v40, %v4198_v14 }
 0xb15   :  { %v4172_v15 = vadd.f32 %v4171_v29, %v4170_v23  ;;  %v4201_v20 = vrot.slane %v4200_v27, 1 }
 0xb17   :  { %v4173_v41 = vmul.f32 0.015625, %v4172_v15  ;;  %v4202_v8 = vadd.f32 %v4201_v20, %v4200_v27 }
 0xb19   :  { %v4204_v19 = vmul.f32 %v4173_v41, %v4173_v41  ;;  %v4203_v59 = vmul.f32 0.015625, %v4202_v8 }
 0xb1b   :  { %v4205_v53 = vsub.f32 %v4203_v59, %v4204_v19 }
 0xb1d   :  { %v4206_v51 = vmax.f32 %v4205_v53, 0.0 }
 0xb1f   :  { %v4207_v55 = vadd.f32 1e-05, %v4206_v51 }
 0xb21   :  { %6262 = vrsqrt.f32 %v4207_v55 }
 0xb2b   :  { %v6263_v28 = vpop.eup %6262 }
 0xb2c   :  { %v4209_v21 = vmul.f32 %v6263_v28, %v4150_v1 }
 0xb2e   :  { %v4210_v25 = vmul.f32 %v4209_v21, %v4173_v41  ;;  %v4215_v11 = vrot.slane %v4209_v21, %v6495_v45 }
 0xb30   :  { %v4211_v30 = vsub.f32 %v4151_v24, %v4210_v25  ;;  %v4220_v35 = vmul.f32 %v4215_v11, %v4146_v17  ;;  %v4221_v60 = vmul.f32 %v4215_v11, %v4147_v44  ;;  %v4222_v38 = vmul.f32 %v4215_v11, %v4148_v47 }
 0xb31   :  { %v4223_v6 = vmul.f32 %v4215_v11, %v4149_v46  ;;  %v4216_v26 = vmul.f32 %v4215_v11, %v7454_v16  ;;  %v4217_v49 = vmul.f32 %v4215_v11, %v7460_v2  ;;  %v4218_v3 = vmul.f32 %v4215_v11, %v7452_v5 }
 0xb32   :  { %v4228_v61 = vrot.slane %v4211_v30, %v6495_v45  ;;  %v4219_v31 = vmul.f32 %v4215_v11, %v7458_v22 }
 0xb34   :  { %v7500_v18 = vadd.f32 %v4228_v61, %v4220_v35  ;;  %v7502_v48 = vadd.f32 %v4228_v61, %v4221_v60  ;;  %v7504_v50 = vadd.f32 %v4228_v61, %v4222_v38  ;;  %v7506_v17 = vadd.f32 %v4228_v61, %v4223_v6 }
 0xb35   :  { %v7508_v47 = vadd.f32 %v4228_v61, %v4216_v26  ;;  %v7510_v44 = vadd.f32 %v4228_v61, %v4217_v49  ;;  %v7512_v16 = vadd.f32 %v4228_v61, %v4218_v3  ;;  %v7514_v2 = vadd.f32 %v4228_v61, %v4219_v31 }
 0xb36   :  { %v4251_v5 = vsel %vm111_vm0, %v7500_v18, 0.0  ;;  %v4252_v22 = vsel %vm111_vm0, %v7502_v48, 0.0  ;;  %v4254_v46 = vsel %vm111_vm0, %v7504_v50, 0.0  ;;  %v4280_v36 = vsel %vm111_vm0, %v7500_v18, -inf }
 0xb37   :  { %v4253_v34 = vadd.f32 %v4252_v22, %v4251_v5  ;;  %v4281_v37 = vsel %vm111_vm0, %v7502_v48, -inf  ;;  %v4282_v63 = vsel %vm111_vm0, %v7504_v50, -inf  ;;  %v4284_v32 = vsel %vm111_vm0, %v7506_v17, -inf }
 0xb38   :  { %v4283_v39 = vmax.f32 %v4280_v36, %v4282_v63  ;;  %v4238_v52 = vsel %vm111_vm0, %v7508_v47, 0.0  ;;  %v4239_v62 = vsel %vm111_vm0, %v7510_v44, 0.0  ;;  %v4256_v4 = vsel %vm111_vm0, %v7506_v17, 0.0  ;;  %v6202_v36 = vld [vmem:[%s7877_s13 + $0x8] ss:$16 sps:$4 sm:$0xff]  }
 0xb39   :  { %v4255_v33 = vadd.f32 %v4254_v46, %v4253_v34  ;;  %v4285_v7 = vmax.f32 %v4281_v37, %v4284_v32  ;;  %v4240_v9 = vadd.f32 %v4239_v62, %v4238_v52  ;;  %v4241_v12 = vsel %vm111_vm0, %v7512_v16, 0.0  ;;  %v6205_v32 = vld [vmem:[%s7877_s13 + $0x28] ss:$16 sps:$4 sm:$0xff]   ;;  %v6210_v52 = vld [vmem:[%s7877_s13 + $0x4c] ss:$16 sps:$4 sm:$0xff]  }
 0xb3a   :  { %v4267_v58 = vsel %vm111_vm0, %v7508_v47, -inf  ;;  %v4268_v57 = vsel %vm111_vm0, %v7510_v44, -inf  ;;  %v4269_v54 = vsel %vm111_vm0, %v7512_v16, -inf  ;;  %v4243_v23 = vsel %vm111_vm0, %v7514_v2, 0.0  ;;  %v6208_v62 = vld [vmem:[%s7877_s13 + $0x48] ss:$16 sps:$4 sm:$0xff]  }
 0xb3b   :  { %v4257_v10 = vadd.f32 %v4256_v4, %v4255_v33  ;;  %v4286_v56 = vmax.f32 %v4283_v39, %v4285_v7  ;;  %v4242_v13 = vadd.f32 %v4241_v12, %v4240_v9  ;;  %v4270_v14 = vmax.f32 %v4267_v58, %v4269_v54  ;;  %v6207_v39 = vld [vmem:[%s7877_s13 + $0x2c] ss:$16 sps:$4 sm:$0xff]   ;;  %v6214_v4 = vld [vmem:[%s7878_s14 + $0x40] sm:$0xff]   ;;  %v6218_v58 = vld [vmem:[%s7878_s14 + $0x50] sm:$0xff]  }
 0xb3c   :  { %v4271_v40 = vsel %vm111_vm0, %v7514_v2, -inf  ;;  %v6213_v33 = vld [vmem:[%s7877_s13 + $0x6c] ss:$16 sps:$4 sm:$0xff]   ;;  %v6215_v7 = vld [vmem:[%s7878_s14] sm:$0xff]  }
 0xb3d   :  { %v4258_v29 = vrot.slane %v4257_v10, 4  ;;  %v4287_v27 = vrot.slane %v4286_v56, 4  ;;  %v4244_v15 = vadd.f32 %v4243_v23, %v4242_v13  ;;  %v4272_v20 = vmax.f32 %v4268_v57, %v4271_v40  ;;  %v6216_v9 = vld [vmem:[%s7878_s14 + $0x48] sm:$0xff]   ;;  %v6219_v57 = vld [vmem:[%s7878_s14 + $0x10] sm:$0xff]   ;;  %v6220_v54 = vld [vmem:[%s7878_s14 + $0x58] sm:$0xff]  }
 0xb3e   :  { %v6217_v12 = vld [vmem:[%s7878_s14 + $0x8] sm:$0xff]   ;;  %v6225_v13 = vld [vmem:[%s7878_s14 + $0x20] sm:$0xff]   ;;  %v6230_v40 = vld [vmem:[%s7878_s14 + $0xd0] sm:$0xff]  }
 0xb3f   :  { %v4259_v41 = vadd.f32 %v4258_v29, %v4257_v10  ;;  %v4288_v8 = vmax.f32 %v4286_v56, %v4287_v27  ;;  %v4245_v19 = vrot.slane %v4244_v15, 4  ;;  %v4273_v59 = vmax.f32 %v4270_v14, %v4272_v20  ;;  %v6221_v10 = vld [vmem:[%s7878_s14 + $0x18] sm:$0xff]   ;;  %v6223_v56 = vld [vmem:[%s7878_s14 + $0x60] sm:$0xff]   ;;  %v6227_v14 = vld [vmem:[%s7878_s14 + $0x68] sm:$0xff]   ;;  %5645 = vmatprep.subr.bf16.mxu1 %v6230_v40 }
 0xb40   :  { %v6229_v23 = vld [vmem:[%s7878_s14 + $0x28] sm:$0xff]   ;;  %v6231_v29 = vld [vmem:[%s7878_s14 + $0x70] sm:$0xff]   ;;  %v6234_v20 = vld [vmem:[%s7878_s14 + $0xd8] sm:$0xff]  }
 0xb41   :  { %v4260_v53 = vrot.slane %v4259_v41, 2  ;;  %v4289_v51 = vrot.slane %v4288_v8, 2  ;;  %v4246_v55 = vadd.f32 %v4245_v19, %v4244_v15  ;;  %v4274_v1 = vrot.slane %v4273_v59, 4  ;;  %v6232_v27 = vld [vmem:[%s7878_s14 + $0x90] sm:$0xff]   ;;  %v6237_v19 = vld [vmem:[%s7878_s14 + $0x38] sm:$0xff]  }
 0xb42   :  { %v6233_v15 = vld [vmem:[%s7878_s14 + $0x30] sm:$0xff]   ;;  %5646 = vmatpush3.bf16.msra.mxu1 %v6232_v27 }
 0xb43   :  { %v4261_v28 = vadd.f32 %v4260_v53, %v4259_v41  ;;  %v4290_v21 = vmax.f32 %v4288_v8, %v4289_v51  ;;  %v4247_v24 = vrot.slane %v4246_v55, 2  ;;  %v4275_v25 = vmax.f32 %v4273_v59, %v4274_v1  ;;  %v6235_v41 = vld [vmem:[%s7878_s14 + $0x78] sm:$0xff]   ;;  %5647 = vmatprep.subr.bf16.mxu1 %v6234_v20  ;;  %v6238_v59 = vld [vmem:[%s7878_s14 + $0xe0] sm:$0xff]   ;;  %v6240_v51 = vld [vmem:[%s7878_s14 + $0xe8] sm:$0xff]  }
 0xb44   :  { %v6236_v8 = vld [vmem:[%s7878_s14 + $0x98] sm:$0xff]   ;;  %v6239_v53 = vld [vmem:[%s7878_s14 + $0xa0] sm:$0xff]   ;;  %v6242_v1 = vld [vmem:[%s7878_s14 + $0xf0] sm:$0xff]  }
 0xb45   :  { %v4262_v11 = vrot.slane %v4261_v28, 1  ;;  %v4291_v30 = vrot.slane %v4290_v21, 1  ;;  %v4248_v35 = vadd.f32 %v4247_v24, %v4246_v55  ;;  %v4276_v60 = vrot.slane %v4275_v25, 2  ;;  %v6241_v55 = vld [vmem:[%s7878_s14 + $0xa8] sm:$0xff]   ;;  %v6245_v24 = vld [vmem:[%s7878_s14 + $0xb8] sm:$0xff]  }
 0xb46   :  { %5648 = vmatpush3.bf16.msra.mxu1 %v6236_v8 }
 0xb47   :  { %v4249_v38 = vrot.slane %v4248_v35, 1  ;;  %v4263_v6 = vadd.f32 %v4262_v11, %v4261_v28  ;;  %v4277_v26 = vmax.f32 %v4275_v25, %v4276_v60  ;;  %v4292_v31 = vmax.f32 %v4290_v21, %v4291_v30  ;;  %5649 = vmatprep.subr.bf16.mxu1 %v6238_v59  ;;  %v6243_v28 = vld [vmem:[%s7878_s14 + $0xb0] sm:$0xff]   ;;  %v6244_v21 = vld [vmem:[%s7878_s14 + $0xf8] sm:$0xff]   ;;  %s7731_s14 = sld [smem:[#allocation3 + $0x2]] }
 0xb49   :  { %v4250_v49 = vadd.f32 %v4249_v38, %v4248_v35  ;;  %v4266_v3 = vmul.f32 0.03125, %v4263_v6  ;;  %v4278_v61 = vrot.slane %v4277_v26, 1 }
 0xb4a   :  { %5650 = vmatpush3.bf16.msra.mxu1 %v6239_v53 }
 0xb4b   :  { %v4265_v5 = vmul.f32 0.03125, %v4250_v49  ;;  %v4279_v22 = vmax.f32 %v4277_v26, %v4278_v61  ;;  %5651 = vmatprep.subr.bf16.mxu1 %v6240_v51 }
 0xb4d   :  { %v4296_v46 = vsel %vm4295_vm4, %v4266_v3, %v4265_v5  ;;  %v4301_v34 = vsel %vm4300_vm5, %v4292_v31, %v4279_v22 }
 0xb4e   :  { %v4304_v37 = vsel %vm4303_vm6, %v4296_v46, %v4301_v34  ;;  %5652 = vmatpush3.bf16.msra.mxu1 %v6241_v55 }
 0xb4f   :  { %v4305_v63 = vpack.c.bf16 %v4304_v37, %v4304_v37  ;;  %5653 = vmatprep.subr.bf16.mxu1 %v6242_v1 }
 0xb51   :  { %5417 = vmatmul.mubr.msk.bf16.vlgmr.msra.gmra.mrb[44].mxu0 %vm111_vm0, %v4305_v63 }
 0xb52   :  { %4447 = vmatpush1.bf16.msra.mxu0 %v6202_v36  ;;  %4478 = vmatprep.mubr.bf16.mxu0 %v6295_v0  ;;  %v6211_v0 = vld [vmem:[%s7877_s13 + $0x68] ss:$16 sps:$4 sm:$0xff]   ;;  %s7753_s13 = sld [smem:[#allocation3 + $0x5]] }
 0xb53   :  { %4448 = vmatprep.subr.bf16.mxu0 %v6207_v39  ;;  %5654 = vmatpush3.bf16.msra.mxu1 %v6243_v28 }
 0xb54   :  { %5655 = vmatprep.subr.bf16.mxu1 %v6244_v21 }
 0xb56   :  { %4449 = vmatpush1.bf16.msra.mxu0 %v6205_v32 }
 0xb57   :  { %4450 = vmatprep.subr.bf16.mxu0 %v6210_v52  ;;  %5656 = vmatpush3.bf16.msra.mxu1 %v6245_v24 }
 0xb5a   :  { %4451 = vmatpush1.bf16.msra.mxu0 %v6208_v62 }
 0xb5b   :  { %4452 = vmatprep.subr.bf16.mxu0 %v6213_v33 }
 0xb5e   :  { %4453 = vmatpush1.bf16.msra.mxu0 %v6211_v0 }
 0xb5f   :  { %5619 = vmatprep.subr.bf16.mxu0 %v6214_v4 }
 0xb61   :  { %5418 = vmatmul.mubr.msk.bf16.vlgmr.msra.gmra.mrb[48].mxu0 %vm111_vm0, %v4305_v63 }
 0xb62   :  { %5620 = vmatpush3.bf16.msra.mxu0 %v6215_v7 }
 0xb63   :  { %5621 = vmatprep.subr.bf16.mxu0 %v6216_v9 }
 0xb66   :  { %5622 = vmatpush3.bf16.msra.mxu0 %v6217_v12 }
 0xb67   :  { %5623 = vmatprep.subr.bf16.mxu0 %v6218_v58 }
 0xb6a   :  { %5624 = vmatpush3.bf16.msra.mxu0 %v6219_v57 }
 0xb6b   :  { %5625 = vmatprep.subr.bf16.mxu0 %v6220_v54 }
 0xb6e   :  { %5626 = vmatpush3.bf16.msra.mxu0 %v6221_v10 }
 0xb6f   :  { %5627 = vmatprep.subr.bf16.mxu0 %v6223_v56 }
 0xb72   :  { %5628 = vmatpush3.bf16.msra.mxu0 %v6225_v13 }
 0xb73   :  { %5629 = vmatprep.subr.bf16.mxu0 %v6227_v14 }
 0xb76   :  { %5630 = vmatpush3.bf16.msra.mxu0 %v6229_v23 }
 0xb77   :  { %5631 = vmatprep.subr.bf16.mxu0 %v6231_v29  ;;  %v6296_v29 = vmov 1966171168  }
 0xb78   :  { %v4855_v27 = vunpack.c.l.s4 %v6296_v29 }
 0xb7a   :  { %5632 = vmatpush3.bf16.msra.mxu0 %v6233_v15  ;;  %v4856_v15 = vunpack.c.0.s8 %v4855_v27 }
 0xb7b   :  { %5633 = vmatprep.subr.bf16.mxu0 %v6235_v41 }
 0xb7c   :  { %v4859_v20 = vsub.s32 %v4856_v15, %v6489_v43 }
 0xb7e   :  { %5634 = vmatpush3.bf16.msra.mxu0 %v6237_v19 }
 0xc24   :  { %v4439_v25 = vpop.f32.mrb[44].mxu0 }
 0xc25   :  { %v4487_v11 = vmax.f32 %v4439_v25, 0.0  ;;  %v4441_v30 = vpop.f32.mrb[45].mxu0 }
 0xc26   :  { %v4488_v35 = vmax.f32 %v4441_v30, 0.0  ;;  %v4443_v60 = vpop.f32.mrb[46].mxu0 }
 0xc27   :  { %v4495_v38 = vrot.slane %v4487_v11, 2  ;;  %v4444_v6 = vpop.f32.mrb[47].mxu0 }
 0xc28   :  { %v4496_v26 = vrot.slane %v4488_v35, 2 }
 0xc29   :  { %v4503_v49 = vadd.f32 %v4495_v38, %v4487_v11 }
 0xc2a   :  { %v4504_v3 = vadd.f32 %v4496_v26, %v4488_v35 }
 0xc2b   :  { %v4507_v31 = vpack.c.bf16 %v4503_v49, %v4503_v49 }
 0xc2c   :  { %v4508_v61 = vpack.c.bf16 %v4504_v3, %v4504_v3 }
 0xc2e   :  { %4799 = vmatprep.mubr.bf16.mxu0 %v4508_v61 }
 0xc2f   :  { %4800 = vmatmul.mubr.bf16.vlgmr.msra.gmra.mrb[52].mxu0 %v4507_v31 }
 0xc34   :  { %v4480_v5 = vpop.f32.mrb[48].mxu0 }
 0xc35   :  { %v4489_v22 = vmax.f32 %v4480_v5, 0.0  ;;  %v4482_v46 = vpop.f32.mrb[49].mxu0 }
 0xc36   :  { %v4490_v34 = vmax.f32 %v4482_v46, 0.0  ;;  %v4484_v36 = vpop.f32.mrb[50].mxu0 }
 0xc37   :  { %v4497_v37 = vrot.slane %v4489_v22, 2  ;;  %v4485_v63 = vpop.f32.mrb[51].mxu0 }
 0xc38   :  { %v4498_v39 = vrot.slane %v4490_v34, 2 }
 0xc39   :  { %v4505_v32 = vadd.f32 %v4497_v37, %v4489_v22 }
 0xc3a   :  { %v4506_v52 = vadd.f32 %v4498_v39, %v4490_v34 }
 0xc3b   :  { %v4509_v33 = vpack.c.bf16 %v4505_v32, %v4505_v32 }
 0xc3c   :  { %v4510_v62 = vpack.c.bf16 %v4506_v52, %v4506_v52 }
 0xc3e   :  { %4839 = vmatprep.mubr.bf16.mxu1 %v4510_v62 }
 0xc3f   :  { %4840 = vmatmul.mubr.bf16.vlgmr.msra.gmra.mrb[32].mxu1 %v4509_v33 }
 0xd02   :  { %v5635_v0 = vpop.f32.mrb[52].mxu0 }
 0xd03   :  { %v5636_v4 = vpop.f32.mrb[53].mxu0 }
 0xd04   :  { %v5637_v7 = vadd.f32 %v5636_v4, %v5635_v0  ;;  %v5638_v9 = vpop.f32.mrb[54].mxu0 }
 0xd05   :  { %v5639_v12 = vpop.f32.mrb[55].mxu0 }
 0xd12   :  { %v5657_v58 = vpop.f32.mrb[32].mxu1 }
 0xd13   :  { %v5658_v57 = vpop.f32.mrb[33].mxu1 }
 0xd14   :  { %v5659_v54 = vadd.f32 %v5658_v57, %v5657_v58  ;;  %v5660_v10 = vpop.f32.mrb[34].mxu1 }
 0xd15   :  { %v5661_v56 = vpop.f32.mrb[35].mxu1 }
 0xd16   :  { %v4842_v13 = vadd.f32 %v5659_v54, %v5637_v7  ;;  %v4960_v7 = vand.u32 127, %v274_v42 }
 0xd18   :  { %v5451_v14 = vmul.f32 -1.442695, %v4842_v13  ;;  %v4966_v58 = vadd.s32 4294967285, %v4960_v7  ;;  %v4961_v57 = vadd.s32 4294967293, %v4960_v7  ;;  %v4973_v54 = vadd.s32 4294967277, %v4960_v7 }
 0xd19   :  { %v4980_v13 = vadd.s32 4294967269, %v4960_v7 }
 0xd1a   :  { %6264 = vpow2.f32 %v5451_v14  ;;  %v4964_v27 = vsub.s32 %v4961_v57, %v6489_v43  ;;  %v4976_v42 = vsub.s32 %v4973_v54, %v6489_v43 }
 0xd24   :  { %v6265_v23 = vpop.eup %6264 }
 0xd25   :  { %v4850_v40 = vadd.f32 1.0, %v6265_v23  ;;  %v4969_v23 = vsub.s32 %v4966_v58, %v6489_v43 }
 0xd27   :  { %6266 = vrcp.f32 %v4850_v40 }
 0xd31   :  { %v6267_v41 = vpop.eup %6266 }
 0xd32   :  { %v4860_v8 = vrot.slane %v6267_v41, %v4859_v20 }
 0xd34   :  { %v4868_v19 = vrot.slane %v4860_v8, %v4859_v20  ;;  %v4861_v59 = vcombine.high %v4860_v8, %v4860_v8 }
 0xd36   :  { %v4879_v53 = vrot.slane %v4868_v19, %v6495_v45  ;;  %v4875_v51 = vrot.slane %v4861_v59, %v4859_v20  ;;  %v4983_v19 = vsub.s32 %v4980_v13, %v6489_v43 }
 0xd38   :  { %v7660_v55 = vmul.f32 %v4879_v53, %v7510_v44  ;;  %v7663_v1 = vmul.f32 %v4879_v53, %v7508_v47  ;;  %v7670_v24 = vmul.f32 %v4879_v53, %v7512_v16  ;;  %v4883_v25 = vrot.slane %v4875_v51, %v6495_v45 }
 0xd39   :  { %v7678_v35 = vmul.f32 %v4879_v53, %v7514_v2 }
 0xd3a   :  { %v4897_v28 = vsel %vm111_vm0, %v7660_v55, 0.0  ;;  %v4894_v21 = vsel %vm111_vm0, %v7663_v1, 0.0  ;;  %v4900_v11 = vsel %vm111_vm0, %v7670_v24, 0.0  ;;  %v4930_v30 = vsel %vm111_vm0, %v7660_v55, -inf }
 0xd3b   :  { %4898 = vadd.xlane.f32.xlu1 %v4897_v28  ;;  %4895 = vadd.xlane.f32.xlu0 %v4894_v21  ;;  %v7681_v60 = vmul.f32 %v4883_v25, %v7500_v18  ;;  %v4903_v38 = vsel %vm111_vm0, %v7678_v35, 0.0  ;;  %v7688_v26 = vmul.f32 %v4883_v25, %v7502_v48  ;;  %v4927_v49 = vsel %vm111_vm0, %v7663_v1, -inf }
 0xd3c   :  { %v7695_v61 = vmul.f32 %v4883_v25, %v7504_v50  ;;  %v4933_v31 = vsel %vm111_vm0, %v7670_v24, -inf  ;;  %v7702_v22 = vmul.f32 %v4883_v25, %v7506_v17  ;;  %v4936_v36 = vsel %vm111_vm0, %v7678_v35, -inf }
 0xd3d   :  { %v4906_v6 = vsel %vm111_vm0, %v7681_v60, 0.0  ;;  %v4909_v3 = vsel %vm111_vm0, %v7688_v26, 0.0  ;;  %v4939_v46 = vsel %vm111_vm0, %v7681_v60, -inf  ;;  %v4942_v37 = vsel %vm111_vm0, %v7688_v26, -inf }
 0xd3e   :  { %v4912_v5 = vsel %vm111_vm0, %v7695_v61, 0.0  ;;  %v4915_v34 = vsel %vm111_vm0, %v7702_v22, 0.0  ;;  %v4945_v63 = vsel %vm111_vm0, %v7695_v61, -inf  ;;  %v4948_v39 = vsel %vm111_vm0, %v7702_v22, -inf }
 0xd3f   :  { %4901 = vadd.xlane.f32.xlu1 %v4900_v11  ;;  %4931 = vmax.xlane.f32.xlu0 %v4930_v30 }
 0xd43   :  { %4904 = vadd.xlane.f32.xlu1 %v4903_v38  ;;  %4907 = vadd.xlane.f32.xlu0 %v4906_v6 }
 0xd47   :  { %4928 = vmax.xlane.f32.xlu1 %v4927_v49  ;;  %4910 = vadd.xlane.f32.xlu0 %v4909_v3 }
 0xd4b   :  { %4934 = vmax.xlane.f32.xlu1 %v4933_v31  ;;  %4913 = vadd.xlane.f32.xlu0 %v4912_v5 }
 0xd4f   :  { %4940 = vmax.xlane.f32.xlu1 %v4939_v46  ;;  %4916 = vadd.xlane.f32.xlu0 %v4915_v34 }
 0xd53   :  { %4937 = vmax.xlane.f32.xlu1 %v4936_v36  ;;  %4943 = vmax.xlane.f32.xlu0 %v4942_v37 }
 0xd57   :  { %4946 = vmax.xlane.f32.xlu0 %v4945_v63 }
 0xd5b   :  { %4949 = vmax.xlane.f32.xlu0 %v4948_v39 }
 0xdc8   :  { %v4899_v32 = vpop.xlane.xlu1 %4898  ;;  %v4896_v52 = vpop.xlane.xlu0 %4895 }
 0xdc9   :  { %v4920_v29 = vmul.f32 0.015625, %v4899_v32  ;;  %v4919_v15 = vmul.f32 0.015625, %v4896_v52 }
 0xdcb   :  { %v4970_v25 = vrot.slane %v4920_v29, %v4969_v23  ;;  %v4965_v11 = vrot.slane %v4919_v15, %v4964_v27  ;;  %v5070_v29 = vstv %s7733_s28 }
 0xdcc   :  { %v4902_v62 = vpop.xlane.xlu1 %4901  ;;  %v7716_v33 = vpop.xlane.xlu0 %4931 }
 0xdcd   :  { %v4921_v41 = vmul.f32 0.015625, %v4902_v62  ;;  %v4972_v46 = vsel %vm4971_vm7, %v4970_v25, %v4965_v11  ;;  %v5027_v7 = vrot.slane %v7716_v33, %v4969_v23 }
 0xdcf   :  { %v4977_v6 = vrot.slane %v4921_v41, %v4976_v42 }
 0xdd0   :  { %v4905_v0 = vpop.xlane.xlu1 %4904  ;;  %v4908_v4 = vpop.xlane.xlu0 %4907 }
 0xdd1   :  { %v4923_v20 = vmul.f32 0.015625, %v4908_v4  ;;  %v4922_v59 = vmul.f32 0.015625, %v4905_v0  ;;  %v4979_v36 = vsel %vm4978_vm8, %v4977_v6, %v4972_v46 }
 0xdd3   :  { %v4990_v30 = vrot.slane %v4923_v20, %v4964_v27  ;;  %v4984_v3 = vrot.slane %v4922_v59, %v4983_v19  ;;  %v5085_v20 = vstv %s7736_s6 }
 0xdd4   :  { %v7719_v9 = vpop.xlane.xlu1 %4928  ;;  %v4911_v12 = vpop.xlane.xlu0 %4910 }
 0xdd5   :  { %v4924_v14 = vmul.f32 0.015625, %v4911_v12  ;;  %v4986_v39 = vsel %vm4985_vm9, %v4984_v3, %v4979_v36  ;;  %v5023_v32 = vrot.slane %v7719_v9, %v4964_v27 }
 0xdd7   :  { %v4994_v53 = vrot.slane %v4924_v14, %v4969_v23  ;;  %v5028_v57 = vsel %vm4971_vm7, %v5027_v7, %v5023_v32  ;;  %v5130_v7 = vstv %s7782_s17 }
 0xdd8   :  { %v7721_v10 = vpop.xlane.xlu1 %4934  ;;  %v4914_v56 = vpop.xlane.xlu0 %4913 }
 0xdd9   :  { %v4925_v40 = vmul.f32 0.015625, %v4914_v56  ;;  %v4995_v31 = vsel %vm4971_vm7, %v4994_v53, %v4990_v30  ;;  %v5032_v62 = vrot.slane %v7721_v10, %v4976_v42  ;;  %v5121_v53 = vstv %s7748_s7 }
 0xdda   :  { %v5118_v30 = vstv %s7753_s13 }
 0xddb   :  { %v4999_v28 = vrot.slane %v4925_v40, %v4976_v42  ;;  %v5033_v56 = vsel %vm4978_vm8, %v5032_v62, %v5028_v57  ;;  %v5082_v40 = vstv %s7731_s14 }
 0xddc   :  { %v4917_v8 = vpop.xlane.xlu0 %4916  ;;  %v4941_v21 = vpop.xlane.xlu1 %4940 }
 0xddd   :  { %v4926_v51 = vmul.f32 0.015625, %v4917_v8  ;;  %v5000_v5 = vsel %vm4978_vm8, %v4999_v28, %v4995_v31  ;;  %v5042_v12 = vrot.slane %v4941_v21, %v4964_v27  ;;  %v5063_v8 = vstv %s7742_s29 }
 0xddf   :  { %v5004_v38 = vrot.slane %v4926_v51, %v4983_v19  ;;  %v5097_v51 = vstv %s7750_s8 }
 0xde0   :  { %v4944_v49 = vpop.xlane.xlu0 %4943  ;;  %v4938_v37 = vpop.xlane.xlu1 %4937 }
 0xde1   :  { %v5005_v34 = vsel %vm4985_vm9, %v5004_v38, %v5000_v5  ;;  %v5046_v52 = vrot.slane %v4944_v49, %v4969_v23  ;;  %v5037_v9 = vrot.slane %v4938_v37, %v4983_v19  ;;  %v5094_v38 = vstv %s7755_s1 }
 0xde2   :  { %v5006_v0 = vsel %vm4295_vm4, %v5005_v34, %v4986_v39  ;;  %v5109_v34 = vstv %s7762_s30  ;;  %v5106_v39 = vstv %s7772_s10 }
 0xde3   :  { %v5047_v54 = vsel %vm4971_vm7, %v5046_v52, %v5042_v12  ;;  %v5009_v10 = vsel %vm5008_vm10, 0.0, %v5006_v0  ;;  %v5038_v14 = vsel %vm4985_vm9, %v5037_v9, %v5033_v56  ;;  %v5133_v0 = vstv %s7780_s0 }
 0xde4   :  { %v4947_v63 = vpop.xlane.xlu0 %4946  ;;  %v5011_v27 = vsel %vm5010_vm11, %v5009_v10, 0.0 }
 0xde5   :  { %v5051_v4 = vrot.slane %v4947_v63, %v4976_v42  ;;  %v5073_v42 = vstv %s7738_s9  ;;  %v5083_v28 = vmul.f32 %v5082_v40, %v5011_v27  ;;  %v5071_v25 = vmul.f32 %v5070_v29, %v5011_v27 }
 0xde6   :  { %v5064_v6 = vmul.f32 %v5063_v8, %v5011_v27  ;;  %v5119_v37 = vmul.f32 %v5118_v30, %v5011_v27  ;;  %v5095_v63 = vmul.f32 %v5094_v38, %v5011_v27 }
 0xde7   :  { %v5052_v13 = vsel %vm4978_vm8, %v5051_v4, %v5047_v54  ;;  %v5107_v4 = vmul.f32 %v5106_v39, %v5011_v27 }
 0xde8   :  { %v4950_v58 = vpop.xlane.xlu0 %4949 }
 0xde9   :  { %v5056_v33 = vrot.slane %v4950_v58, %v4983_v19  ;;  %v5066_v19 = vstv %s7744_s15  ;;  %v5131_v58 = vmul.f32 %v5130_v7, %v5011_v27 }
 0xdeb   :  { %v5057_v23 = vsel %vm4985_vm9, %v5056_v33, %v5052_v13 }
 0xdec   :  { %v5058_v15 = vsel %vm4295_vm4, %v5057_v23, %v5038_v14 }
 0xded   :  { %v5060_v41 = vsel %vm5008_vm10, 0.0, %v5058_v15 }
 0xdee   :  { %v5061_v59 = vsel %vm5010_vm11, %v5060_v41, 0.0 }
 0xdef   :  { %v5086_v21 = vmul.f32 %v5085_v20, %v5061_v59  ;;  %v5074_v11 = vmul.f32 %v5073_v42, %v5061_v59  ;;  %v5067_v49 = vmul.f32 %v5066_v19, %v5061_v59  ;;  %v5122_v5 = vmul.f32 %v5121_v53, %v5061_v59 }
 0xdf0   :  { %v5098_v46 = vmul.f32 %v5097_v51, %v5061_v59  ;;  %v5110_v62 = vmul.f32 %v5109_v34, %v5061_v59  ;;  %v5134_v9 = vmul.f32 %v5133_v0, %v5061_v59  ;;  %v5168_v53 = vsub.s32 1, %v6489_v43  ;;  %v5201_v43 = vld [vmem:[%s7883_s18] sm:$0xff] }
 0xdf1   :  { %v5087_v3 = vadd.f32 %v5086_v21, %v5083_v28  ;;  %v5075_v31 = vadd.f32 %v5074_v11, %v5071_v25  ;;  %v5068_v36 = vadd.f32 %v5067_v49, %v5064_v6  ;;  %v5123_v32 = vadd.f32 %v5122_v5, %v5119_v37  ;;  %v5204_v5 = vld [vmem:[%s7883_s18 + $0x18] sm:$0xff] }
 0xdf2   :  { %v5099_v52 = vadd.f32 %v5098_v46, %v5095_v63  ;;  %v5111_v12 = vadd.f32 %v5110_v62, %v5107_v4  ;;  %v5135_v57 = vadd.f32 %v5134_v9, %v5131_v58  ;;  %v5203_v46 = vld [vmem:[%s7883_s18 + $0x10] sm:$0xff] }
 0xdf3   :  { %5089 = vrot.lane.b32.xlu0 %v5087_v3, %s6297_s19  ;;  %5077 = vrot.lane.b32.xlu1 %v5075_v31, %s6298_s11 }
 0xdf7   :  { %5125 = vrot.lane.b32.xlu0 %v5123_v32, %s6299_s12  ;;  %5101 = vrot.lane.b32.xlu1 %v5099_v52, %s6300_s20 }
 0xdfb   :  { %5113 = vrot.lane.b32.xlu1 %v5111_v12, %s6301_s21 }
 0xdff   :  { %5137 = vrot.lane.b32.xlu1 %v5135_v57, %s6302_s22 }
 0xe65   :  { %v5078_v54 = vpop.permute.xlu1 %5077  ;;  %v5090_v33 = vpop.permute.xlu0 %5089 }
 0xe66   :  { %v5080_v10 = vadd.f32 %v5078_v54, %v5068_v36 }
 0xe68   :  { %v5092_v56 = vadd.f32 %v5090_v33, %v5080_v10 }
 0xe69   :  { %v5102_v13 = vpop.permute.xlu1 %5101  ;;  %v5126_v29 = vpop.permute.xlu0 %5125 }
 0xe6a   :  { %v5104_v14 = vadd.f32 %v5102_v13, %v5092_v56 }
 0xe6d   :  { %v5114_v23 = vpop.permute.xlu1 %5113 }
 0xe6e   :  { %v5116_v40 = vadd.f32 %v5114_v23, %v5104_v14 }
 0xe70   :  { %v5128_v15 = vadd.f32 %v5126_v29, %v5116_v40 }
 0xe71   :  { %v5138_v20 = vpop.permute.xlu1 %5137 }
 0xe72   :  { %v5140_v42 = vadd.f32 %v5138_v20, %v5128_v15 }
 0xe74   :  { %v5465_v41 = vmul.f32 -1.442695, %v5140_v42 }
 0xe76   :  { %6268 = vpow2.f32 %v5465_v41 }
 0xe80   :  { %v6269_v8 = vpop.eup %6268 }
 0xe81   :  { %v5144_v19 = vadd.f32 1.0, %v6269_v8 }
 0xe83   :  { %6270 = vrcp.f32 %v5144_v19 }
 0xe8d   :  { %v6271_v27 = vpop.eup %6270 }
 0xe8e   :  { %v5150_v59 = vrot.slane %v6271_v27, %v6495_v45  ;;  %v5169_v51 = vrot.slane %v6271_v27, %v5168_v53  ;;  %v5202_v45 = vld [vmem:[%s7883_s18 + $0x8] sm:$0xff] }
 0xe90   :  { %5156 = vbcast.lane.b32.xlu1 %v5150_v59, 264  ;;  %5152 = vbcast.lane.b32.xlu0 %v5150_v59, 256 }
 0xe94   :  { %5164 = vbcast.lane.b32.xlu1 %v5150_v59, 280  ;;  %5160 = vbcast.lane.b32.xlu0 %v5150_v59, 272 }
 0xe98   :  { %5175 = vbcast.lane.b32.xlu1 %v5169_v51, 264  ;;  %5171 = vbcast.lane.b32.xlu0 %v5169_v51, 256 }
 0xe9c   :  { %5183 = vbcast.lane.b32.xlu1 %v5169_v51, 280  ;;  %5179 = vbcast.lane.b32.xlu0 %v5169_v51, 272 }
 0xf02   :  { %v5157_v28 = vpop.permute.xlu1 %5156  ;;  %v5153_v21 = vpop.permute.xlu0 %5152 }
 0xf03   :  { %v5186_v25 = vmul.f32 %v5157_v28, %v7660_v55  ;;  %v5185_v11 = vmul.f32 %v5153_v21, %v7663_v1 }
 0xf05   :  { %v5194_v30 = vmul.f32 %v5186_v25, %v7510_v44  ;;  %v5193_v38 = vmul.f32 %v5185_v11, %v7508_v47 }
 0xf06   :  { %v5165_v6 = vpop.permute.xlu1 %5164  ;;  %v5161_v49 = vpop.permute.xlu0 %5160 }
 0xf07   :  { %v5210_v3 = vadd.f32 %v5202_v45, %v5194_v30  ;;  %v5209_v31 = vadd.f32 %v5201_v43, %v5193_v38  ;;  %v5188_v55 = vmul.f32 %v5165_v6, %v7678_v35  ;;  %v5187_v1 = vmul.f32 %v5161_v49, %v7670_v24 }
 0xf09   :  { %5218 = vst.msk [vmem:[%s7880_s16 + $0x8] sm:$0xff] %vm111_vm0, %v5210_v3  ;;  %5217 = vst.msk [vmem:[%s7880_s16] sm:$0xff] %vm111_vm0, %v5209_v31  ;;  %v5196_v47 = vmul.f32 %v5188_v55, %v7514_v2  ;;  %v5195_v44 = vmul.f32 %v5187_v1, %v7512_v16 }
 0xf0a   :  { %v5176_v24 = vpop.permute.xlu1 %5175  ;;  %v5172_v35 = vpop.permute.xlu0 %5171 }
 0xf0b   :  { %v5212_v34 = vadd.f32 %v5204_v5, %v5196_v47  ;;  %v5211_v36 = vadd.f32 %v5203_v46, %v5195_v44  ;;  %v5190_v37 = vmul.f32 %v5176_v24, %v7688_v26  ;;  %v5189_v63 = vmul.f32 %v5172_v35, %v7681_v60 }
 0xf0d   :  { %v5198_v16 = vmul.f32 %v5190_v37, %v7502_v48  ;;  %v5197_v2 = vmul.f32 %v5189_v63, %v7500_v18 }
 0xf0e   :  { %v5184_v60 = vpop.permute.xlu1 %5183  ;;  %v5180_v26 = vpop.permute.xlu0 %5179 }
 0xf0f   :  { %v5192_v0 = vmul.f32 %v5184_v60, %v7702_v22  ;;  %v5191_v4 = vmul.f32 %v5180_v26, %v7695_v61 }
 0xf10   :  { %v5206_v39 = vld [vmem:[%s7883_s18 + $0x28] sm:$0xff]  ;;  %v5205_v32 = vld [vmem:[%s7883_s18 + $0x20] sm:$0xff] }
 0xf11   :  { %5220 = vst.msk [vmem:[%s7880_s16 + $0x18] sm:$0xff] %vm111_vm0, %v5212_v34  ;;  %5219 = vst.msk [vmem:[%s7880_s16 + $0x10] sm:$0xff] %vm111_vm0, %v5211_v36  ;;  %v5214_v52 = vadd.f32 %v5206_v39, %v5198_v16  ;;  %v5213_v62 = vadd.f32 %v5205_v32, %v5197_v2  ;;  %v5200_v18 = vmul.f32 %v5192_v0, %v7506_v17 }
 0xf12   :  { %v5199_v48 = vmul.f32 %v5191_v4, %v7504_v50 }
 0xf18   :  { %v5208_v7 = vld [vmem:[%s7883_s18 + $0x38] sm:$0xff]  ;;  %v5207_v12 = vld [vmem:[%s7883_s18 + $0x30] sm:$0xff] }
 0xf19   :  { %5222 = vst.msk [vmem:[%s7880_s16 + $0x28] sm:$0xff] %vm111_vm0, %v5214_v52  ;;  %5221 = vst.msk [vmem:[%s7880_s16 + $0x20] sm:$0xff] %vm111_vm0, %v5213_v62  ;;  %v5216_v61 = vadd.f32 %v5208_v7, %v5200_v18  ;;  %v5215_v22 = vadd.f32 %v5207_v12, %v5199_v48 }
 0xf1b   :  { %5224 = vst.msk [vmem:[%s7880_s16 + $0x38] sm:$0xff] %vm111_vm0, %v5216_v61  ;;  %5223 = vst.msk [vmem:[%s7880_s16 + $0x30] sm:$0xff] %vm111_vm0, %v5215_v22 }
 0xf1c   :  { %5229 = vsyncpa [#allocation4], 1 }

</bundles_post_ra>
